<compile_context>
chip_gen: v6e
topology: v6e:2x2x1
jax: 0.10.0
libtpu: 0.0.40
codegen_flags: <defaults>
</compile_context>

<pallas_src>
import functools
import math

import jax
import jax.numpy as jnp
from jax import lax
from jax.experimental import pallas as pl
from jax.experimental.pallas import tpu as pltpu


def _silu(v):
    return v * jax.nn.sigmoid(v)


def code_unet_kernel(x_ref,                      # (4, N, E) phase-major input (+temb), f32
                     wd1, bd1, wd2, bd2,         # down convs (taps stacked along K)
                     wm1, bm1, wm2, bm2,         # middle convs
                     wu1, bu1,                   # up1 (cat([m, m]) + both taps folded)
                     wu2c, wu2s, bu2,            # up2 centre tap / side taps
                     wf, bf,                     # final 1x1 (skip concat folded)
                     o_ref,                      # (N, 4E) lane-dense output
                     *, width):
    f32, bf16 = jnp.float32, jnp.bfloat16
    cat = jnp.concatenate
    n = x_ref.shape[1]

    # per-segment boundary masks for the sequence shifts, hoisted & computed once
    pos = lax.broadcasted_iota(jnp.int32, (n, 1), 0) % width
    masks = {d: jnp.logical_and(pos + d >= 0, pos + d < width)
             for d in (-2, -1, 1, 2)}

    def shift(a, d):
        """out[r] = a[r + d] inside each length-`width` segment, else 0 (vreg-only)."""
        z = jnp.zeros((abs(d), a.shape[1]), a.dtype)
        s = cat([a[d:, :], z], axis=0) if d > 0 else cat([z, a[:d, :]], axis=0)
        return jnp.where(masks[d], s, jnp.zeros_like(s))

    def mm(a, w_ref, b_ref):
        """bf16 MXU matmul, f32 accumulation, single bias add."""
        return jnp.dot(a.astype(bf16), w_ref[...],
                       preferred_element_type=f32) + b_ref[...]

    xph = lambda k: x_ref[k]     # phase k of the input: x[b, 4j+k, :]  (= skip1)

    # ---- down1: Conv(E->2E, k3, p1) + SiLU + MaxPool(2) -------------------------
    # one (4n, 3E) @ (3E, 2E) matmul: taps in K bands, output phases in row blocks
    x0, x1, x2, x3 = xph(0), xph(1), xph(2), xph(3)
    a = cat([cat([shift(x3, -1), x0, x1], axis=1),      # conv at 4j
             cat([x0, x1, x2], axis=1),                 # conv at 4j+1
             cat([x1, x2, x3], axis=1),                 # conv at 4j+2
             cat([x2, x3, shift(x0, 1)], axis=1)],      # conv at 4j+3
            axis=0)
    h = _silu(mm(a, wd1, bd1))                          # (4n, 2E)
    s2e = jnp.maximum(h[:n], h[n:2 * n])                # skip2 even positions (n, 2E)
    s2o = jnp.maximum(h[2 * n:3 * n], h[3 * n:])        # skip2 odd positions  (n, 2E)

    # ---- down2: Conv(2E->4E, k3, p1) + SiLU + MaxPool(2): one (2n, 6E)@(6E, 4E) -
    s2ep = shift(s2e, 1)                                # skip2[2j+2], reused by up2
    a = cat([cat([shift(s2o, -1), s2e, s2o], axis=1),   # conv at 2j
             cat([s2e, s2o, s2ep], axis=1)],            # conv at 2j+1
            axis=0)
    h = _silu(mm(a, wd2, bd2))                          # (2n, 4E)
    xm = jnp.maximum(h[:n], h[n:])                      # (n, 4E)

    # ---- middle: dilated conv + SiLU + conv: two (n, 12E) @ (12E, 4E) -----------
    m = _silu(mm(cat([shift(xm, -2), xm, shift(xm, 2)], axis=1), wm1, bm1))
    m = mm(cat([shift(m, -1), m, shift(m, 1)], axis=1), wm2, bm2)      # (n, 4E)

    # ---- up1: ConvT(8E->2E, s2) on cat([m, m]): one (n, 8E) @ (8E, 4E) + SiLU ---
    u1 = _silu(mm(cat([m, shift(m, 1)], axis=1), wu1, bu1))            # (n, 4E)
    e2 = u1.shape[1] // 2
    u1e, u1o = u1[:, :e2], u1[:, e2:]                   # up1 output at 2j / 2j+1

    # ---- up2: ConvT(4E->E, s2) on cat([u1, skip2]) + SiLU -----------------------
    ce = cat([u1e, s2e], axis=1)                        # concat input at even pos (n, 4E)
    co = cat([u1o, s2o], axis=1)                        # concat input at odd pos
    cep = cat([shift(u1e, 1), s2ep], axis=1)            # concat input at 2j+2
    ya = _silu(mm(cat([ce, co], axis=0), wu2c, bu2))    # [y0; y2]  (2n, E)
    yb = _silu(mm(cat([cat([co, ce], axis=1),
                       cat([cep, co], axis=1)], axis=0), wu2s, bu2))   # [y1; y3]

    # ---- final 1x1 conv on cat([up2_out, skip1]): one (4n, 2E) @ (2E, E) --------
    # skip1 is re-read from VMEM here instead of being held live across the body.
    a = cat([cat([ya[:n], xph(0)], axis=1),
             cat([yb[:n], xph(1)], axis=1),
             cat([ya[n:], xph(2)], axis=1),
             cat([yb[n:], xph(3)], axis=1)], axis=0)
    o = mm(a, wf, bf)                                   # (4n, E)

    # lane-dense store: output phase k goes directly to column band [k*E, (k+1)*E)
    e1 = o.shape[1]
    o_ref[:, 0 * e1:1 * e1] = o[:n]
    o_ref[:, 1 * e1:2 * e1] = o[n:2 * n]
    o_ref[:, 2 * e1:3 * e1] = o[2 * n:3 * n]
    o_ref[:, 3 * e1:4 * e1] = o[3 * n:]


def code_unet_forward(x_nchw, timesteps, params, *, batch_tile=None):
    """x_nchw: (B, E, 1, S) float32 (PyTorch NCHW layout); timesteps: (B,)."""
    B, E, H, S = x_nchw.shape
    assert H == 1 and S % 4 == 0
    SQ = S // 4
    E2, E4 = 2 * E, 4 * E
    f32, bf16 = jnp.float32, jnp.bfloat16
    cat = jnp.concatenate

    # time embedding (tiny) -> plain JAX, folded into the input before the kernel
    t = timesteps.astype(f32).reshape(B, 1)
    h = t @ params["wt1"] + params["bt1"]
    h = h * jax.nn.sigmoid(h)
    temb = h @ params["wt2"] + params["bt2"]                        # (B, E)
    x_bse = jnp.transpose(x_nchw[:, :, 0, :], (0, 2, 1)).astype(f32) + temb[:, None, :]

    # ---- fold conv taps into the contraction dim and channel concats into weights
    wd1 = params["wd1"].reshape(3 * E, E2).astype(bf16)             # (3E, 2E)
    wd2 = params["wd2"].reshape(3 * E2, E4).astype(bf16)            # (6E, 4E)
    wm1 = params["wm1"].reshape(3 * E4, E4).astype(bf16)            # (12E, 4E)
    wm2 = params["wm2"].reshape(3 * E4, E4).astype(bf16)            # (12E, 4E)
    wu1f = params["wu1"][:, :E4, :] + params["wu1"][:, E4:, :]      # fold cat([m, m])
    wu1 = cat([cat([wu1f[1], wu1f[2]], axis=1),
               cat([jnp.zeros_like(wu1f[0]), wu1f[0]], axis=1)],
              axis=0).astype(bf16)                                  # (8E, 4E)
    bu1 = cat([params["bu1"], params["bu1"]], axis=1)               # (1, 4E)
    wu2c = params["wu2"][1].astype(bf16)                            # (4E, E) centre tap
    wu2s = cat([params["wu2"][0], params["wu2"][2]], axis=0).astype(bf16)  # (8E, E)
    wf = params["wf"].astype(bf16)                                  # (2E, E)

    # ---- batch tile: rows/step multiple of 8, aim ~512 rows, keep >= 2 grid steps
    unit = 8 // math.gcd(SQ, 8)
    if batch_tile is None:
        BT = unit
        while BT * SQ < 512 and 2 * BT < B:
            BT += unit
    else:
        BT = batch_tile
    assert (BT * SQ) % 8 == 0, "rows per grid step must be a multiple of 8"
    Bp = ((B + BT - 1) // BT) * BT
    if Bp != B:
        x_bse = cat([x_bse, jnp.zeros((Bp - B, S, E), f32)], axis=0)

    # phase-major layout: x4[k, b*SQ + j, :] = x[b, 4j + k, :]
    x4 = x_bse.reshape(Bp, SQ, 4, E).transpose(2, 0, 1, 3).reshape(4, Bp * SQ, E)

    n_rows = BT * SQ
    weights = [wd1, params["bd1"], wd2, params["bd2"],
               wm1, params["bm1"], wm2, params["bm2"],
               wu1, bu1, wu2c, wu2s, params["bu2"], wf, params["bf"]]

    def wspec(a):
        nd = a.ndim
        return pl.BlockSpec(a.shape, lambda b, _nd=nd: (0,) * _nd)

    out = pl.pallas_call(
        functools.partial(code_unet_kernel, width=SQ),
        out_shape=jax.ShapeDtypeStruct((Bp * SQ, E4), f32),
        grid=(Bp // BT,),
        in_specs=[pl.BlockSpec((4, n_rows, E), lambda b: (0, b, 0))]
                 + [wspec(w) for w in weights],
        out_specs=pl.BlockSpec((n_rows, E4), lambda b: (b, 0)),
        compiler_params=pltpu.CompilerParams(
            dimension_semantics=("parallel",),
            # 48 MiB: within v7x's 64 MiB VMEM, well above the v5e/v6e defaults
            vmem_limit_bytes=48 * 1024 * 1024),
    )(x4, *weights)

    # decode (rows = (batch, j), lanes = (phase k, channel)) -> NCHW (B, E, 1, S)
    out = out.reshape(Bp, SQ, 4, E).reshape(Bp, S, E)[:B]
    return jnp.transpose(out, (0, 2, 1))[:, :, None, :]


# -----------------------------------------------------------------------------
# Deterministic synthetic parameters (kernel-friendly layouts).
#   Conv2d(Cin,Cout,(1,3))       weight[cout,cin,0,k] -> stored as (3, Cin, Cout)
#   ConvTranspose2d(Cin,Cout)    weight[cin,cout,0,k] -> stored as (3, Cin, Cout)
#   Conv2d 1x1                   weight[cout,cin,0,0] -> stored as (Cin, Cout)
#   Linear(i,o)                  weight.T             -> stored as (i, o)
# -----------------------------------------------------------------------------
def init_params(key, E):
    keys = jax.random.split(key, 18)
    nrm = lambda k, shape: 0.1 * jax.random.normal(k, shape, dtype=jnp.float32)
    Eq = E // 4
    p = {}
    p["wt1"] = nrm(keys[0], (1, Eq));            p["bt1"] = nrm(keys[1], (1, Eq))
    p["wt2"] = nrm(keys[2], (Eq, E));            p["bt2"] = nrm(keys[3], (1, E))
    p["wd1"] = nrm(keys[4], (3, E, 2 * E));      p["bd1"] = nrm(keys[5], (1, 2 * E))
    p["wd2"] = nrm(keys[6], (3, 2 * E, 4 * E));  p["bd2"] = nrm(keys[7], (1, 4 * E))
    p["wm1"] = nrm(keys[8], (3, 4 * E, 4 * E));  p["bm1"] = nrm(keys[9], (1, 4 * E))
    p["wm2"] = nrm(keys[10], (3, 4 * E, 4 * E)); p["bm2"] = nrm(keys[11], (1, 4 * E))
    p["wu1"] = nrm(keys[12], (3, 8 * E, 2 * E)); p["bu1"] = nrm(keys[13], (1, 2 * E))
    p["wu2"] = nrm(keys[14], (3, 4 * E, E));     p["bu2"] = nrm(keys[15], (1, E))
    p["wf"]  = nrm(keys[16], (2 * E, E));        p["bf"]  = nrm(keys[17], (1, E))
    return p


if __name__ == "__main__":
    B, E, S = 4, 32, 64          # batch, embed_dim, seq_length  (H == 1 for text)
    key = jax.random.PRNGKey(0)
    k_x, k_t, k_p = jax.random.split(key, 3)
    x = jax.random.normal(k_x, (B, E, 1, S), dtype=jnp.float32)    # NCHW like PyTorch
    timesteps = jax.random.uniform(k_t, (B,), dtype=jnp.float32)
    params = init_params(k_p, E)

    out = jax.block_until_ready(code_unet_forward(x, timesteps, params))
    assert out.shape == (B, E, 1, S), out.shape
    assert bool(jnp.all(jnp.isfinite(out)))
    print("KERNEL_OK")
</pallas_src>

<mosaic_0001>
module attributes {stable_mosaic.version = 11 : i64} {
  func.func @code_unet_kernel(%arg0: i32, %arg1: memref<4x32x32xf32, #tpu.memory_space<vmem>>, %arg2: memref<96x64xbf16, #tpu.memory_space<vmem>>, %arg3: memref<1x64xf32, #tpu.memory_space<vmem>>, %arg4: memref<192x128xbf16, #tpu.memory_space<vmem>>, %arg5: memref<1x128xf32, #tpu.memory_space<vmem>>, %arg6: memref<384x128xbf16, #tpu.memory_space<vmem>>, %arg7: memref<1x128xf32, #tpu.memory_space<vmem>>, %arg8: memref<384x128xbf16, #tpu.memory_space<vmem>>, %arg9: memref<1x128xf32, #tpu.memory_space<vmem>>, %arg10: memref<256x128xbf16, #tpu.memory_space<vmem>>, %arg11: memref<1x128xf32, #tpu.memory_space<vmem>>, %arg12: memref<128x32xbf16, #tpu.memory_space<vmem>>, %arg13: memref<256x32xbf16, #tpu.memory_space<vmem>>, %arg14: memref<1x32xf32, #tpu.memory_space<vmem>>, %arg15: memref<64x32xbf16, #tpu.memory_space<vmem>>, %arg16: memref<1x32xf32, #tpu.memory_space<vmem>>, %arg17: memref<32x128xf32, #tpu.memory_space<vmem>>) attributes {dimension_semantics = [#tpu.dimension_semantics<parallel>], iteration_bounds = array<i64: 2>, scalar_prefetch = 0 : i64, scratch_operands = 0 : i64, tpu.core_type = #tpu.core_type<tc>, window_params = [{transform_indices = @transform_0, window_bounds = array<i64: 4, 32, 32>}, {pipeline_mode = #tpu.pipeline_mode<synchronous>, transform_indices = @transform_1, window_bounds = array<i64: 96, 64>}, {pipeline_mode = #tpu.pipeline_mode<synchronous>, transform_indices = @transform_2, window_bounds = array<i64: 1, 64>}, {pipeline_mode = #tpu.pipeline_mode<synchronous>, transform_indices = @transform_3, window_bounds = array<i64: 192, 128>}, {pipeline_mode = #tpu.pipeline_mode<synchronous>, transform_indices = @transform_4, window_bounds = array<i64: 1, 128>}, {pipeline_mode = #tpu.pipeline_mode<synchronous>, transform_indices = @transform_5, window_bounds = array<i64: 384, 128>}, {pipeline_mode = #tpu.pipeline_mode<synchronous>, transform_indices = @transform_6, window_bounds = array<i64: 1, 128>}, {pipeline_mode = #tpu.pipeline_mode<synchronous>, transform_indices = @transform_7, window_bounds = array<i64: 384, 128>}, {pipeline_mode = #tpu.pipeline_mode<synchronous>, transform_indices = @transform_8, window_bounds = array<i64: 1, 128>}, {pipeline_mode = #tpu.pipeline_mode<synchronous>, transform_indices = @transform_9, window_bounds = array<i64: 256, 128>}, {pipeline_mode = #tpu.pipeline_mode<synchronous>, transform_indices = @transform_10, window_bounds = array<i64: 1, 128>}, {pipeline_mode = #tpu.pipeline_mode<synchronous>, transform_indices = @transform_11, window_bounds = array<i64: 128, 32>}, {pipeline_mode = #tpu.pipeline_mode<synchronous>, transform_indices = @transform_12, window_bounds = array<i64: 256, 32>}, {pipeline_mode = #tpu.pipeline_mode<synchronous>, transform_indices = @transform_13, window_bounds = array<i64: 1, 32>}, {pipeline_mode = #tpu.pipeline_mode<synchronous>, transform_indices = @transform_14, window_bounds = array<i64: 64, 32>}, {pipeline_mode = #tpu.pipeline_mode<synchronous>, transform_indices = @transform_15, window_bounds = array<i64: 1, 32>}, {transform_indices = @transform_16, window_bounds = array<i64: 32, 128>}]} {
    %0 = tpu.iota {dimensions = array<i32: 0>} : vector<32x1xi32>
    %c16_i32 = arith.constant 16 : i32
    %c0_i32 = arith.constant 0 : i32
    %1 = arith.cmpi eq, %c16_i32, %c0_i32 : i32
    %c1_i32 = arith.constant 1 : i32
    %2 = arith.select %1, %c1_i32, %c16_i32 : i32
    %3 = vector.broadcast %2 : i32 to vector<32x1xi32>
    %4 = arith.remsi %0, %3 : vector<32x1xi32>
    %c0_i32_0 = arith.constant 0 : i32
    %5 = vector.broadcast %c0_i32_0 : i32 to vector<32x1xi32>
    %6 = arith.cmpi ne, %4, %5 : vector<32x1xi32>
    %c0_i32_1 = arith.constant 0 : i32
    %7 = vector.broadcast %c0_i32_1 : i32 to vector<32x1xi32>
    %8 = arith.cmpi slt, %4, %7 : vector<32x1xi32>
    %c0_i32_2 = arith.constant 0 : i32
    %9 = arith.cmpi slt, %2, %c0_i32_2 : i32
    %10 = vector.broadcast %9 : i1 to vector<32x1xi1>
    %11 = vector.broadcast %10 : vector<32x1xi1> to vector<32x1xi1>
    %12 = arith.xori %8, %11 : vector<32x1xi1>
    %13 = arith.andi %12, %6 : vector<32x1xi1>
    %14 = vector.broadcast %2 : i32 to vector<32x1xi32>
    %15 = arith.addi %4, %14 : vector<32x1xi32>
    %16 = arith.select %13, %15, %4 : vector<32x1xi1>, vector<32x1xi32>
    %c-2_i32 = arith.constant -2 : i32
    %17 = vector.broadcast %c-2_i32 : i32 to vector<32x1xi32>
    %18 = arith.addi %16, %17 : vector<32x1xi32>
    %c0_i32_3 = arith.constant 0 : i32
    %19 = vector.broadcast %c0_i32_3 : i32 to vector<32x1xi32>
    %20 = arith.cmpi sge, %18, %19 : vector<32x1xi32>
    %c-2_i32_4 = arith.constant -2 : i32
    %21 = vector.broadcast %c-2_i32_4 : i32 to vector<32x1xi32>
    %22 = arith.addi %16, %21 : vector<32x1xi32>
    %c16_i32_5 = arith.constant 16 : i32
    %23 = vector.broadcast %c16_i32_5 : i32 to vector<32x1xi32>
    %24 = arith.cmpi slt, %22, %23 : vector<32x1xi32>
    %25 = arith.andi %20, %24 : vector<32x1xi1>
    %c-1_i32 = arith.constant -1 : i32
    %26 = vector.broadcast %c-1_i32 : i32 to vector<32x1xi32>
    %27 = arith.addi %16, %26 : vector<32x1xi32>
    %c0_i32_6 = arith.constant 0 : i32
    %28 = vector.broadcast %c0_i32_6 : i32 to vector<32x1xi32>
    %29 = arith.cmpi sge, %27, %28 : vector<32x1xi32>
    %c-1_i32_7 = arith.constant -1 : i32
    %30 = vector.broadcast %c-1_i32_7 : i32 to vector<32x1xi32>
    %31 = arith.addi %16, %30 : vector<32x1xi32>
    %c16_i32_8 = arith.constant 16 : i32
    %32 = vector.broadcast %c16_i32_8 : i32 to vector<32x1xi32>
    %33 = arith.cmpi slt, %31, %32 : vector<32x1xi32>
    %34 = arith.andi %29, %33 : vector<32x1xi1>
    %c1_i32_9 = arith.constant 1 : i32
    %35 = vector.broadcast %c1_i32_9 : i32 to vector<32x1xi32>
    %36 = arith.addi %16, %35 : vector<32x1xi32>
    %c0_i32_10 = arith.constant 0 : i32
    %37 = vector.broadcast %c0_i32_10 : i32 to vector<32x1xi32>
    %38 = arith.cmpi sge, %36, %37 : vector<32x1xi32>
    %c1_i32_11 = arith.constant 1 : i32
    %39 = vector.broadcast %c1_i32_11 : i32 to vector<32x1xi32>
    %40 = arith.addi %16, %39 : vector<32x1xi32>
    %c16_i32_12 = arith.constant 16 : i32
    %41 = vector.broadcast %c16_i32_12 : i32 to vector<32x1xi32>
    %42 = arith.cmpi slt, %40, %41 : vector<32x1xi32>
    %43 = arith.andi %38, %42 : vector<32x1xi1>
    %c2_i32 = arith.constant 2 : i32
    %44 = vector.broadcast %c2_i32 : i32 to vector<32x1xi32>
    %45 = arith.addi %16, %44 : vector<32x1xi32>
    %c0_i32_13 = arith.constant 0 : i32
    %46 = vector.broadcast %c0_i32_13 : i32 to vector<32x1xi32>
    %47 = arith.cmpi sge, %45, %46 : vector<32x1xi32>
    %c2_i32_14 = arith.constant 2 : i32
    %48 = vector.broadcast %c2_i32_14 : i32 to vector<32x1xi32>
    %49 = arith.addi %16, %48 : vector<32x1xi32>
    %c16_i32_15 = arith.constant 16 : i32
    %50 = vector.broadcast %c16_i32_15 : i32 to vector<32x1xi32>
    %51 = arith.cmpi slt, %49, %50 : vector<32x1xi32>
    %52 = arith.andi %47, %51 : vector<32x1xi1>
    %c0 = arith.constant 0 : index
    %c0_16 = arith.constant 0 : index
    %c0_17 = arith.constant 0 : index
    %53 = vector.load %arg1[%c0, %c0_16, %c0_17] : memref<4x32x32xf32, #tpu.memory_space<vmem>>, vector<1x32x32xf32>
    %54 = vector.shape_cast %53 : vector<1x32x32xf32> to vector<32x32xf32>
    %c1 = arith.constant 1 : index
    %c0_18 = arith.constant 0 : index
    %c0_19 = arith.constant 0 : index
    %55 = vector.load %arg1[%c1, %c0_18, %c0_19] : memref<4x32x32xf32, #tpu.memory_space<vmem>>, vector<1x32x32xf32>
    %56 = vector.shape_cast %55 : vector<1x32x32xf32> to vector<32x32xf32>
    %c2 = arith.constant 2 : index
    %c0_20 = arith.constant 0 : index
    %c0_21 = arith.constant 0 : index
    %57 = vector.load %arg1[%c2, %c0_20, %c0_21] : memref<4x32x32xf32, #tpu.memory_space<vmem>>, vector<1x32x32xf32>
    %58 = vector.shape_cast %57 : vector<1x32x32xf32> to vector<32x32xf32>
    %c3 = arith.constant 3 : index
    %c0_22 = arith.constant 0 : index
    %c0_23 = arith.constant 0 : index
    %59 = vector.load %arg1[%c3, %c0_22, %c0_23] : memref<4x32x32xf32, #tpu.memory_space<vmem>>, vector<1x32x32xf32>
    %60 = vector.shape_cast %59 : vector<1x32x32xf32> to vector<32x32xf32>
    %cst = arith.constant 0.000000e+00 : f32
    %61 = vector.broadcast %cst : f32 to vector<1x32xf32>
    %62 = vector.extract_strided_slice %60 {offsets = [0, 0], sizes = [31, 32], strides = [1, 1]} : vector<32x32xf32> to vector<31x32xf32>
    %63 = tpu.concatenate %61, %62 in 0 : vector<1x32xf32>, vector<31x32xf32> -> vector<32x32xf32>
    %cst_24 = arith.constant 0.000000e+00 : f32
    %64 = vector.broadcast %cst_24 : f32 to vector<32x32xf32>
    %65 = vector.shape_cast %34 : vector<32x1xi1> to vector<32x1xi1>
    %66 = vector.broadcast %65 : vector<32x1xi1> to vector<32x32xi1>
    %67 = arith.select %66, %63, %64 : vector<32x32xi1>, vector<32x32xf32>
    %68 = tpu.concatenate %67, %54, %56 in 1 : vector<32x32xf32>, vector<32x32xf32>, vector<32x32xf32> -> vector<32x96xf32>
    %69 = tpu.concatenate %54, %56, %58 in 1 : vector<32x32xf32>, vector<32x32xf32>, vector<32x32xf32> -> vector<32x96xf32>
    %70 = tpu.concatenate %56, %58, %60 in 1 : vector<32x32xf32>, vector<32x32xf32>, vector<32x32xf32> -> vector<32x96xf32>
    %cst_25 = arith.constant 0.000000e+00 : f32
    %71 = vector.broadcast %cst_25 : f32 to vector<1x32xf32>
    %72 = vector.extract_strided_slice %54 {offsets = [1, 0], sizes = [31, 32], strides = [1, 1]} : vector<32x32xf32> to vector<31x32xf32>
    %73 = tpu.concatenate %72, %71 in 0 : vector<31x32xf32>, vector<1x32xf32> -> vector<32x32xf32>
    %cst_26 = arith.constant 0.000000e+00 : f32
    %74 = vector.broadcast %cst_26 : f32 to vector<32x32xf32>
    %75 = vector.shape_cast %43 : vector<32x1xi1> to vector<32x1xi1>
    %76 = vector.broadcast %75 : vector<32x1xi1> to vector<32x32xi1>
    %77 = arith.select %76, %73, %74 : vector<32x32xi1>, vector<32x32xf32>
    %78 = tpu.concatenate %58, %60, %77 in 1 : vector<32x32xf32>, vector<32x32xf32>, vector<32x32xf32> -> vector<32x96xf32>
    %79 = tpu.concatenate %68, %69, %70, %78 in 0 : vector<32x96xf32>, vector<32x96xf32>, vector<32x96xf32>, vector<32x96xf32> -> vector<128x96xf32>
    %80 = arith.truncf %79 : vector<128x96xf32> to vector<128x96xbf16>
    %c0_27 = arith.constant 0 : index
    %c0_28 = arith.constant 0 : index
    %81 = vector.load %arg2[%c0_27, %c0_28] : memref<96x64xbf16, #tpu.memory_space<vmem>>, vector<96x64xbf16>
    %cst_29 = arith.constant dense<0.000000e+00> : vector<128x64xf32>
    %82 = tpu.matmul %80, %81, %cst_29 {dimension_numbers = #tpu.dot_dimension_numbers<[1], [0], [0], [1], [0, 0, 1, 1], [], []>} : vector<128x96xbf16>, vector<96x64xbf16>, vector<128x64xf32> -> vector<128x64xf32>
    %c0_30 = arith.constant 0 : index
    %c0_31 = arith.constant 0 : index
    %83 = vector.load %arg3[%c0_30, %c0_31] : memref<1x64xf32, #tpu.memory_space<vmem>>, vector<1x64xf32>
    %84 = vector.broadcast %83 : vector<1x64xf32> to vector<128x64xf32>
    %85 = arith.addf %82, %84 : vector<128x64xf32>
    %86 = arith.negf %85 : vector<128x64xf32>
    %87 = math.exp %86 : vector<128x64xf32>
    %cst_32 = arith.constant 1.000000e+00 : f32
    %88 = vector.broadcast %cst_32 : f32 to vector<128x64xf32>
    %89 = arith.addf %88, %87 : vector<128x64xf32>
    %90 = arith.divf %88, %89 : vector<128x64xf32>
    %91 = arith.mulf %85, %90 : vector<128x64xf32>
    %92 = vector.extract_strided_slice %91 {offsets = [0, 0], sizes = [32, 64], strides = [1, 1]} : vector<128x64xf32> to vector<32x64xf32>
    %93 = vector.extract_strided_slice %91 {offsets = [32, 0], sizes = [32, 64], strides = [1, 1]} : vector<128x64xf32> to vector<32x64xf32>
    %94 = arith.maximumf %92, %93 : vector<32x64xf32>
    %95 = vector.extract_strided_slice %91 {offsets = [64, 0], sizes = [32, 64], strides = [1, 1]} : vector<128x64xf32> to vector<32x64xf32>
    %96 = vector.extract_strided_slice %91 {offsets = [96, 0], sizes = [32, 64], strides = [1, 1]} : vector<128x64xf32> to vector<32x64xf32>
    %97 = arith.maximumf %95, %96 : vector<32x64xf32>
    %cst_33 = arith.constant 0.000000e+00 : f32
    %98 = vector.broadcast %cst_33 : f32 to vector<1x64xf32>
    %99 = vector.extract_strided_slice %94 {offsets = [1, 0], sizes = [31, 64], strides = [1, 1]} : vector<32x64xf32> to vector<31x64xf32>
    %100 = tpu.concatenate %99, %98 in 0 : vector<31x64xf32>, vector<1x64xf32> -> vector<32x64xf32>
    %cst_34 = arith.constant 0.000000e+00 : f32
    %101 = vector.broadcast %cst_34 : f32 to vector<32x64xf32>
    %102 = vector.shape_cast %43 : vector<32x1xi1> to vector<32x1xi1>
    %103 = vector.broadcast %102 : vector<32x1xi1> to vector<32x64xi1>
    %104 = arith.select %103, %100, %101 : vector<32x64xi1>, vector<32x64xf32>
    %cst_35 = arith.constant 0.000000e+00 : f32
    %105 = vector.broadcast %cst_35 : f32 to vector<1x64xf32>
    %106 = vector.extract_strided_slice %97 {offsets = [0, 0], sizes = [31, 64], strides = [1, 1]} : vector<32x64xf32> to vector<31x64xf32>
    %107 = tpu.concatenate %105, %106 in 0 : vector<1x64xf32>, vector<31x64xf32> -> vector<32x64xf32>
    %cst_36 = arith.constant 0.000000e+00 : f32
    %108 = vector.broadcast %cst_36 : f32 to vector<32x64xf32>
    %109 = vector.shape_cast %34 : vector<32x1xi1> to vector<32x1xi1>
    %110 = vector.broadcast %109 : vector<32x1xi1> to vector<32x64xi1>
    %111 = arith.select %110, %107, %108 : vector<32x64xi1>, vector<32x64xf32>
    %112 = tpu.concatenate %111, %94, %97 in 1 : vector<32x64xf32>, vector<32x64xf32>, vector<32x64xf32> -> vector<32x192xf32>
    %113 = tpu.concatenate %94, %97, %104 in 1 : vector<32x64xf32>, vector<32x64xf32>, vector<32x64xf32> -> vector<32x192xf32>
    %114 = tpu.concatenate %112, %113 in 0 : vector<32x192xf32>, vector<32x192xf32> -> vector<64x192xf32>
    %115 = arith.truncf %114 : vector<64x192xf32> to vector<64x192xbf16>
    %c0_37 = arith.constant 0 : index
    %c0_38 = arith.constant 0 : index
    %116 = vector.load %arg4[%c0_37, %c0_38] : memref<192x128xbf16, #tpu.memory_space<vmem>>, vector<192x128xbf16>
    %cst_39 = arith.constant dense<0.000000e+00> : vector<64x128xf32>
    %117 = tpu.matmul %115, %116, %cst_39 {dimension_numbers = #tpu.dot_dimension_numbers<[1], [0], [0], [1], [0, 0, 1, 1], [], []>} : vector<64x192xbf16>, vector<192x128xbf16>, vector<64x128xf32> -> vector<64x128xf32>
    %c0_40 = arith.constant 0 : index
    %c0_41 = arith.constant 0 : index
    %118 = vector.load %arg5[%c0_40, %c0_41] : memref<1x128xf32, #tpu.memory_space<vmem>>, vector<1x128xf32>
    %119 = vector.broadcast %118 : vector<1x128xf32> to vector<64x128xf32>
    %120 = arith.addf %117, %119 : vector<64x128xf32>
    %121 = arith.negf %120 : vector<64x128xf32>
    %122 = math.exp %121 : vector<64x128xf32>
    %cst_42 = arith.constant 1.000000e+00 : f32
    %123 = vector.broadcast %cst_42 : f32 to vector<64x128xf32>
    %124 = arith.addf %123, %122 : vector<64x128xf32>
    %125 = arith.divf %123, %124 : vector<64x128xf32>
    %126 = arith.mulf %120, %125 : vector<64x128xf32>
    %127 = vector.extract_strided_slice %126 {offsets = [0, 0], sizes = [32, 128], strides = [1, 1]} : vector<64x128xf32> to vector<32x128xf32>
    %128 = vector.extract_strided_slice %126 {offsets = [32, 0], sizes = [32, 128], strides = [1, 1]} : vector<64x128xf32> to vector<32x128xf32>
    %129 = arith.maximumf %127, %128 : vector<32x128xf32>
    %cst_43 = arith.constant 0.000000e+00 : f32
    %130 = vector.broadcast %cst_43 : f32 to vector<2x128xf32>
    %131 = vector.extract_strided_slice %129 {offsets = [0, 0], sizes = [30, 128], strides = [1, 1]} : vector<32x128xf32> to vector<30x128xf32>
    %132 = tpu.concatenate %130, %131 in 0 : vector<2x128xf32>, vector<30x128xf32> -> vector<32x128xf32>
    %cst_44 = arith.constant 0.000000e+00 : f32
    %133 = vector.broadcast %cst_44 : f32 to vector<32x128xf32>
    %134 = vector.shape_cast %25 : vector<32x1xi1> to vector<32x1xi1>
    %135 = vector.broadcast %134 : vector<32x1xi1> to vector<32x128xi1>
    %136 = arith.select %135, %132, %133 : vector<32x128xi1>, vector<32x128xf32>
    %cst_45 = arith.constant 0.000000e+00 : f32
    %137 = vector.broadcast %cst_45 : f32 to vector<2x128xf32>
    %138 = vector.extract_strided_slice %129 {offsets = [2, 0], sizes = [30, 128], strides = [1, 1]} : vector<32x128xf32> to vector<30x128xf32>
    %139 = tpu.concatenate %138, %137 in 0 : vector<30x128xf32>, vector<2x128xf32> -> vector<32x128xf32>
    %cst_46 = arith.constant 0.000000e+00 : f32
    %140 = vector.broadcast %cst_46 : f32 to vector<32x128xf32>
    %141 = vector.shape_cast %52 : vector<32x1xi1> to vector<32x1xi1>
    %142 = vector.broadcast %141 : vector<32x1xi1> to vector<32x128xi1>
    %143 = arith.select %142, %139, %140 : vector<32x128xi1>, vector<32x128xf32>
    %144 = tpu.concatenate %136, %129, %143 in 1 : vector<32x128xf32>, vector<32x128xf32>, vector<32x128xf32> -> vector<32x384xf32>
    %145 = arith.truncf %144 : vector<32x384xf32> to vector<32x384xbf16>
    %c0_47 = arith.constant 0 : index
    %c0_48 = arith.constant 0 : index
    %146 = vector.load %arg6[%c0_47, %c0_48] : memref<384x128xbf16, #tpu.memory_space<vmem>>, vector<384x128xbf16>
    %cst_49 = arith.constant dense<0.000000e+00> : vector<32x128xf32>
    %147 = tpu.matmul %145, %146, %cst_49 {dimension_numbers = #tpu.dot_dimension_numbers<[1], [0], [0], [1], [0, 0, 1, 1], [], []>} : vector<32x384xbf16>, vector<384x128xbf16>, vector<32x128xf32> -> vector<32x128xf32>
    %c0_50 = arith.constant 0 : index
    %c0_51 = arith.constant 0 : index
    %148 = vector.load %arg7[%c0_50, %c0_51] : memref<1x128xf32, #tpu.memory_space<vmem>>, vector<1x128xf32>
    %149 = vector.broadcast %148 : vector<1x128xf32> to vector<32x128xf32>
    %150 = arith.addf %147, %149 : vector<32x128xf32>
    %151 = arith.negf %150 : vector<32x128xf32>
    %152 = math.exp %151 : vector<32x128xf32>
    %cst_52 = arith.constant 1.000000e+00 : f32
    %153 = vector.broadcast %cst_52 : f32 to vector<32x128xf32>
    %154 = arith.addf %153, %152 : vector<32x128xf32>
    %155 = arith.divf %153, %154 : vector<32x128xf32>
    %156 = arith.mulf %150, %155 : vector<32x128xf32>
    %cst_53 = arith.constant 0.000000e+00 : f32
    %157 = vector.broadcast %cst_53 : f32 to vector<1x128xf32>
    %158 = vector.extract_strided_slice %156 {offsets = [0, 0], sizes = [31, 128], strides = [1, 1]} : vector<32x128xf32> to vector<31x128xf32>
    %159 = tpu.concatenate %157, %158 in 0 : vector<1x128xf32>, vector<31x128xf32> -> vector<32x128xf32>
    %cst_54 = arith.constant 0.000000e+00 : f32
    %160 = vector.broadcast %cst_54 : f32 to vector<32x128xf32>
    %161 = vector.shape_cast %34 : vector<32x1xi1> to vector<32x1xi1>
    %162 = vector.broadcast %161 : vector<32x1xi1> to vector<32x128xi1>
    %163 = arith.select %162, %159, %160 : vector<32x128xi1>, vector<32x128xf32>
    %cst_55 = arith.constant 0.000000e+00 : f32
    %164 = vector.broadcast %cst_55 : f32 to vector<1x128xf32>
    %165 = vector.extract_strided_slice %156 {offsets = [1, 0], sizes = [31, 128], strides = [1, 1]} : vector<32x128xf32> to vector<31x128xf32>
    %166 = tpu.concatenate %165, %164 in 0 : vector<31x128xf32>, vector<1x128xf32> -> vector<32x128xf32>
    %cst_56 = arith.constant 0.000000e+00 : f32
    %167 = vector.broadcast %cst_56 : f32 to vector<32x128xf32>
    %168 = vector.shape_cast %43 : vector<32x1xi1> to vector<32x1xi1>
    %169 = vector.broadcast %168 : vector<32x1xi1> to vector<32x128xi1>
    %170 = arith.select %169, %166, %167 : vector<32x128xi1>, vector<32x128xf32>
    %171 = tpu.concatenate %163, %156, %170 in 1 : vector<32x128xf32>, vector<32x128xf32>, vector<32x128xf32> -> vector<32x384xf32>
    %172 = arith.truncf %171 : vector<32x384xf32> to vector<32x384xbf16>
    %c0_57 = arith.constant 0 : index
    %c0_58 = arith.constant 0 : index
    %173 = vector.load %arg8[%c0_57, %c0_58] : memref<384x128xbf16, #tpu.memory_space<vmem>>, vector<384x128xbf16>
    %cst_59 = arith.constant dense<0.000000e+00> : vector<32x128xf32>
    %174 = tpu.matmul %172, %173, %cst_59 {dimension_numbers = #tpu.dot_dimension_numbers<[1], [0], [0], [1], [0, 0, 1, 1], [], []>} : vector<32x384xbf16>, vector<384x128xbf16>, vector<32x128xf32> -> vector<32x128xf32>
    %c0_60 = arith.constant 0 : index
    %c0_61 = arith.constant 0 : index
    %175 = vector.load %arg9[%c0_60, %c0_61] : memref<1x128xf32, #tpu.memory_space<vmem>>, vector<1x128xf32>
    %176 = vector.broadcast %175 : vector<1x128xf32> to vector<32x128xf32>
    %177 = arith.addf %174, %176 : vector<32x128xf32>
    %cst_62 = arith.constant 0.000000e+00 : f32
    %178 = vector.broadcast %cst_62 : f32 to vector<1x128xf32>
    %179 = vector.extract_strided_slice %177 {offsets = [1, 0], sizes = [31, 128], strides = [1, 1]} : vector<32x128xf32> to vector<31x128xf32>
    %180 = tpu.concatenate %179, %178 in 0 : vector<31x128xf32>, vector<1x128xf32> -> vector<32x128xf32>
    %cst_63 = arith.constant 0.000000e+00 : f32
    %181 = vector.broadcast %cst_63 : f32 to vector<32x128xf32>
    %182 = vector.shape_cast %43 : vector<32x1xi1> to vector<32x1xi1>
    %183 = vector.broadcast %182 : vector<32x1xi1> to vector<32x128xi1>
    %184 = arith.select %183, %180, %181 : vector<32x128xi1>, vector<32x128xf32>
    %185 = tpu.concatenate %177, %184 in 1 : vector<32x128xf32>, vector<32x128xf32> -> vector<32x256xf32>
    %186 = arith.truncf %185 : vector<32x256xf32> to vector<32x256xbf16>
    %c0_64 = arith.constant 0 : index
    %c0_65 = arith.constant 0 : index
    %187 = vector.load %arg10[%c0_64, %c0_65] : memref<256x128xbf16, #tpu.memory_space<vmem>>, vector<256x128xbf16>
    %cst_66 = arith.constant dense<0.000000e+00> : vector<32x128xf32>
    %188 = tpu.matmul %186, %187, %cst_66 {dimension_numbers = #tpu.dot_dimension_numbers<[1], [0], [0], [1], [0, 0, 1, 1], [], []>} : vector<32x256xbf16>, vector<256x128xbf16>, vector<32x128xf32> -> vector<32x128xf32>
    %c0_67 = arith.constant 0 : index
    %c0_68 = arith.constant 0 : index
    %189 = vector.load %arg11[%c0_67, %c0_68] : memref<1x128xf32, #tpu.memory_space<vmem>>, vector<1x128xf32>
    %190 = vector.broadcast %189 : vector<1x128xf32> to vector<32x128xf32>
    %191 = arith.addf %188, %190 : vector<32x128xf32>
    %192 = arith.negf %191 : vector<32x128xf32>
    %193 = math.exp %192 : vector<32x128xf32>
    %cst_69 = arith.constant 1.000000e+00 : f32
    %194 = vector.broadcast %cst_69 : f32 to vector<32x128xf32>
    %195 = arith.addf %194, %193 : vector<32x128xf32>
    %196 = arith.divf %194, %195 : vector<32x128xf32>
    %197 = arith.mulf %191, %196 : vector<32x128xf32>
    %198 = vector.extract_strided_slice %197 {offsets = [0, 0], sizes = [32, 64], strides = [1, 1]} : vector<32x128xf32> to vector<32x64xf32>
    %199 = vector.extract_strided_slice %197 {offsets = [0, 64], sizes = [32, 64], strides = [1, 1]} : vector<32x128xf32> to vector<32x64xf32>
    %200 = tpu.concatenate %198, %94 in 1 : vector<32x64xf32>, vector<32x64xf32> -> vector<32x128xf32>
    %201 = tpu.concatenate %199, %97 in 1 : vector<32x64xf32>, vector<32x64xf32> -> vector<32x128xf32>
    %cst_70 = arith.constant 0.000000e+00 : f32
    %202 = vector.broadcast %cst_70 : f32 to vector<1x64xf32>
    %203 = vector.extract_strided_slice %198 {offsets = [1, 0], sizes = [31, 64], strides = [1, 1]} : vector<32x64xf32> to vector<31x64xf32>
    %204 = tpu.concatenate %203, %202 in 0 : vector<31x64xf32>, vector<1x64xf32> -> vector<32x64xf32>
    %cst_71 = arith.constant 0.000000e+00 : f32
    %205 = vector.broadcast %cst_71 : f32 to vector<32x64xf32>
    %206 = vector.shape_cast %43 : vector<32x1xi1> to vector<32x1xi1>
    %207 = vector.broadcast %206 : vector<32x1xi1> to vector<32x64xi1>
    %208 = arith.select %207, %204, %205 : vector<32x64xi1>, vector<32x64xf32>
    %209 = tpu.concatenate %208, %104 in 1 : vector<32x64xf32>, vector<32x64xf32> -> vector<32x128xf32>
    %210 = tpu.concatenate %200, %201 in 0 : vector<32x128xf32>, vector<32x128xf32> -> vector<64x128xf32>
    %211 = arith.truncf %210 : vector<64x128xf32> to vector<64x128xbf16>
    %c0_72 = arith.constant 0 : index
    %c0_73 = arith.constant 0 : index
    %212 = vector.load %arg12[%c0_72, %c0_73] : memref<128x32xbf16, #tpu.memory_space<vmem>>, vector<128x32xbf16>
    %cst_74 = arith.constant dense<0.000000e+00> : vector<64x32xf32>
    %213 = tpu.matmul %211, %212, %cst_74 {dimension_numbers = #tpu.dot_dimension_numbers<[1], [0], [0], [1], [0, 0, 1, 1], [], []>} : vector<64x128xbf16>, vector<128x32xbf16>, vector<64x32xf32> -> vector<64x32xf32>
    %c0_75 = arith.constant 0 : index
    %c0_76 = arith.constant 0 : index
    %214 = vector.load %arg14[%c0_75, %c0_76] : memref<1x32xf32, #tpu.memory_space<vmem>>, vector<1x32xf32>
    %215 = vector.broadcast %214 : vector<1x32xf32> to vector<64x32xf32>
    %216 = arith.addf %213, %215 : vector<64x32xf32>
    %217 = arith.negf %216 : vector<64x32xf32>
    %218 = math.exp %217 : vector<64x32xf32>
    %cst_77 = arith.constant 1.000000e+00 : f32
    %219 = vector.broadcast %cst_77 : f32 to vector<64x32xf32>
    %220 = arith.addf %219, %218 : vector<64x32xf32>
    %221 = arith.divf %219, %220 : vector<64x32xf32>
    %222 = arith.mulf %216, %221 : vector<64x32xf32>
    %223 = tpu.concatenate %201, %200 in 1 : vector<32x128xf32>, vector<32x128xf32> -> vector<32x256xf32>
    %224 = tpu.concatenate %209, %201 in 1 : vector<32x128xf32>, vector<32x128xf32> -> vector<32x256xf32>
    %225 = tpu.concatenate %223, %224 in 0 : vector<32x256xf32>, vector<32x256xf32> -> vector<64x256xf32>
    %226 = arith.truncf %225 : vector<64x256xf32> to vector<64x256xbf16>
    %c0_78 = arith.constant 0 : index
    %c0_79 = arith.constant 0 : index
    %227 = vector.load %arg13[%c0_78, %c0_79] : memref<256x32xbf16, #tpu.memory_space<vmem>>, vector<256x32xbf16>
    %cst_80 = arith.constant dense<0.000000e+00> : vector<64x32xf32>
    %228 = tpu.matmul %226, %227, %cst_80 {dimension_numbers = #tpu.dot_dimension_numbers<[1], [0], [0], [1], [0, 0, 1, 1], [], []>} : vector<64x256xbf16>, vector<256x32xbf16>, vector<64x32xf32> -> vector<64x32xf32>
    %c0_81 = arith.constant 0 : index
    %c0_82 = arith.constant 0 : index
    %229 = vector.load %arg14[%c0_81, %c0_82] : memref<1x32xf32, #tpu.memory_space<vmem>>, vector<1x32xf32>
    %230 = vector.broadcast %229 : vector<1x32xf32> to vector<64x32xf32>
    %231 = arith.addf %228, %230 : vector<64x32xf32>
    %232 = arith.negf %231 : vector<64x32xf32>
    %233 = math.exp %232 : vector<64x32xf32>
    %cst_83 = arith.constant 1.000000e+00 : f32
    %234 = vector.broadcast %cst_83 : f32 to vector<64x32xf32>
    %235 = arith.addf %234, %233 : vector<64x32xf32>
    %236 = arith.divf %234, %235 : vector<64x32xf32>
    %237 = arith.mulf %231, %236 : vector<64x32xf32>
    %238 = vector.extract_strided_slice %222 {offsets = [0, 0], sizes = [32, 32], strides = [1, 1]} : vector<64x32xf32> to vector<32x32xf32>
    %c0_84 = arith.constant 0 : index
    %c0_85 = arith.constant 0 : index
    %c0_86 = arith.constant 0 : index
    %239 = vector.load %arg1[%c0_84, %c0_85, %c0_86] : memref<4x32x32xf32, #tpu.memory_space<vmem>>, vector<1x32x32xf32>
    %240 = vector.shape_cast %239 : vector<1x32x32xf32> to vector<32x32xf32>
    %241 = tpu.concatenate %238, %240 in 1 : vector<32x32xf32>, vector<32x32xf32> -> vector<32x64xf32>
    %242 = vector.extract_strided_slice %237 {offsets = [0, 0], sizes = [32, 32], strides = [1, 1]} : vector<64x32xf32> to vector<32x32xf32>
    %c1_87 = arith.constant 1 : index
    %c0_88 = arith.constant 0 : index
    %c0_89 = arith.constant 0 : index
    %243 = vector.load %arg1[%c1_87, %c0_88, %c0_89] : memref<4x32x32xf32, #tpu.memory_space<vmem>>, vector<1x32x32xf32>
    %244 = vector.shape_cast %243 : vector<1x32x32xf32> to vector<32x32xf32>
    %245 = tpu.concatenate %242, %244 in 1 : vector<32x32xf32>, vector<32x32xf32> -> vector<32x64xf32>
    %246 = vector.extract_strided_slice %222 {offsets = [32, 0], sizes = [32, 32], strides = [1, 1]} : vector<64x32xf32> to vector<32x32xf32>
    %c2_90 = arith.constant 2 : index
    %c0_91 = arith.constant 0 : index
    %c0_92 = arith.constant 0 : index
    %247 = vector.load %arg1[%c2_90, %c0_91, %c0_92] : memref<4x32x32xf32, #tpu.memory_space<vmem>>, vector<1x32x32xf32>
    %248 = vector.shape_cast %247 : vector<1x32x32xf32> to vector<32x32xf32>
    %249 = tpu.concatenate %246, %248 in 1 : vector<32x32xf32>, vector<32x32xf32> -> vector<32x64xf32>
    %250 = vector.extract_strided_slice %237 {offsets = [32, 0], sizes = [32, 32], strides = [1, 1]} : vector<64x32xf32> to vector<32x32xf32>
    %c3_93 = arith.constant 3 : index
    %c0_94 = arith.constant 0 : index
    %c0_95 = arith.constant 0 : index
    %251 = vector.load %arg1[%c3_93, %c0_94, %c0_95] : memref<4x32x32xf32, #tpu.memory_space<vmem>>, vector<1x32x32xf32>
    %252 = vector.shape_cast %251 : vector<1x32x32xf32> to vector<32x32xf32>
    %253 = tpu.concatenate %250, %252 in 1 : vector<32x32xf32>, vector<32x32xf32> -> vector<32x64xf32>
    %254 = tpu.concatenate %241, %245, %249, %253 in 0 : vector<32x64xf32>, vector<32x64xf32>, vector<32x64xf32>, vector<32x64xf32> -> vector<128x64xf32>
    %255 = arith.truncf %254 : vector<128x64xf32> to vector<128x64xbf16>
    %c0_96 = arith.constant 0 : index
    %c0_97 = arith.constant 0 : index
    %256 = vector.load %arg15[%c0_96, %c0_97] : memref<64x32xbf16, #tpu.memory_space<vmem>>, vector<64x32xbf16>
    %cst_98 = arith.constant dense<0.000000e+00> : vector<128x32xf32>
    %257 = tpu.matmul %255, %256, %cst_98 {dimension_numbers = #tpu.dot_dimension_numbers<[1], [0], [0], [1], [0, 0, 1, 1], [], []>} : vector<128x64xbf16>, vector<64x32xbf16>, vector<128x32xf32> -> vector<128x32xf32>
    %c0_99 = arith.constant 0 : index
    %c0_100 = arith.constant 0 : index
    %258 = vector.load %arg16[%c0_99, %c0_100] : memref<1x32xf32, #tpu.memory_space<vmem>>, vector<1x32xf32>
    %259 = vector.broadcast %258 : vector<1x32xf32> to vector<128x32xf32>
    %260 = arith.addf %257, %259 : vector<128x32xf32>
    %261 = vector.extract_strided_slice %260 {offsets = [0, 0], sizes = [32, 32], strides = [1, 1]} : vector<128x32xf32> to vector<32x32xf32>
    %c0_101 = arith.constant 0 : index
    %c0_102 = arith.constant 0 : index
    %262 = vector.load %arg17[%c0_101, %c0_102] : memref<32x128xf32, #tpu.memory_space<vmem>>, vector<32x32xf32>
    tpu.vector_store %arg17[%c0_101, %c0_102], %261 {strides = array<i32>} : memref<32x128xf32, #tpu.memory_space<vmem>>, vector<32x32xf32>,
    %263 = vector.extract_strided_slice %260 {offsets = [32, 0], sizes = [32, 32], strides = [1, 1]} : vector<128x32xf32> to vector<32x32xf32>
    %c0_103 = arith.constant 0 : index
    %c32 = arith.constant 32 : index
    %264 = vector.load %arg17[%c0_103, %c32] : memref<32x128xf32, #tpu.memory_space<vmem>>, vector<32x32xf32>
    tpu.vector_store %arg17[%c0_103, %c32], %263 {strides = array<i32>} : memref<32x128xf32, #tpu.memory_space<vmem>>, vector<32x32xf32>,
    %265 = vector.extract_strided_slice %260 {offsets = [64, 0], sizes = [32, 32], strides = [1, 1]} : vector<128x32xf32> to vector<32x32xf32>
    %c0_104 = arith.constant 0 : index
    %c64 = arith.constant 64 : index
    %266 = vector.load %arg17[%c0_104, %c64] : memref<32x128xf32, #tpu.memory_space<vmem>>, vector<32x32xf32>
    tpu.vector_store %arg17[%c0_104, %c64], %265 {strides = array<i32>} : memref<32x128xf32, #tpu.memory_space<vmem>>, vector<32x32xf32>,
    %267 = vector.extract_strided_slice %260 {offsets = [96, 0], sizes = [32, 32], strides = [1, 1]} : vector<128x32xf32> to vector<32x32xf32>
    %c0_105 = arith.constant 0 : index
    %c96 = arith.constant 96 : index
    %268 = vector.load %arg17[%c0_105, %c96] : memref<32x128xf32, #tpu.memory_space<vmem>>, vector<32x32xf32>
    tpu.vector_store %arg17[%c0_105, %c96], %267 {strides = array<i32>} : memref<32x128xf32, #tpu.memory_space<vmem>>, vector<32x32xf32>,
    return
  }
  func.func @transform_0(%arg0: i32) -> (i32, i32, i32) {
    %c0_i32 = arith.constant 0 : i32
    %c0_i32_0 = arith.constant 0 : i32
    %c0_i32_1 = arith.constant 0 : i32
    return %c0_i32, %arg0, %c0_i32_0 : i32, i32, i32
  }
  func.func @transform_1(%arg0: i32) -> (i32, i32) {
    %c0_i32 = arith.constant 0 : i32
    %c0_i32_0 = arith.constant 0 : i32
    %c0_i32_1 = arith.constant 0 : i32
    return %c0_i32, %c0_i32_0 : i32, i32
  }
  func.func @transform_2(%arg0: i32) -> (i32, i32) {
    %c0_i32 = arith.constant 0 : i32
    %c0_i32_0 = arith.constant 0 : i32
    %c0_i32_1 = arith.constant 0 : i32
    return %c0_i32, %c0_i32_0 : i32, i32
  }
  func.func @transform_3(%arg0: i32) -> (i32, i32) {
    %c0_i32 = arith.constant 0 : i32
    %c0_i32_0 = arith.constant 0 : i32
    %c0_i32_1 = arith.constant 0 : i32
    return %c0_i32, %c0_i32_0 : i32, i32
  }
  func.func @transform_4(%arg0: i32) -> (i32, i32) {
    %c0_i32 = arith.constant 0 : i32
    %c0_i32_0 = arith.constant 0 : i32
    %c0_i32_1 = arith.constant 0 : i32
    return %c0_i32, %c0_i32_0 : i32, i32
  }
  func.func @transform_5(%arg0: i32) -> (i32, i32) {
    %c0_i32 = arith.constant 0 : i32
    %c0_i32_0 = arith.constant 0 : i32
    %c0_i32_1 = arith.constant 0 : i32
    return %c0_i32, %c0_i32_0 : i32, i32
  }
  func.func @transform_6(%arg0: i32) -> (i32, i32) {
    %c0_i32 = arith.constant 0 : i32
    %c0_i32_0 = arith.constant 0 : i32
    %c0_i32_1 = arith.constant 0 : i32
    return %c0_i32, %c0_i32_0 : i32, i32
  }
  func.func @transform_7(%arg0: i32) -> (i32, i32) {
    %c0_i32 = arith.constant 0 : i32
    %c0_i32_0 = arith.constant 0 : i32
    %c0_i32_1 = arith.constant 0 : i32
    return %c0_i32, %c0_i32_0 : i32, i32
  }
  func.func @transform_8(%arg0: i32) -> (i32, i32) {
    %c0_i32 = arith.constant 0 : i32
    %c0_i32_0 = arith.constant 0 : i32
    %c0_i32_1 = arith.constant 0 : i32
    return %c0_i32, %c0_i32_0 : i32, i32
  }
  func.func @transform_9(%arg0: i32) -> (i32, i32) {
    %c0_i32 = arith.constant 0 : i32
    %c0_i32_0 = arith.constant 0 : i32
    %c0_i32_1 = arith.constant 0 : i32
    return %c0_i32, %c0_i32_0 : i32, i32
  }
  func.func @transform_10(%arg0: i32) -> (i32, i32) {
    %c0_i32 = arith.constant 0 : i32
    %c0_i32_0 = arith.constant 0 : i32
    %c0_i32_1 = arith.constant 0 : i32
    return %c0_i32, %c0_i32_0 : i32, i32
  }
  func.func @transform_11(%arg0: i32) -> (i32, i32) {
    %c0_i32 = arith.constant 0 : i32
    %c0_i32_0 = arith.constant 0 : i32
    %c0_i32_1 = arith.constant 0 : i32
    return %c0_i32, %c0_i32_0 : i32, i32
  }
  func.func @transform_12(%arg0: i32) -> (i32, i32) {
    %c0_i32 = arith.constant 0 : i32
    %c0_i32_0 = arith.constant 0 : i32
    %c0_i32_1 = arith.constant 0 : i32
    return %c0_i32, %c0_i32_0 : i32, i32
  }
  func.func @transform_13(%arg0: i32) -> (i32, i32) {
    %c0_i32 = arith.constant 0 : i32
    %c0_i32_0 = arith.constant 0 : i32
    %c0_i32_1 = arith.constant 0 : i32
    return %c0_i32, %c0_i32_0 : i32, i32
  }
  func.func @transform_14(%arg0: i32) -> (i32, i32) {
    %c0_i32 = arith.constant 0 : i32
    %c0_i32_0 = arith.constant 0 : i32
    %c0_i32_1 = arith.constant 0 : i32
    return %c0_i32, %c0_i32_0 : i32, i32
  }
  func.func @transform_15(%arg0: i32) -> (i32, i32) {
    %c0_i32 = arith.constant 0 : i32
    %c0_i32_0 = arith.constant 0 : i32
    %c0_i32_1 = arith.constant 0 : i32
    return %c0_i32, %c0_i32_0 : i32, i32
  }
  func.func @transform_16(%arg0: i32) -> (i32, i32) {
    %c0_i32 = arith.constant 0 : i32
    %c0_i32_0 = arith.constant 0 : i32
    return %arg0, %c0_i32 : i32, i32
  }
}

</mosaic_0001>

<bundles_post_ra>
// kernel: tpu_custom_call.1
= control target key start
LH: loop header
LB: loop body
LE: loop exit
PB: predicated region body
PF: predicated region fallthrough
CT: control target
= control target key end

     0   :  { %s6072_s0 = inlined_call_operand.vmem [shape: f32[4,64,32], index: 0, kind: input, shape index: {}]   ;;  %s6073_s1 = inlined_call_operand.vmem [shape: bf16[96,64], index: 1, kind: input, shape index: {}]   ;;  %s6074_s2 = inlined_call_operand.vmem [shape: f32[1,64], index: 2, kind: input, shape index: {}]   ;;  %s6075_s3 = inlined_call_operand.vmem [shape: bf16[192,128], index: 3, kind: input, shape index: {}]   ;;  %s6076_s4 = inlined_call_operand.vmem [shape: f32[1,128], index: 4, kind: input, shape index: {}]   ;;  %s6077_s5 = inlined_call_operand.vmem [shape: bf16[384,128], index: 5, kind: input, shape index: {}]   ;;  %s6078_s6 = inlined_call_operand.hbm [shape: f32[1,128], index: 6, kind: input, shape index: {}]   ;;  %s6079_s7 = inlined_call_operand.vmem [shape: bf16[384,128], index: 7, kind: input, shape index: {}]   ;;  %s6080_s8 = inlined_call_operand.hbm [shape: f32[1,128], index: 8, kind: input, shape index: {}]   ;;  %s6081_s9 = inlined_call_operand.vmem [shape: bf16[256,128], index: 9, kind: input, shape index: {}]   ;;  %s6082_s10 = inlined_call_operand.hbm [shape: f32[1,128], index: 10, kind: input, shape index: {}]   ;;  %s6083_s11 = inlined_call_operand.vmem [shape: bf16[128,32], index: 11, kind: input, shape index: {}]   ;;  %s6084_s12 = inlined_call_operand.vmem [shape: bf16[256,32], index: 12, kind: input, shape index: {}]   ;;  %s6085_s13 = inlined_call_operand.hbm [shape: f32[1,32], index: 13, kind: input, shape index: {}]   ;;  %s6086_s14 = inlined_call_operand.vmem [shape: bf16[64,32], index: 14, kind: input, shape index: {}]   ;;  %s6087_s15 = inlined_call_operand.vmem [shape: f32[1,32], index: 15, kind: input, shape index: {}]   ;;  %s6088_s16 = inlined_call_operand.hbm [shape: f32[64,128], index: 16, kind: output, shape index: {}]  }
   0x1   :  { %6117 = sst [smem:[#allocation21_spill]] %s6072_s0 }
   0x2   :  { %6118 = sst [smem:[#allocation22_spill]] %s6073_s1 }
   0x3   :  { %6119 = sst [smem:[#allocation23_spill]] %s6074_s2 }
   0x4   :  { %6120 = sst [smem:[#allocation24_spill]] %s6088_s16 }
   0x5   :  { %21 = vsyncpa [#allocation4], 0 }
   0x6   :  { %22 = vsyncpa [#allocation7], 0 }
   0x7   :  { %23 = vsyncpa [#allocation10], 0 }
   0x8   :  { %24 = vsyncpa [#allocation5], 0 }
   0x9   :  { %26 = vsyncpa [#allocation5 + $0x1], 0  ;;  %s4805_s21 = smov 0   ;;  %s4807_s22 = smov 0  }
   0xa   :  { %s4809_s23 = smov 0   ;;  %s4811_s24 = smov 0  }
   0xb LB: > { %6121 = sst [smem:[#allocation16_spill]] %s4694_s21  ;;  %s4826_s25 = sadd.s32 4294967295, %s4706_s24   ;;  %s4706_s24 = sphi %s4811_s24, %s6187_s24   ;;  %s4702_s23 = sphi %s4809_s23, %s6191_s23   ;;  %s4698_s22 = sphi %s4807_s22, %s6190_s22   ;;  %s4694_s21 = sphi %s4805_s21, %s6189_s21  }
   0xc   : > { %s3472_s26 = sadd.s32 4294967294, %s4706_s24   ;;  %s4830_s27 = sadd.s32 1, %s4706_s24  }
   0xd   : > { %6122 = sst [smem:[#allocation17_spill]] %s4830_s27  ;;  %s39_s28 = sadd.s32 1, %s4702_s23 }
   0xe   : > { %s36_s29 = ssub.s32 %s4706_s24, %s4830_s27  ;;  %p46_p0 = scmp.ne.s32.totalorder %s4702_s23, %s4698_s22 }
   0xf   : > { %p37_p1 = scmp.eq.s32.totalorder %s36_s29, 0  ;;  %p47_p2 = scmp.eq.s32.totalorder %s4706_s24, 0 }
  0x10   : > { %p391_p3 = scmp.eq.s32.totalorder %s4826_s25, 1  ;;  %p396_p4 = scmp.ne.s32.totalorder %s4698_s22, %s4694_s21 }
  0x11   : > { %s4842_s30 = scalar_select %p37_p1, %s4702_s23, %s39_s28  }
  0x12   : > { %p4844_p5 = por %p47_p2, %p46_p0  ;;  %p4848_p6 = por %p391_p3, %p46_p0 }
  0x13   : > { %6123 = sst [smem:[#allocation18_spill]] %s4842_s30  ;;  %p397_p7 = scmp.eq.s32.totalorder %s3472_s26, 1 }
  0x14   : > { %s6125_s17 = scalar_select %p4848_p6, 1, 0 }
  0x15   : > { %p3473_p8 = scmp.ge.s32.totalorder %s4706_s24, 1  ;;  %p404_p9 = scmp.lt.s32.totalorder %s4706_s24, 3 }
  0x16   : > { %6126 = sst [smem:[#allocation19_spill]] %s6125_s17  ;;  %p4854_p10 = por %p397_p7, %p396_p4 }
  0x17   : > { %p6094_p11 = scmp.eq.s32.totalorder %s4826_s25, 0  ;;  %p4859_p12 = pnand %p3473_p8, %p404_p9 }
  0x18   : > { %s6127_s18 = scalar_select %p4854_p10, 1, 0 }
  0x19   : > { %s6129_s19 = scalar_select %p4859_p12, 1, 0 }
  0x1a   : > { %6128 = sst [smem:[#allocation20_spill]] %s6127_s18  ;;  %s4708_s20 = smov [#allocation6]  }
  0x1b   : > { %s446_s28 = sshll.u32 %s4708_s20, 4  ;;  %p4039_p13 = pneg %p4859_p12  ;;  %s447_s28 = int_to_ptr.vmem [resolvable:$true] %s446_s28 }
  0x1c   : > { %s4709_s29 = smov [#allocation3]   ;;  %s4710_s27 = smov [#allocation8]  }
  0x1d   : > { %s432_s30 = sshll.u32 %s4709_s29, 4  ;;  %p4867_p0 = pnand %p6094_p11, %p4039_p13  ;;  %s433_s30 = int_to_ptr.vmem [resolvable:$true] %s432_s30 }
  0x1e   : > { %s460_s18 = sshll.u32 %s4710_s27, 4  ;;  %s4541_s20 = scalar_lea.vmem %s447_s28, 16  ;;  %s4871_s18 = int_to_ptr.vmem [resolvable:$true] %s460_s18 }
  0x1f   : > { %p4532_p1 = pneg %p4867_p0  ;;  %p4542_p2 = scmp.ne.s32.totalorder %s447_s28, %s4541_s20 }
  0x20   : > { %s4548_s29 = scalar_lea.vmem %s447_s28, 32  ;;  %p4549_p7 = scmp.lt.s32.totalorder %s447_s28, %s447_s28 }
  0x21   : > { %p4544_p3 = pnand %p4542_p2, %p4532_p1  ;;  %p4550_p8 = scmp.lt.s32.totalorder %s4548_s29, %s4541_s20 }
  0x23   : > { %p4545_p4 = pneg %p4544_p3  ;;  %p4551_p9 = por %p4550_p8, %p4549_p7 }
  0x25   : > { %p4552_p13 = pnand %p4551_p9, %p4545_p4 }
  0x27   : > { %4555 = shalt.err (!%p4552_p13)
}
  0x28   : > { %4045 = dma.hbm_to_vmem [thread:$0]  (!%p4867_p0), %s6080_s8, 16, %s447_s28, [#allocation7]  }
  0x29   : > { %s4567_s16 = scalar_lea.vmem %s433_s30, 16  ;;  %s4574_s17 = scalar_lea.vmem %s433_s30, 32 }
  0x2a   : > { %p4568_p11 = scmp.ne.s32.totalorder %s433_s30, %s4567_s16  ;;  %p4575_p3 = scmp.lt.s32.totalorder %s433_s30, %s433_s30 }
  0x2b   : > { %p4576_p6 = scmp.lt.s32.totalorder %s4574_s17, %s4567_s16 }
  0x2c   : > { %p4570_p10 = pnand %p4568_p11, %p4532_p1 }
  0x2d   : > { %p4577_p12 = por %p4576_p6, %p4575_p3 }
  0x2e   : > { %p4571_p2 = pneg %p4570_p10 }
  0x30   : > { %p4578_p7 = pnand %p4577_p12, %p4571_p2 }
  0x32   : > { %4581 = shalt.err (!%p4578_p7)
}
  0x33   : > { %4042 = dma.hbm_to_vmem [thread:$0]  (!%p4867_p0), %s6078_s6, 16, %s433_s30, [#allocation4]  }
  0x34   : > { %s4593_s21 = scalar_lea.vmem %s4871_s18, 16  ;;  %s4600_s16 = scalar_lea.vmem %s4871_s18, 32 }
  0x35   : > { %p4594_p11 = scmp.ne.s32.totalorder %s4871_s18, %s4593_s21  ;;  %p4601_p6 = scmp.lt.s32.totalorder %s4871_s18, %s4871_s18 }
  0x36   : > { %p4602_p12 = scmp.lt.s32.totalorder %s4600_s16, %s4593_s21 }
  0x37   : > { %p4596_p10 = pnand %p4594_p11, %p4532_p1 }
  0x38   : > { %p4603_p8 = por %p4602_p12, %p4601_p6 }
  0x39   : > { %p4597_p4 = pneg %p4596_p10 }
  0x3b   : > { %p4604_p9 = pnand %p4603_p8, %p4597_p4 }
  0x3d   : > { %4607 = shalt.err (!%p4604_p9)
}
  0x3e   : > { %4048 = dma.hbm_to_vmem [thread:$0]  (!%p4867_p0), %s6082_s10, 16, %s4871_s18, [#allocation7]  }
  0x3f   : > { %s4711_s30 = smov [#allocation9]  }
  0x40   : > { %s477_s27 = sshll.u32 %s4711_s30, 4  ;;  %s478_s27 = int_to_ptr.vmem [resolvable:$true] %s477_s27 }
  0x41   : > { %s4619_s20 = scalar_lea.vmem %s478_s27, 16  ;;  %s4626_s29 = scalar_lea.vmem %s478_s27, 32 }
  0x42   : > { %p4620_p13 = scmp.ne.s32.totalorder %s478_s27, %s4619_s20  ;;  %p4627_p7 = scmp.lt.s32.totalorder %s478_s27, %s478_s27 }
  0x43   : > { %p4628_p11 = scmp.lt.s32.totalorder %s4626_s29, %s4619_s20 }
  0x44   : > { %p4622_p2 = pnand %p4620_p13, %p4532_p1 }
  0x45   : > { %p4629_p10 = por %p4628_p11, %p4627_p7 }
  0x46   : > { %p4623_p3 = pneg %p4622_p2 }
  0x48   : > { %p4630_p4 = pnand %p4629_p10, %p4623_p3 }
  0x4a   : > { %4633 = shalt.err (!%p4630_p4)
}
  0x4b   : > { %4051 = dma.hbm_to_vmem [thread:$0]  (!%p4867_p0), %s6085_s13, 16, %s478_s27, [#allocation10]  }
  0x4c   : > { %p3478_p6 = scmp.ge.s32.totalorder %s4706_s24, 2 }
  0x4e   : > { %490 = sbr.rel (%p3478_p6) target bundleno = 101 (0x65), region = 76 }
  0x53   : > { %493 = sbr.rel (!%p4844_p5) target bundleno = 101 (0x65), region = 80  ;;  %s495_s18 = sand.u32 (%p4844_p5), 1, %s4702_s23  }
  0x54   : > { %s3721_s17 = sshll.u32 (%p4844_p5), %s4706_s24, 5  ;;  %s3479_s28 = sshll.u32 (%p4844_p5), %s495_s18, 7 }
  0x55   : > { %s6131_s26 = sld [smem:[#allocation21_spill]] (%p4844_p5)  ;;  %s497_s0 = scalar_lea.vmem (%p4844_p5), [#allocation2], %s3479_s28 }
  0x5b   : > { %s4923_s29 = scalar_lea.vmem %s6131_s26, %s3721_s17 }
  0x5c   : > { %v559_v0 = vld [vmem:[%s4923_s29] sm:$0xff]  ;;  %v561_v1 = vld [vmem:[%s4923_s29 + $0x8] sm:$0xff]  ;;  %v563_v2 = vld [vmem:[%s4923_s29 + $0x10] sm:$0xff] }
  0x5d   : > { %560 = vst [vmem:[%s497_s0] sm:$0xff] %v559_v0  ;;  %562 = vst [vmem:[%s497_s0 + $0x8] sm:$0xff] %v561_v1  ;;  %v565_v3 = vld [vmem:[%s4923_s29 + $0x18] sm:$0xff]  ;;  %v567_v4 = vld [vmem:[%s4923_s29 + $0x40] sm:$0xff] }
  0x5e   : > { %564 = vst [vmem:[%s497_s0 + $0x10] sm:$0xff] %v563_v2  ;;  %v569_v5 = vld [vmem:[%s4923_s29 + $0x48] sm:$0xff]  ;;  %566 = vst [vmem:[%s497_s0 + $0x18] sm:$0xff] %v565_v3  ;;  %v571_v6 = vld [vmem:[%s4923_s29 + $0x50] sm:$0xff] }
  0x5f   : > { %568 = vst [vmem:[%s497_s0 + $0x20] sm:$0xff] %v567_v4  ;;  %570 = vst [vmem:[%s497_s0 + $0x28] sm:$0xff] %v569_v5  ;;  %v573_v7 = vld [vmem:[%s4923_s29 + $0x58] sm:$0xff]  ;;  %v575_v8 = vld [vmem:[%s4923_s29 + $0x80] sm:$0xff] }
  0x60   : > { %572 = vst [vmem:[%s497_s0 + $0x30] sm:$0xff] %v571_v6  ;;  %574 = vst [vmem:[%s497_s0 + $0x38] sm:$0xff] %v573_v7  ;;  %v577_v9 = vld [vmem:[%s4923_s29 + $0x88] sm:$0xff]  ;;  %v579_v10 = vld [vmem:[%s4923_s29 + $0x90] sm:$0xff] }
  0x61   : > { %576 = vst [vmem:[%s497_s0 + $0x40] sm:$0xff] %v575_v8  ;;  %v581_v11 = vld [vmem:[%s4923_s29 + $0x98] sm:$0xff]  ;;  %578 = vst [vmem:[%s497_s0 + $0x48] sm:$0xff] %v577_v9  ;;  %v583_v12 = vld [vmem:[%s4923_s29 + $0xc0] sm:$0xff] }
  0x62   : > { %580 = vst [vmem:[%s497_s0 + $0x50] sm:$0xff] %v579_v10  ;;  %582 = vst [vmem:[%s497_s0 + $0x58] sm:$0xff] %v581_v11  ;;  %v585_v13 = vld [vmem:[%s4923_s29 + $0xc8] sm:$0xff]  ;;  %v587_v14 = vld [vmem:[%s4923_s29 + $0xd0] sm:$0xff] }
  0x63   : > { %584 = vst [vmem:[%s497_s0 + $0x60] sm:$0xff] %v583_v12  ;;  %586 = vst [vmem:[%s497_s0 + $0x68] sm:$0xff] %v585_v13  ;;  %v589_v15 = vld [vmem:[%s4923_s29 + $0xd8] sm:$0xff] }
  0x64   : > { %588 = vst [vmem:[%s497_s0 + $0x70] sm:$0xff] %v587_v14  ;;  %590 = vst [vmem:[%s497_s0 + $0x78] sm:$0xff] %v589_v15 }
  0x65 PF: > { %p6132_p5 = scmp.ne.s32.totalorder %s6129_s19, 0 }
  0x66   : > { %s4944_s27 = sand.u32 (!%p6132_p5), 1, %s4698_s22   ;;  %p6133_p0 = scmp.eq.s32.totalorder (!%p6132_p5), %s4826_s25, 0 }
  0x67   : > { %599 = sbr.rel (%p6132_p5) target bundleno = 2291 (0x8f3), region = 118  ;;  %s3483_s21 = sshll.u32 (!%p6132_p5), %s4944_s27, 7 }
  0x68   : > { %s4947_s16 = scalar_lea.vmem (!%p6132_p5), [#allocation2], %s3483_s21 }
  0x6c   : > { %4677 = dma.done.wait (%p6133_p0), [#allocation4], 16   ;;  %p6134_p1 = pmov %p6133_p0 }
  0x6d   : > { %p6135_p12 = pmov %p6133_p0 }
  0x6e   : > { %4679 = vsyncadd (%p6134_p1), [#allocation4], 4294967280 }
  0x6f   : > { %4681 = dma.done.wait (%p6135_p12), [#allocation7], 32   ;;  %p6136_p8 = pmov %p6133_p0 }
  0x70   : > { %p6137_p9 = pmov %p6133_p0 }
  0x71   : > { %4683 = vsyncadd (%p6136_p8), [#allocation7], 4294967264 }
  0x72   : > { %4685 = dma.done.wait (%p6137_p9), [#allocation10], 16   ;;  %p6138_p13 = pmov %p6133_p0 }
  0x73   : > { %v670_v16 = vlaneseq  ;;  %v4971_v21 = vld [vmem:[%s4947_s16 + $0x20] sm:$0xff]  ;;  %v4974_v22 = vld [vmem:[%s4947_s16 + $0x28] sm:$0xff]  ;;  %v4985_v26 = vld [vmem:[%s4947_s16 + $0x30] sm:$0xff]  ;;  %vm945_vm0 = vcmask 1046528   ;;  %s4712_s19 = smov 64   ;;  %vm810_vm1 = vcmask 1040384  }
  0x74   : > { %4687 = vsyncadd (%p6138_p13), [#allocation10], 4294967280  ;;  %v4977_v23 = vld [vmem:[%s4947_s16] sm:$0xff]  ;;  %v4118_v24 = vpack.i.bf16 %v4974_v22, %v4971_v21  ;;  %v4982_v25 = vld [vmem:[%s4947_s16 + $0x8] sm:$0xff]  ;;  %s6110_s18 = smov 32   ;;  %s6139_s1 = sld [smem:[#allocation22_spill]] }
  0x75   : > { %v4961_v17 = vshrl.u32 %v670_v16, 7  ;;  %v4988_v27 = vld [vmem:[%s4947_s16 + $0x38] sm:$0xff]  ;;  %v4108_v28 = vpack.i.bf16 %v4982_v25, %v4977_v23  ;;  %v4993_v29 = vld [vmem:[%s4947_s16 + $0x10] sm:$0xff]  ;;  %v947_v34 = vrot.slane %v4982_v25, 1  ;;  %v5014_v39 = vld [vmem:[%s4947_s16 + $0x60] sm:$0xff]  ;;  %v946_v60 = vrot.slane %v4977_v23, 1 }
  0x76   : > { %v4996_v30 = vld [vmem:[%s4947_s16 + $0x18] sm:$0xff]  ;;  %4119 = vrot.lane.b32.xlu1 %v4118_v24, %s4712_s19  ;;  %v4123_v31 = vpack.i.bf16 %v4988_v27, %v4985_v26  ;;  %v949_v36 = vrot.slane %v4993_v29, 1  ;;  %v3499_v37 = vld [vmem:[%s4947_s16 + $0x70] sm:$0xff]  ;;  %v3498_v43 = vld [vmem:[%s4947_s16 + $0x68] sm:$0xff]  ;;  %v811_v44 = vrot.slane %v5014_v39, 7  ;;  %vm6116_vm5 = vcmask 261120  }
  0x77   : > { %v4964_v18 = vadd.s32 24, %v4961_v17  ;;  %v4968_v20 = vadd.s32 8, %v4961_v17  ;;  %4109 = vrot.lane.b32.xlu0 %v4108_v28, %s6110_s18  ;;  %v4113_v35 = vpack.i.bf16 %v4996_v30, %v4993_v29  ;;  %v3500_v38 = vld [vmem:[%s4947_s16 + $0x78] sm:$0xff]  ;;  %v951_v40 = vrot.slane %v4996_v30, 1  ;;  %v5020_v45 = vld [vmem:[%s4947_s16 + $0x50] sm:$0xff]  ;;  %v5030_v49 = vld [vmem:[%s4947_s16 + $0x40] sm:$0xff] }
  0x78   : > { %v816_v41 = vrot.slane %v3500_v38, 7  ;;  %v814_v42 = vrot.slane %v3499_v37, 7  ;;  %v5023_v46 = vld [vmem:[%s4947_s16 + $0x58] sm:$0xff]  ;;  %v812_v47 = vrot.slane %v3498_v43, 7  ;;  %v5041_v52 = vld [vmem:[%s4947_s16 + $0x48] sm:$0xff]  ;;  %v950_v57 = vsel %vm945_vm0, %v947_v34, %v949_v36  ;;  %s6140_s2 = sld [smem:[#allocation23_spill]] }
  0x79   : > { %v700_v19 = vand.u32 15, %v4964_v18  ;;  %v686_v33 = vand.u32 15, %v4968_v20  ;;  %v957_v55 = vsel %vm945_vm0, %v951_v40, 0.0  ;;  %v4143_v59 = vpack.i.bf16 %v5023_v46, %v5020_v45  ;;  %s3488_s16 = sshll.u32 %s4944_s27, 5  ;;  %s6179_s30 = smov 32  }
  0x7a   : > { %v4228_v48 = vld [vmem:[%s6139_s1 + $0x28] sm:$0xff]   ;;  %4124 = vrot.lane.b32.xlu1 %v4123_v31, %s4712_s19  ;;  %v4229_v51 = vld [vmem:[%s6139_s1 + $0x20] sm:$0xff]   ;;  %v5044_v53 = vsel %vm810_vm1, %v812_v47, %v814_v42  ;;  %v5047_v54 = vsel %vm810_vm1, %v814_v42, %v816_v41  ;;  %v813_v56 = vsel %vm810_vm1, %v811_v44, %v812_v47  ;;  %v4230_v58 = vld [vmem:[%s6139_s1 + $0x18] sm:$0xff]   ;;  %v4138_v61 = vpack.i.bf16 %v5041_v52, %v5030_v49  ;;  %s5992_s28 = scalar_lea.vmem [#allocation11], %s3488_s16  ;;  %s4716_s20 = smov 96  }
  0x7b   : > { %v5003_v32 = vadd.s32 1, %v700_v19  ;;  %v5034_v50 = vadd.s32 1, %v686_v33  ;;  %4114 = vrot.lane.b32.xlu0 %v4113_v35, %s6110_s18  ;;  %3905 = vmatprep.subr.bf16.mxu0 %v4228_v48  ;;  %v4231_v0 = vld [vmem:[%s6139_s1 + $0x10] sm:$0xff]   ;;  %v4232_v1 = vld [vmem:[%s6139_s1 + $0x8] sm:$0xff]   ;;  %v4163_v2 = vpack.i.bf16 %v3500_v38, %v3499_v37  ;;  %v4158_v3 = vpack.i.bf16 %v3498_v43, %v5014_v39  ;;  %v4233_v4 = vld [vmem:[%s6139_s1] sm:$0xff]   ;;  %s3722_s26 = sshll.u32 %s4826_s25, 9 }
  0x7c   : > { %3906 = vmatpush3.bf16.msra.mxu0 %v4228_v48  ;;  %v952_v5 = vsel %vm945_vm0, %v949_v36, %v951_v40  ;;  %v948_v6 = vsel %vm945_vm0, %v946_v60, %v947_v34  ;;  %v5093_v9 = vadd.s32 16, %v4961_v17  ;;  %v679_v10 = vand.u32 15, %v4961_v17  ;;  %s3363_s29 = sshll.u32 %s5992_s28, 4  ;;  %s6181_s16 = sld [smem:[#allocation24_spill]]  ;;  %s6028_s29 = int_to_ptr.vmem [resolvable:$true] %s3363_s29 }
  0x7d   : > { %vm766_vm2 = vcmp.lt.s32.totalorder %v5003_v32, 16  ;;  %vm764_vm3 = vcmp.lt.s32.totalorder %v5034_v50, 16  ;;  %3907 = vmatprep.subr.bf16.mxu0 %v4229_v51  ;;  %v822_v14 = vsel %vm810_vm1, 0.0, %v811_v44  ;;  %vm872_vm7 = vcmask 523264   ;;  %s4717_s25 = smov [#allocation11]  }
  0x7e   : > { %4134 = vrot.lane.b32.xlu1 %v4123_v31, %s6110_s18  ;;  %v969_v62 = vsel %vm766_vm2, %v957_v55, 0.0  ;;  %v967_v63 = vsel %vm764_vm3, %v950_v57, 0.0  ;;  %v693_v11 = vand.u32 15, %v5093_v9  ;;  %v5099_v12 = vadd.s32 4294967295, %v679_v10 }
  0x7f   : > { %4129 = vrot.lane.b32.xlu0 %v4118_v24, %s6110_s18  ;;  %v4183_v7 = vpack.i.bf16 %v969_v62, %v952_v5  ;;  %v4178_v8 = vpack.i.bf16 %v967_v63, %v948_v6  ;;  %vm1069_vm8 = vcmask 785408   ;;  %vm1635_vm9 = vcmask 1041408  }
  0x80   : > { %3908 = vmatpush3.bf16.msra.mxu0 %v4229_v51  ;;  %v5103_v13 = vadd.s32 4294967295, %v693_v11  ;;  %vm743_vm4 = vcmp.ge.s32.totalorder %v5099_v12, 0  ;;  %v725_v17 = vadd.s32 4294967294, %v693_v11  ;;  %vm4715_vm11 = vmmov 1   ;;  %v4295_v12 = vld [vmem:[%s6081_s9 + $0x38] sm:$0xff]  }
  0x81   : > { %3909 = vmatprep.subr.bf16.mxu0 %v4230_v58  ;;  %v831_v31 = vsel %vm743_vm4, %v822_v14, 0.0  ;;  %vm1660_vm13 = vcmask 1045504  }
  0x82   : > { %4144 = vrot.lane.b32.xlu1 %v4143_v59, %s4712_s19  ;;  %vm745_vm6 = vcmp.ge.s32.totalorder %v5103_v13, 0  ;;  %vm729_vm15 = vcmp.ge.s32.totalorder %v725_v17, 0  ;;  %v4277_v17 = vld [vmem:[%s6079_s7 + $0x28] sm:$0xff]   ;;  %v4302_v13 = vld [vmem:[%s6081_s9 + $0x58] sm:$0xff]   ;;  %s6026_s17 = scalar_lea.hbm %s6181_s16, %s3722_s26 }
  0x83   : > { %4139 = vrot.lane.b32.xlu0 %v4138_v61, %s4712_s19  ;;  %v833_v37 = vsel %vm745_vm6, %v5044_v53, 0.0 }
  0x84   : > { %3910 = vmatpush3.bf16.msra.mxu0 %v4230_v58 }
  0x85   : > { %3911 = vmatprep.subr.bf16.mxu0 %v4231_v0 }
  0x86   : > { %4154 = vrot.lane.b32.xlu1 %v4143_v59, %s6110_s18 }
  0x87   : > { %4149 = vrot.lane.b32.xlu0 %v4138_v61, %s6110_s18 }
  0x88   : > { %3912 = vmatpush3.bf16.msra.mxu0 %v4231_v0 }
  0x89   : > { %3913 = vmatprep.subr.bf16.mxu0 %v4232_v1 }
  0x8a   : > { %4164 = vrot.lane.b32.xlu1 %v4163_v2, %s4712_s19 }
  0x8b   : > { %4159 = vrot.lane.b32.xlu0 %v4158_v3, %s4712_s19 }
  0x8c   : > { %3914 = vmatpush3.bf16.msra.mxu0 %v4232_v1 }
  0x8d   : > { %3915 = vmatprep.subr.bf16.mxu0 %v4233_v4 }
  0x8e   : > { %4174 = vrot.lane.b32.xlu1 %v4163_v2, %s6110_s18 }
  0x8f   : > { %4169 = vrot.lane.b32.xlu0 %v4158_v3, %s6110_s18 }
  0x90   : > { %3916 = vmatpush3.bf16.msra.mxu0 %v4233_v4 }
  0x92   : > { %4184 = vrot.lane.b32.xlu1 %v4183_v7, %s4712_s19 }
  0x93   : > { %4179 = vrot.lane.b32.xlu0 %v4178_v8, %s4712_s19 }
  0xe8   : > { %v4120_v15 = vpop.permute.xlu1 %4119 }
  0xe9   : > { %v4122_v16 = vunpack.i.h.bf16 %v4120_v15  ;;  %v4121_v24 = vunpack.i.l.bf16 %v4120_v15  ;;  %v5109_v28 = vpop.permute.xlu0 %4109 }
  0xea   : > { %v6114_v34 = vunpack.i.h.bf16 %v5109_v28  ;;  %v6115_v35 = vunpack.i.l.bf16 %v5109_v28 }
  0xec   : > { %v4125_v36 = vpop.permute.xlu1 %4124  ;;  %v868_v38 = vsel %vm6116_vm5, %v831_v31, %v6115_v35  ;;  %v869_v39 = vsel %vm6116_vm5, %v813_v56, %v6114_v34 }
  0xed   : > { %v4127_v40 = vunpack.i.h.bf16 %v4125_v36  ;;  %v4126_v41 = vunpack.i.l.bf16 %v4125_v36  ;;  %v5125_v42 = vpop.permute.xlu0 %4114  ;;  %v873_v43 = vsel %vm872_vm7, %v868_v38, %v4121_v24  ;;  %v874_v44 = vsel %vm872_vm7, %v869_v39, %v4122_v16 }
  0xee   : > { %v4117_v47 = vunpack.i.h.bf16 %v5125_v42  ;;  %v6113_v48 = vunpack.i.l.bf16 %v5125_v42  ;;  %v1006_v51 = vpack.c.bf16 %v874_v44, %v873_v43 }
  0xf0   : > { %v871_v53 = vsel %vm6116_vm5, %v5047_v54, %v4117_v47  ;;  %v870_v55 = vsel %vm6116_vm5, %v833_v37, %v6113_v48  ;;  %3917 = vmatprep.mubr.msk.bf16.mxu0 %vm1069_vm8, %v1006_v51  ;;  %v5139_v56 = vpop.permute.xlu1 %4134 }
  0xf1   : > { %v5141_v57 = vpop.permute.xlu0 %4129  ;;  %v875_v58 = vsel %vm872_vm7, %v870_v55, %v4126_v41  ;;  %v876_v59 = vsel %vm872_vm7, %v871_v53, %v4127_v40  ;;  %v6106_v60 = vunpack.i.h.bf16 %v5139_v56  ;;  %v6107_v61 = vunpack.i.l.bf16 %v5139_v56 }
  0xf2   : > { %v1007_v62 = vpack.c.bf16 %v876_v59, %v875_v58  ;;  %v6109_v54 = vunpack.i.h.bf16 %v5141_v57  ;;  %v6112_v63 = vunpack.i.l.bf16 %v5141_v57 }
  0xf3   : > { %v907_v4 = vsel %vm6116_vm5, %v4993_v29, %v6107_v61  ;;  %v908_v5 = vsel %vm6116_vm5, %v4996_v30, %v6106_v60 }
  0xf4   : > { %3918 = vmatmul.mubr.msk.bf16.vlgmr.msra.gmra.mxu0 %vm1069_vm8, %v1007_v62  ;;  %v4145_v0 = vpop.permute.xlu1 %4144  ;;  %v906_v8 = vsel %vm6116_vm5, %v4982_v25, %v6109_v54  ;;  %v905_v14 = vsel %vm6116_vm5, %v4977_v23, %v6112_v63 }
  0xf5   : > { %v4147_v1 = vunpack.i.h.bf16 %v4145_v0  ;;  %v4146_v2 = vunpack.i.l.bf16 %v4145_v0  ;;  %v4140_v3 = vpop.permute.xlu0 %4139 }
  0xf6   : > { %v4142_v6 = vunpack.i.h.bf16 %v4140_v3  ;;  %v4141_v7 = vunpack.i.l.bf16 %v4140_v3 }
  0xf7   : > { %v911_v15 = vsel %vm872_vm7, %v907_v4, %v4146_v2  ;;  %v912_v29 = vsel %vm872_vm7, %v908_v5, %v4147_v1 }
  0xf8   : > { %v1009_v16 = vpack.c.bf16 %v912_v29, %v911_v15  ;;  %v909_v24 = vsel %vm872_vm7, %v905_v14, %v4141_v7  ;;  %v910_v30 = vsel %vm872_vm7, %v906_v8, %v4142_v6  ;;  %v5170_v31 = vpop.permute.xlu1 %4154 }
  0xf9   : > { %v1008_v36 = vpack.c.bf16 %v910_v30, %v909_v24  ;;  %v5172_v37 = vpop.permute.xlu0 %4149  ;;  %v6104_v25 = vunpack.i.h.bf16 %v5170_v31  ;;  %v6103_v38 = vunpack.i.l.bf16 %v5170_v31 }
  0xfa   : > { %v6108_v23 = vunpack.i.h.bf16 %v5172_v37  ;;  %v6105_v39 = vunpack.i.l.bf16 %v5172_v37 }
  0xfb   : > { %3921 = vmatprep.mubr.msk.bf16.mxu0 %vm1069_vm8, %v1008_v36  ;;  %v940_v51 = vsel %vm6116_vm5, %v4988_v27, %v6104_v25  ;;  %v939_v53 = vsel %vm6116_vm5, %v4985_v26, %v6103_v38 }
  0xfc   : > { %3922 = vmatmul.mubr.msk.bf16.gmra.mxu0 %vm1069_vm8, %v1009_v16  ;;  %v4165_v40 = vpop.permute.xlu1 %4164  ;;  %v938_v59 = vsel %vm6116_vm5, %v4974_v22, %v6108_v23  ;;  %v937_v62 = vsel %vm6116_vm5, %v4971_v21, %v6105_v39 }
  0xfd   : > { %v4167_v41 = vunpack.i.h.bf16 %v4165_v40  ;;  %v4166_v43 = vunpack.i.l.bf16 %v4165_v40  ;;  %v4160_v44 = vpop.permute.xlu0 %4159 }
  0xfe   : > { %v4162_v55 = vunpack.i.h.bf16 %v4160_v44  ;;  %v4161_v58 = vunpack.i.l.bf16 %v4160_v44 }
  0xff   : > { %v943_v0 = vsel %vm872_vm7, %v939_v53, %v4166_v43  ;;  %v944_v27 = vsel %vm872_vm7, %v940_v51, %v4167_v41 }
 0x100   : > { %v1011_v1 = vpack.c.bf16 %v944_v27, %v943_v0  ;;  %v941_v2 = vsel %vm872_vm7, %v937_v62, %v4161_v58  ;;  %v942_v26 = vsel %vm872_vm7, %v938_v59, %v4162_v55  ;;  %v5200_v3 = vpop.permute.xlu1 %4174  ;;  %v4714_v55 = vmov 0   ;;  %v4236_v58 = vld [vmem:[%s6075_s3 + $0x28] sm:$0xff]   ;;  %v4237_v59 = vld [vmem:[%s6075_s3 + $0x20] sm:$0xff]   ;;  %v4238_v62 = vld [vmem:[%s6075_s3 + $0x18] sm:$0xff]  }
 0x101   : > { %v1010_v4 = vpack.c.bf16 %v942_v26, %v941_v2  ;;  %v5202_v5 = vpop.permute.xlu0 %4169  ;;  %v6099_v22 = vunpack.i.h.bf16 %v5200_v3  ;;  %v6100_v6 = vunpack.i.l.bf16 %v5200_v3  ;;  %1506 = vmatprep.subr.bf16.mxu1 %v4714_v55  ;;  %v4239_v0 = vld [vmem:[%s6075_s3 + $0x10] sm:$0xff]   ;;  %v4240_v27 = vld [vmem:[%s6075_s3 + $0x8] sm:$0xff]   ;;  %v4242_v2 = vld [vmem:[%s6075_s3 + $0x58] sm:$0xff]  }
 0x102   : > { %v6101_v21 = vunpack.i.h.bf16 %v5202_v5  ;;  %v6102_v7 = vunpack.i.l.bf16 %v5202_v5  ;;  %v4243_v26 = vld [vmem:[%s6075_s3 + $0x50] sm:$0xff]  }
 0x103   : > { %3925 = vmatprep.mubr.msk.bf16.mxu0 %vm1069_vm8, %v1010_v4  ;;  %v1001_v16 = vsel %vm6116_vm5, %v5023_v46, %v6099_v22  ;;  %v1000_v24 = vsel %vm6116_vm5, %v5020_v45, %v6100_v6  ;;  %v5276_v4 = vld [vmem:[%s6140_s2] ss:$0 sm:$0xff] }
 0x104   : > { %3926 = vmatmul.mubr.msk.bf16.gmra.mxu0 %vm1069_vm8, %v1011_v1  ;;  %v4185_v8 = vpop.permute.xlu1 %4184  ;;  %v999_v40 = vsel %vm6116_vm5, %v5041_v52, %v6101_v21  ;;  %v998_v41 = vsel %vm6116_vm5, %v5030_v49, %v6102_v7  ;;  %v4234_v52 = vld [vmem:[%s6075_s3 + $0x38] sm:$0xff]   ;;  %v4235_v49 = vld [vmem:[%s6075_s3 + $0x30] sm:$0xff]   ;;  %v4241_v1 = vld [vmem:[%s6075_s3] sm:$0xff]  }
 0x105   : > { %v4187_v14 = vunpack.i.h.bf16 %v4185_v8  ;;  %v4186_v15 = vunpack.i.l.bf16 %v4185_v8  ;;  %v4180_v29 = vpop.permute.xlu0 %4179  ;;  %1507 = vmatpush1.bf16.msra.mxu1 %v4234_v52  ;;  %vm3585_vm5 = vmpackc.low %vm4715_vm11, %vm729_vm15 }
 0x106   : > { %v4182_v30 = vunpack.i.h.bf16 %v4180_v29  ;;  %v4181_v36 = vunpack.i.l.bf16 %v4180_v29  ;;  %1508 = vmatprep.subr.bf16.mxu1 %v4714_v55 }
 0x107   : > { %v1005_v43 = vsel %vm872_vm7, %v1001_v16, %v4187_v14  ;;  %v1004_v46 = vsel %vm872_vm7, %v1000_v24, %v4186_v15 }
 0x108   : > { %v1013_v44 = vpack.c.bf16 %v1005_v43, %v1004_v46  ;;  %v1003_v51 = vsel %vm872_vm7, %v999_v40, %v4182_v30  ;;  %v1002_v45 = vsel %vm872_vm7, %v998_v41, %v4181_v36 }
 0x109   : > { %v1012_v53 = vpack.c.bf16 %v1003_v51, %v1002_v45  ;;  %1509 = vmatpush1.bf16.msra.mxu1 %v4235_v49 }
 0x10a   : > { %1510 = vmatprep.subr.bf16.mxu1 %v4714_v55 }
 0x10b   : > { %3929 = vmatprep.mubr.msk.bf16.mxu0 %vm1069_vm8, %v1012_v53 }
 0x10c   : > { %3930 = vmatmul.mubr.msk.bf16.gmra.mxu0 %vm1069_vm8, %v1013_v44 }
 0x10d   : > { %1511 = vmatpush1.bf16.msra.mxu1 %v4236_v58 }
 0x10e   : > { %1512 = vmatprep.subr.bf16.mxu1 %v4714_v55 }
 0x111   : > { %1513 = vmatpush1.bf16.msra.mxu1 %v4237_v59 }
 0x112   : > { %1514 = vmatprep.subr.bf16.mxu1 %v4714_v55 }
 0x115   : > { %1515 = vmatpush1.bf16.msra.mxu1 %v4238_v62 }
 0x116   : > { %1516 = vmatprep.subr.bf16.mxu1 %v4714_v55 }
 0x119   : > { %1517 = vmatpush1.bf16.msra.mxu1 %v4239_v0 }
 0x11a   : > { %1518 = vmatprep.subr.bf16.mxu1 %v4714_v55 }
 0x11d   : > { %1519 = vmatpush1.bf16.msra.mxu1 %v4240_v27 }
 0x11e   : > { %1520 = vmatprep.subr.bf16.mxu1 %v4714_v55 }
 0x121   : > { %1521 = vmatpush1.bf16.msra.mxu1 %v4241_v1 }
 0x122   : > { %1530 = vmatprep.subr.bf16.mxu1 %v4714_v55 }
 0x125   : > { %1531 = vmatpush2.bf16.msra.mxu1 %v4242_v2 }
 0x126   : > { %1532 = vmatprep.subr.bf16.mxu1 %v4714_v55 }
 0x129   : > { %1533 = vmatpush2.bf16.msra.mxu1 %v4243_v26 }
 0x12a   : > { %1534 = vmatprep.subr.bf16.mxu1 %v4714_v55 }
 0x1b4   : > { %v3919_v8 = vpop.f32.mrf.mxu0 }
 0x1b5   : > { %v5279_v14 = vadd.f32 %v3919_v8, %v5276_v4 }
 0x1b6   : > { %v1128_v15 = vpop.f32.mrf.mxu0 }
 0x1b7   : > { %v3518_v29 = vmul.f32 -1.442695, %v5279_v14  ;;  %v5283_v16 = vadd.f32 %v5276_v4, %v1128_v15 }
 0x1b8   : > { %v3920_v24 = vpop.f32.mrf.mxu0 }
 0x1b9   : > { %4338 = vpow2.f32 %v3518_v29  ;;  %v3516_v30 = vmul.f32 -1.442695, %v5283_v16  ;;  %v5287_v36 = vadd.f32 %v3920_v24, %v5276_v4 }
 0x1ba   : > { %v1131_v40 = vpop.f32.mrf.mxu0 }
 0x1bb   : > { %4340 = vpow2.f32 %v3516_v30  ;;  %v3519_v41 = vmul.f32 -1.442695, %v5287_v36  ;;  %v5291_v43 = vadd.f32 %v5276_v4, %v1131_v40 }
 0x1bc   : > { %v3923_v46 = vpop.f32.mrf.mxu0 }
 0x1bd   : > { %4342 = vpow2.f32 %v3519_v41  ;;  %v3517_v44 = vmul.f32 -1.442695, %v5291_v43  ;;  %v5295_v51 = vadd.f32 %v3923_v46, %v5276_v4 }
 0x1be   : > { %v1144_v45 = vpop.f32.mrf.mxu0 }
 0x1bf   : > { %4344 = vpow2.f32 %v3517_v44  ;;  %v3522_v53 = vmul.f32 -1.442695, %v5295_v51  ;;  %v5299_v52 = vadd.f32 %v5276_v4, %v1144_v45 }
 0x1c0   : > { %v3924_v49 = vpop.f32.mrf.mxu0 }
 0x1c1   : > { %4346 = vpow2.f32 %v3522_v53  ;;  %v3520_v58 = vmul.f32 -1.442695, %v5299_v52  ;;  %v5303_v59 = vadd.f32 %v3924_v49, %v5276_v4 }
 0x1c2   : > { %v1147_v62 = vpop.f32.mrf.mxu0 }
 0x1c3   : > { %4348 = vpow2.f32 %v3520_v58  ;;  %v3523_v0 = vmul.f32 -1.442695, %v5303_v59  ;;  %v5307_v27 = vadd.f32 %v5276_v4, %v1147_v62 }
 0x1c4   : > { %v3927_v1 = vpop.f32.mrf.mxu0 }
 0x1c5   : > { %4350 = vpow2.f32 %v3523_v0  ;;  %v3521_v2 = vmul.f32 -1.442695, %v5307_v27  ;;  %v5311_v26 = vadd.f32 %v3927_v1, %v5276_v4 }
 0x1c6   : > { %v4339_v8 = vpop.eup %4338  ;;  %v1160_v15 = vpop.f32.mrf.mxu0 }
 0x1c7   : > { %v1241_v29 = vadd.f32 1.0, %v4339_v8  ;;  %4352 = vpow2.f32 %v3521_v2  ;;  %v3526_v24 = vmul.f32 -1.442695, %v5311_v26  ;;  %v5315_v30 = vadd.f32 %v5276_v4, %v1160_v15 }
 0x1c8   : > { %v4341_v40 = vpop.eup %4340  ;;  %v3928_v41 = vpop.f32.mrf.mxu0 }
 0x1c9   : > { %4354 = vrcp.f32 %v1241_v29  ;;  %v1239_v46 = vadd.f32 1.0, %v4341_v40  ;;  %v3524_v44 = vmul.f32 -1.442695, %v5315_v30  ;;  %v5319_v45 = vadd.f32 %v3928_v41, %v5276_v4 }
 0x1ca   : > { %v4343_v53 = vpop.eup %4342  ;;  %4356 = vpow2.f32 %v3526_v24  ;;  %v1163_v49 = vpop.f32.mrf.mxu0 }
 0x1cb   : > { %4358 = vrcp.f32 %v1239_v46  ;;  %v1242_v58 = vadd.f32 1.0, %v4343_v53  ;;  %v3527_v62 = vmul.f32 -1.442695, %v5319_v45  ;;  %v5323_v0 = vadd.f32 %v5276_v4, %v1163_v49 }
 0x1cc   : > { %v4345_v1 = vpop.eup %4344  ;;  %4360 = vpow2.f32 %v3524_v44  ;;  %v3931_v2 = vpop.f32.mrf.mxu0 }
 0x1cd   : > { %4362 = vrcp.f32 %v1242_v58  ;;  %v1240_v8 = vadd.f32 1.0, %v4345_v1  ;;  %v3525_v15 = vmul.f32 -1.442695, %v5323_v0  ;;  %v5327_v29 = vadd.f32 %v3931_v2, %v5276_v4 }
 0x1ce   : > { %v4347_v40 = vpop.eup %4346  ;;  %4364 = vpow2.f32 %v3527_v62  ;;  %v1176_v24 = vpop.f32.mrf.mxu0 }
 0x1cf   : > { %4366 = vrcp.f32 %v1240_v8  ;;  %v1245_v41 = vadd.f32 1.0, %v4347_v40  ;;  %v3530_v46 = vmul.f32 -1.442695, %v5327_v29  ;;  %v5331_v53 = vadd.f32 %v5276_v4, %v1176_v24 }
 0x1d0   : > { %v4349_v49 = vpop.eup %4348  ;;  %4368 = vpow2.f32 %v3525_v15  ;;  %v3932_v44 = vpop.f32.mrf.mxu0 }
 0x1d1   : > { %4370 = vrcp.f32 %v1245_v41  ;;  %v1243_v58 = vadd.f32 1.0, %v4349_v49  ;;  %v3528_v1 = vmul.f32 -1.442695, %v5331_v53  ;;  %v5335_v2 = vadd.f32 %v3932_v44, %v5276_v4 }
 0x1d2   : > { %v4351_v22 = vpop.eup %4350  ;;  %4372 = vpow2.f32 %v3530_v46  ;;  %v1179_v62 = vpop.f32.mrf.mxu0 }
 0x1d3   : > { %4374 = vrcp.f32 %v1243_v58  ;;  %v1246_v8 = vadd.f32 1.0, %v4351_v22  ;;  %v3531_v40 = vmul.f32 -1.442695, %v5335_v2  ;;  %v5339_v24 = vadd.f32 %v5276_v4, %v1179_v62  ;;  %v4244_v4 = vld [vmem:[%s6075_s3 + $0x48] sm:$0xff]  }
 0x1d4   : > { %v4353_v6 = vpop.eup %4352  ;;  %4376 = vpow2.f32 %v3528_v1  ;;  %1535 = vmatpush2.bf16.msra.mxu1 %v4244_v4 }
 0x1d5   : > { %4378 = vrcp.f32 %v1246_v8  ;;  %v1244_v15 = vadd.f32 1.0, %v4353_v6  ;;  %v3529_v41 = vmul.f32 -1.442695, %v5339_v24  ;;  %1536 = vmatprep.subr.bf16.mxu1 %v4714_v55 }
 0x1d6   : > { %v4355_v49 = vpop.eup %4354  ;;  %4380 = vpow2.f32 %v3531_v40  ;;  %v4245_v40 = vld [vmem:[%s6075_s3 + $0x40] sm:$0xff]  }
 0x1d7   : > { %v4357_v44 = vpop.eup %4356  ;;  %4382 = vrcp.f32 %v1244_v15 }
 0x1d8   : > { %v4359_v21 = vpop.eup %4358  ;;  %4384 = vpow2.f32 %v3529_v41  ;;  %v1249_v7 = vadd.f32 1.0, %v4357_v44  ;;  %v1289_v44 = vmul.f32 %v4355_v49, %v5279_v14  ;;  %1537 = vmatpush2.bf16.msra.mxu1 %v4245_v40 }
 0x1d9   : > { %v4361_v46 = vpop.eup %4360  ;;  %v1287_v61 = vmul.f32 %v4359_v21, %v5283_v16 }
 0x1da   : > { %v4363_v58 = vpop.eup %4362  ;;  %v1247_v8 = vadd.f32 1.0, %v4361_v46  ;;  %4386 = vrcp.f32 %v1249_v7 }
 0x1db   : > { %v4365_v22 = vpop.eup %4364 }
 0x1dc   : > { %v4367_v62 = vpop.eup %4366  ;;  %v1250_v38 = vadd.f32 1.0, %v4365_v22  ;;  %4388 = vrcp.f32 %v1247_v8 }
 0x1dd   : > { %v4369_v1 = vpop.eup %4368  ;;  %v1288_v49 = vmul.f32 %v4367_v62, %v5291_v43 }
 0x1de   : > { %v4371_v6 = vpop.eup %4370  ;;  %v1248_v4 = vadd.f32 1.0, %v4369_v1 }
 0x1df   : > { %v4373_v15 = vpop.eup %4372  ;;  %v1293_v41 = vmul.f32 %v4371_v6, %v5295_v51  ;;  %v1290_v51 = vmul.f32 %v4363_v58, %v5287_v36 }
 0x1e0   : > { %v4375_v25 = vpop.eup %4374  ;;  %v1253_v39 = vadd.f32 1.0, %v4373_v15 }
 0x1e1   : > { %v4377_v60 = vpop.eup %4376  ;;  %v1291_v46 = vmul.f32 %v4375_v25, %v5299_v52  ;;  %v5354_v22 = vmax.f32 %v1289_v44, %v1293_v41 }
 0x1e2   : > { %v4379_v55 = vpop.eup %4378  ;;  %4390 = vrcp.f32 %v1253_v39  ;;  %v1251_v23 = vadd.f32 1.0, %v4377_v60 }
 0x1e3   : > { %v4381_v54 = vpop.eup %4380  ;;  %v1294_v7 = vmul.f32 %v4379_v55, %v5303_v59  ;;  %4392 = vrcp.f32 %v1250_v38  ;;  %v5357_v14 = vmax.f32 %v1287_v61, %v1291_v46  ;;  %v1318_v21 = vrot.slane %v5354_v22, 1 }
 0x1e4   : > { %v4383_v6 = vpop.eup %4382  ;;  %4394 = vrcp.f32 %v1251_v23  ;;  %v1254_v25 = vadd.f32 1.0, %v4381_v54 }
 0x1e5   : > { %v4385_v52 = vpop.eup %4384  ;;  %v5360_v1 = vmax.f32 %v1290_v51, %v1294_v7  ;;  %v1292_v60 = vmul.f32 %v4383_v6, %v5307_v27  ;;  %4396 = vrcp.f32 %v1248_v4  ;;  %v1315_v54 = vrot.slane %v5357_v14, 1 }
 0x1e6   : > { %4398 = vrcp.f32 %v1254_v25  ;;  %v1252_v39 = vadd.f32 1.0, %v4385_v52 }
 0x1e7   : > { %v1320_v16 = vrot.slane %v5360_v1, 1  ;;  %v5365_v38 = vmax.f32 %v1288_v49, %v1292_v60  ;;  %v4193_v61 = vpack.i.bf16 %v5360_v1, %v5354_v22  ;;  %v4387_v15 = vpop.eup %4386 }
 0x1e8   : > { %4400 = vrcp.f32 %v1252_v39  ;;  %v1297_v6 = vmul.f32 %v4387_v15, %v5311_v26 }
 0x1e9   : > { %v1316_v23 = vrot.slane %v5365_v38, 1  ;;  %4194 = vrot.lane.b32.xlu1 %v4193_v61, %s4712_s19  ;;  %v4188_v36 = vpack.i.bf16 %v5365_v38, %v5357_v14  ;;  %v5375_v43 = vsel %vm945_vm0, %v1318_v21, %v1320_v16  ;;  %v1326_v59 = vsel %vm945_vm0, %v1320_v16, 0.0  ;;  %v4389_v44 = vpop.eup %4388 }
 0x1ea   : > { %v5380_v27 = vsel %vm766_vm2, %v1326_v59, 0.0  ;;  %v1295_v49 = vmul.f32 %v4389_v44, %v5315_v30 }
 0x1eb   : > { %4189 = vrot.lane.b32.xlu0 %v4188_v36, %s4712_s19  ;;  %v5384_v58 = vsel %vm945_vm0, %v1315_v54, %v1316_v23  ;;  %v1319_v62 = vsel %vm945_vm0, %v1316_v23, %v1318_v21  ;;  %v4223_v8 = vpack.i.bf16 %v5380_v27, %v5375_v43 }
 0x1ec   : > { %v5391_v40 = vsel %vm764_vm3, %v1319_v62, 0.0 }
 0x1ed   : > { %v4218_v41 = vpack.i.bf16 %v5391_v40, %v5384_v58 }
 0x1ef   : > { %v4391_v46 = vpop.eup %4390 }
 0x1f0   : > { %v4393_v4 = vpop.eup %4392  ;;  %v1301_v55 = vmul.f32 %v4391_v46, %v5327_v29 }
 0x1f1   : > { %v4395_v51 = vpop.eup %4394  ;;  %v1298_v60 = vmul.f32 %v4393_v4, %v5319_v45 }
 0x1f2   : > { %v4397_v7 = vpop.eup %4396  ;;  %v1299_v25 = vmul.f32 %v4395_v51, %v5331_v53  ;;  %v1309_v39 = vmax.f32 %v1297_v6, %v1301_v55 }
 0x1f3   : > { %v4399_v52 = vpop.eup %4398  ;;  %v1296_v54 = vmul.f32 %v4397_v7, %v5323_v0 }
 0x1f4   : > { %v1302_v21 = vmul.f32 %v4399_v52, %v5335_v2  ;;  %v1307_v61 = vmax.f32 %v1295_v49, %v1299_v25  ;;  %v1338_v36 = vrot.slane %v1309_v39, 7 }
 0x1f5   : > { %v4401_v16 = vpop.eup %4400 }
 0x1f6   : > { %v1310_v23 = vmax.f32 %v1298_v60, %v1302_v21  ;;  %v1300_v29 = vmul.f32 %v4401_v16, %v5339_v24  ;;  %v1335_v53 = vrot.slane %v1307_v61, 7 }
 0x1f8   : > { %v1340_v59 = vrot.slane %v1310_v23, 7  ;;  %v1308_v26 = vmax.f32 %v1296_v54, %v1300_v29  ;;  %v4203_v62 = vpack.i.bf16 %v1310_v23, %v1309_v39  ;;  %v1386_v15 = vpack.c.bf16 %v1310_v23, %v1309_v39 }
 0x1f9   : > { %v1346_v51 = vsel %vm810_vm1, 0.0, %v1335_v53  ;;  %v1388_v23 = vpack.c.bf16 %v5391_v40, %v5384_v58  ;;  %v4334_v58 = vld [vmem:[%s6086_s14 + $0x18] sm:$0xff]   ;;  %v4335_v40 = vld [vmem:[%s6086_s14 + $0x10] sm:$0xff]  }
 0x1fa   : > { %v1336_v46 = vrot.slane %v1308_v26, 7  ;;  %4204 = vrot.lane.b32.xlu1 %v4203_v62, %s4712_s19  ;;  %v4198_v30 = vpack.i.bf16 %v1308_v26, %v1307_v61  ;;  %v1384_v45 = vpack.c.bf16 %v1308_v26, %v1307_v61  ;;  %v1341_v2 = vsel %vm810_vm1, %v1338_v36, %v1340_v59 }
 0x1fb   : > { %v1347_v39 = vsel %vm743_vm4, %v1346_v51, 0.0  ;;  %v4250_v51 = vld [vmem:[%s6077_s5 + $0xb8] sm:$0xff]  }
 0x1fc   : > { %4199 = vrot.lane.b32.xlu0 %v4198_v30, %s4712_s19  ;;  %3545 = vmatprep.mubr.msk.bf16.mxu1 %vm872_vm7, %v1384_v45  ;;  %v1337_v0 = vsel %vm810_vm1, %v1335_v53, %v1336_v46  ;;  %v1339_v24 = vsel %vm810_vm1, %v1336_v46, %v1338_v36  ;;  %v1390_v45 = vpack.c.bf16 %v5380_v27, %v5375_v43  ;;  %v4337_v27 = vld [vmem:[%s6086_s14] sm:$0xff]  }
 0x1fd   : > { %v1349_v6 = vsel %vm745_vm6, %v1339_v24, 0.0  ;;  %v4247_v24 = vld [vmem:[%s6077_s5 + $0x38] sm:$0xff]   ;;  %3933 = vmatprep.subr.bf16.mxu1 %v4250_v51 }
 0x25b   : > { %v5409_v44 = vpop.permute.xlu1 %4194 }
 0x25c   : > { %v4197_v4 = vunpack.i.h.bf16 %v5409_v44  ;;  %v4196_v55 = vunpack.i.l.bf16 %v5409_v44 }
 0x25d   : > { %v5414_v7 = vpop.permute.xlu0 %4189 }
 0x25e   : > { %v4192_v25 = vunpack.i.h.bf16 %v5414_v7  ;;  %v4191_v52 = vunpack.i.l.bf16 %v5414_v7  ;;  %v1365_v49 = vsel %vm872_vm7, %v1349_v6, %v4196_v55  ;;  %v1366_v60 = vsel %vm872_vm7, %v1341_v2, %v4197_v4  ;;  %v4251_v6 = vld [vmem:[%s6077_s5 + $0x68] sm:$0xff]  }
 0x25f   : > { %v1385_v21 = vpack.c.bf16 %v1366_v60, %v1365_v49  ;;  %v4252_v49 = vld [vmem:[%s6077_s5 + $0x28] sm:$0xff]   ;;  %v4253_v60 = vld [vmem:[%s6077_s5 + $0xb0] sm:$0xff]  }
 0x260   : > { %v1363_v16 = vsel %vm872_vm7, %v1347_v39, %v4191_v52  ;;  %v1364_v61 = vsel %vm872_vm7, %v1337_v0, %v4192_v25  ;;  %v4246_v0 = vld [vmem:[%s6077_s5 + $0x78] sm:$0xff]   ;;  %v4254_v39 = vld [vmem:[%s6077_s5 + $0x60] sm:$0xff]  }
 0x261   : > { %v1383_v54 = vpack.c.bf16 %v1364_v61, %v1363_v16  ;;  %3737 = vmatprep.subr.bf16.mxu0 %v4246_v0  ;;  %v4256_v16 = vld [vmem:[%s6077_s5 + $0xa8] sm:$0xff]   ;;  %v4257_v61 = vld [vmem:[%s6077_s5 + $0x58] sm:$0xff]   ;;  %v4267_v0 = vld [vmem:[%s6077_s5] sm:$0xff]  }
 0x262   : > { %3738 = vmatpush3.bf16.msra.mxu0 %v4247_v24  ;;  %v4268_v24 = vld [vmem:[%s6077_s5 + $0x88] sm:$0xff]  }
 0x263   : > { %1539 = vmatmul.mubr.bf16.vlgmr.msra.gmra.mxu1 %v1383_v54  ;;  %v4258_v54 = vld [vmem:[%s6077_s5 + $0x18] sm:$0xff]  }
 0x264   : > { %3546 = vmatprep.mubr.msk.bf16.mxu1 %vm872_vm7, %v1386_v15  ;;  %3934 = vmatpush3.bf16.msra.mxu1 %v4250_v51 }
 0x265   : > { %3935 = vmatprep.subr.bf16.mxu1 %v4253_v60 }
 0x268   : > { %3936 = vmatpush3.bf16.msra.mxu1 %v4253_v60 }
 0x269   : > { %3937 = vmatprep.subr.bf16.mxu1 %v4256_v16 }
 0x26b   : > { %1547 = vmatmul.mubr.bf16.gmra.mxu1 %v1385_v21  ;;  %v4255_v21 = vld [vmem:[%s6077_s5 + $0x20] sm:$0xff]  }
 0x26c   : > { %3547 = vmatprep.mubr.msk.bf16.mxu1 %vm872_vm7, %v1388_v23  ;;  %v5442_v26 = vpop.permute.xlu1 %4204  ;;  %3938 = vmatpush3.bf16.msra.mxu1 %v4256_v16  ;;  %v4259_v23 = vld [vmem:[%s6077_s5 + $0xa0] sm:$0xff]  }
 0x26d   : > { %v4207_v46 = vunpack.i.h.bf16 %v5442_v26  ;;  %v4206_v30 = vunpack.i.l.bf16 %v5442_v26  ;;  %3939 = vmatprep.subr.bf16.mxu1 %v4259_v23  ;;  %v5866_v26 = vld [vmem:[#allocation9] ss:$0 sm:$0xff] }
 0x26e   : > { %v5438_v29 = vpop.permute.xlu0 %4199 }
 0x26f   : > { %v4202_v36 = vunpack.i.h.bf16 %v5438_v29  ;;  %v4201_v59 = vunpack.i.l.bf16 %v5438_v29 }
 0x270   : > { %3940 = vmatpush3.bf16.msra.mxu1 %v4259_v23 }
 0x271   : > { %v1379_v62 = vsel %vm872_vm7, %v5357_v14, %v4201_v59  ;;  %v1380_v53 = vsel %vm872_vm7, %v5365_v38, %v4202_v36  ;;  %v1381_v14 = vsel %vm872_vm7, %v5354_v22, %v4206_v30  ;;  %v1382_v38 = vsel %vm872_vm7, %v5360_v1, %v4207_v46  ;;  %v4248_v22 = vld [vmem:[%s6077_s5 + $0x70] sm:$0xff]  }
 0x272   : > { %v1387_v15 = vpack.c.bf16 %v1380_v53, %v1379_v62  ;;  %v1389_v2 = vpack.c.bf16 %v1382_v38, %v1381_v14  ;;  %v4249_v1 = vld [vmem:[%s6077_s5 + $0x30] sm:$0xff]   ;;  %3739 = vmatprep.subr.bf16.mxu0 %v4248_v22  ;;  %v4264_v14 = vld [vmem:[%s6077_s5 + $0x8] sm:$0xff]   ;;  %v4269_v22 = vld [vmem:[%s6077_s5 + $0x80] sm:$0xff]  }
 0x273   : > { %3740 = vmatpush3.bf16.msra.mxu0 %v4249_v1  ;;  %v4260_v62 = vld [vmem:[%s6077_s5 + $0x50] sm:$0xff]  }
 0x274   : > { %1555 = vmatmul.mubr.bf16.gmra.mxu1 %v1387_v15  ;;  %3741 = vmatprep.subr.bf16.mxu0 %v4251_v6  ;;  %v4261_v53 = vld [vmem:[%s6077_s5 + $0x10] sm:$0xff]   ;;  %v4262_v15 = vld [vmem:[%s6077_s5 + $0x98] sm:$0xff]  }
 0x275   : > { %3548 = vmatprep.mubr.msk.bf16.mxu1 %vm872_vm7, %v1390_v45  ;;  %v4263_v45 = vld [vmem:[%s6077_s5 + $0x48] sm:$0xff]   ;;  %3941 = vmatprep.subr.bf16.mxu1 %v4262_v15  ;;  %v4265_v38 = vld [vmem:[%s6077_s5 + $0x90] sm:$0xff]  }
 0x276   : > { %3942 = vmatpush3.bf16.msra.mxu1 %v4262_v15 }
 0x277   : > { %3742 = vmatpush3.bf16.msra.mxu0 %v4252_v49  ;;  %3943 = vmatprep.subr.bf16.mxu1 %v4265_v38  ;;  %v3532_v49 = vld [vmem:[%s6076_s4] ss:$0 sm:$0xff] }
 0x278   : > { %3743 = vmatprep.subr.bf16.mxu0 %v4254_v39 }
 0x27a   : > { %3944 = vmatpush3.bf16.msra.mxu1 %v4265_v38 }
 0x27b   : > { %3744 = vmatpush3.bf16.msra.mxu0 %v4255_v21  ;;  %3945 = vmatprep.subr.bf16.mxu1 %v4268_v24 }
 0x27c   : > { %1563 = vmatmul.mubr.bf16.gmra.mxu1 %v1389_v2  ;;  %3745 = vmatprep.subr.bf16.mxu0 %v4257_v61  ;;  %v4266_v2 = vld [vmem:[%s6077_s5 + $0x40] sm:$0xff]  }
 0x27e   : > { %3946 = vmatpush3.bf16.msra.mxu1 %v4268_v24 }
 0x27f   : > { %3746 = vmatpush3.bf16.msra.mxu0 %v4258_v54  ;;  %3947 = vmatprep.subr.bf16.mxu1 %v4269_v22 }
 0x280   : > { %3747 = vmatprep.subr.bf16.mxu0 %v4260_v62 }
 0x282   : > { %3948 = vmatpush3.bf16.msra.mxu1 %v4269_v22 }
 0x283   : > { %3748 = vmatpush3.bf16.msra.mxu0 %v4261_v53 }
 0x284   : > { %3749 = vmatprep.subr.bf16.mxu0 %v4263_v45 }
 0x287   : > { %3750 = vmatpush3.bf16.msra.mxu0 %v4264_v14 }
 0x288   : > { %3751 = vmatprep.subr.bf16.mxu0 %v4266_v2 }
 0x28b   : > { %3752 = vmatpush3.bf16.msra.mxu0 %v4267_v0 }
 0x323   : > { %v1540_v1 = vpop.f32.mrf.mxu1 }
 0x324   : > { %v1541_v39 = vadd.f32 %v3532_v49, %v1540_v1 }
 0x325   : > { %v1542_v51 = vpop.f32.mrf.mxu1 }
 0x326   : > { %v3549_v61 = vmul.f32 -1.442695, %v1541_v39 }
 0x327   : > { %v1543_v6 = vpop.f32.mrf.mxu1 }
 0x328   : > { %v5540_v54 = vadd.f32 %v3532_v49, %v1543_v6  ;;  %4402 = vpow2.f32 %v3549_v61 }
 0x329   : > { %v1545_v60 = vpop.f32.mrf.mxu1 }
 0x32a   : > { %v3550_v53 = vmul.f32 -1.442695, %v5540_v54 }
 0x32b   : > { %v1548_v21 = vpop.f32.mrf.mxu1 }
 0x32c   : > { %v5543_v15 = vadd.f32 %v3532_v49, %v1548_v21  ;;  %4404 = vpow2.f32 %v3550_v53 }
 0x32d   : > { %v1550_v16 = vpop.f32.mrf.mxu1 }
 0x32e   : > { %v3551_v2 = vmul.f32 -1.442695, %v5543_v15 }
 0x32f   : > { %v1551_v23 = vpop.f32.mrf.mxu1 }
 0x330   : > { %v5546_v0 = vadd.f32 %v3532_v49, %v1551_v23 }
 0x331   : > { %v1553_v62 = vpop.f32.mrf.mxu1 }
 0x332   : > { %v3552_v6 = vmul.f32 -1.442695, %v5546_v0 }
 0x334   : > { %v1556_v45 = vpop.f32.mrf.mxu1 }
 0x335   : > { %v1557_v14 = vadd.f32 %v3532_v49, %v1556_v45  ;;  %v4403_v53 = vpop.eup %4402 }
 0x336   : > { %v1558_v38 = vpop.f32.mrf.mxu1  ;;  %v1595_v63 = vadd.f32 1.0, %v4403_v53 }
 0x337   : > { %v3553_v24 = vmul.f32 -1.442695, %v1557_v14 }
 0x338   : > { %v1559_v22 = vpop.f32.mrf.mxu1 }
 0x339   : > { %4406 = vpow2.f32 %v3553_v24  ;;  %v1560_v1 = vadd.f32 %v3532_v49, %v1559_v22  ;;  %v4405_v22 = vpop.eup %4404 }
 0x33a   : > { %v1561_v51 = vpop.f32.mrf.mxu1  ;;  %4408 = vpow2.f32 %v3551_v2 }
 0x33b   : > { %v3554_v60 = vmul.f32 -1.442695, %v1560_v1  ;;  %v1596_v51 = vadd.f32 1.0, %v4405_v22 }
 0x33c   : > { %v1564_v16 = vpop.f32.mrf.mxu1 }
 0x33d   : > { %4410 = vpow2.f32 %v3554_v60  ;;  %v1565_v21 = vadd.f32 %v3532_v49, %v1564_v16 }
 0x33e   : > { %v1566_v61 = vpop.f32.mrf.mxu1  ;;  %4412 = vpow2.f32 %v3552_v6 }
 0x33f   : > { %v3555_v62 = vmul.f32 -1.442695, %v1565_v21 }
 0x340   : > { %v1567_v45 = vpop.f32.mrf.mxu1 }
 0x341   : > { %4414 = vpow2.f32 %v3555_v62  ;;  %v5549_v23 = vadd.f32 %v3532_v49, %v1567_v45 }
 0x342   : > { %v1569_v38 = vpop.f32.mrf.mxu1 }
 0x343   : > { %v3556_v24 = vmul.f32 -1.442695, %v5549_v23 }
 0x345   : > { %4416 = vpow2.f32 %v3556_v24 }
 0x346   : > { %v4407_v2 = vpop.eup %4406  ;;  %4418 = vrcp.f32 %v1595_v63 }
 0x347   : > { %v1599_v48 = vadd.f32 1.0, %v4407_v2  ;;  %v4409_v60 = vpop.eup %4408 }
 0x348   : > { %v1597_v6 = vadd.f32 1.0, %v4409_v60  ;;  %v723_v60 = vadd.s32 4294967294, %v679_v10 }
 0x349   : > { %4420 = vrcp.f32 %v1599_v48 }
 0x34a   : > { %v4411_v16 = vpop.eup %4410  ;;  %4422 = vrcp.f32 %v1596_v51  ;;  %vm727_vm10 = vcmp.ge.s32.totalorder %v723_v60, 0 }
 0x34b   : > { %v1600_v61 = vadd.f32 1.0, %v4411_v16  ;;  %v4413_v34 = vpop.eup %4412  ;;  %vm3582_vm12 = vmpackc.low %vm4715_vm11, %vm727_vm10 }
 0x34c   : > { %v1598_v62 = vadd.f32 1.0, %v4413_v34 }
 0x34d   : > { %4424 = vrcp.f32 %v1600_v61 }
 0x34e   : > { %v4415_v49 = vpop.eup %4414  ;;  %4426 = vrcp.f32 %v1597_v6 }
 0x34f   : > { %v1601_v53 = vadd.f32 1.0, %v4415_v49 }
 0x351   : > { %4428 = vrcp.f32 %v1601_v53 }
 0x352   : > { %v4417_v45 = vpop.eup %4416  ;;  %4430 = vrcp.f32 %v1598_v62  ;;  %v772_v62 = vadd.s32 2, %v686_v33 }
 0x353   : > { %v1602_v38 = vadd.f32 1.0, %v4417_v45  ;;  %v4419_v24 = vpop.eup %4418 }
 0x354   : > { %v1619_v22 = vmul.f32 %v4419_v24, %v1541_v39  ;;  %vm780_vm14 = vcmp.lt.s32.totalorder %v772_v62, 16  ;;  %v4271_v62 = vld [vmem:[%s6079_s7 + $0x38] sm:$0xff]  }
 0x355   : > { %4432 = vrcp.f32 %v1602_v38  ;;  %vm3588_vm8 = vmpackc.low %vm780_vm14, %vm4715_vm11 }
 0x356   : > { %v4421_v63 = vpop.eup %4420 }
 0x357   : > { %v1623_v2 = vmul.f32 %v4421_v63, %v1557_v14  ;;  %v4423_v48 = vpop.eup %4422 }
 0x358   : > { %v1620_v16 = vmul.f32 %v4423_v48, %v5540_v54 }
 0x359   : > { %v1627_v35 = vmax.f32 %v1619_v22, %v1623_v2 }
 0x35a   : > { %v4425_v51 = vpop.eup %4424 }
 0x35b   : > { %v1624_v6 = vmul.f32 %v4425_v51, %v1560_v1  ;;  %v4427_v34 = vpop.eup %4426  ;;  %v1636_v61 = vrot.slane %v1627_v35, 6  ;;  %v1661_v11 = vrot.slane %v1627_v35, 2 }
 0x35c   : > { %v1621_v39 = vmul.f32 %v4427_v34, %v5543_v15  ;;  %v774_v15 = vadd.s32 2, %v700_v19 }
 0x35d   : > { %v1628_v49 = vmax.f32 %v1620_v16, %v1624_v6  ;;  %v1647_v10 = vsel %vm1635_vm9, 0.0, %v1636_v61 }
 0x35e   : > { %v4429_v53 = vpop.eup %4428  ;;  %vm782_vm10 = vcmp.lt.s32.totalorder %v774_v15, 16  ;;  %v4284_v15 = vld [vmem:[%s6079_s7 + $0x50] sm:$0xff]  }
 0x35f   : > { %v1637_v14 = vrot.slane %v1628_v49, 6  ;;  %v1625_v45 = vmul.f32 %v4429_v53, %v1565_v21  ;;  %v1686_v38 = vpack.c.bf16 %v1628_v49, %v1627_v35  ;;  %v4431_v24 = vpop.eup %4430  ;;  %v1662_v1 = vrot.slane %v1628_v49, 2  ;;  %v4270_v53 = vld [vmem:[%s6079_s7 + $0x78] sm:$0xff]  }
 0x360   : > { %v1622_v9 = vmul.f32 %v4431_v24, %v5546_v0  ;;  %3775 = vmatprep.subr.bf16.mxu0 %v4270_v53  ;;  %v4276_v24 = vld [vmem:[%s6079_s7 + $0xb0] sm:$0xff]  }
 0x361   : > { %v1638_v54 = vsel %vm1635_vm9, %v1636_v61, %v1637_v14  ;;  %v1629_v63 = vmax.f32 %v1621_v39, %v1625_v45  ;;  %1922 = vmatprep.mubr.bf16.mxu0 %v1686_v38  ;;  %v1663_v51 = vsel %vm1660_vm13, %v1661_v11, %v1662_v1  ;;  %v4272_v39 = vld [vmem:[%s6079_s7 + $0x70] sm:$0xff]   ;;  %v4275_v38 = vld [vmem:[%s6079_s7 + $0x68] sm:$0xff]  }
 0x362   : > { %v4433_v20 = vpop.eup %4432  ;;  %v3583_v33 = vpack.c.bf16 %v1638_v54, %v1647_v10  ;;  %v4274_v45 = vld [vmem:[%s6079_s7 + $0x30] sm:$0xff]   ;;  %v4278_v10 = vld [vmem:[%s6079_s7 + $0x60] sm:$0xff]   ;;  %v4279_v54 = vld [vmem:[%s6079_s7 + $0xa8] sm:$0xff]  }
 0x363   : > { %v1664_v21 = vrot.slane %v1629_v63, 2  ;;  %v1626_v22 = vmul.f32 %v4433_v20, %v5549_v23  ;;  %v1639_v2 = vrot.slane %v1629_v63, 6  ;;  %v4282_v20 = vld [vmem:[%s6079_s7 + $0xa0] sm:$0xff]   ;;  %v4286_v11 = vld [vmem:[%s6079_s7 + $0x10] sm:$0xff]  }
 0x364   : > { %3584 = vmatmul.mubr.msk.bf16.vlgmr.msra.gmra.mxu0 %vm3582_vm12, %v3583_v33  ;;  %vm3591_vm12 = vmpackc.low %vm782_vm10, %vm4715_vm11  ;;  %v4283_v33 = vld [vmem:[%s6079_s7 + $0x18] sm:$0xff]  }
 0x365   : > { %v1630_v48 = vmax.f32 %v1622_v9, %v1626_v22  ;;  %v1665_v60 = vsel %vm1660_vm13, %v1662_v1, %v1664_v21  ;;  %v1640_v23 = vsel %vm1635_vm9, %v1637_v14, %v1639_v2  ;;  %3776 = vmatpush3.bf16.msra.mxu0 %v4271_v62  ;;  %v4273_v14 = vld [vmem:[%s6079_s7 + $0xb8] sm:$0xff]   ;;  %v4280_v1 = vld [vmem:[%s6079_s7 + $0x20] sm:$0xff]   ;;  %v4288_v22 = vld [vmem:[%s6079_s7 + $0x90] sm:$0xff]  }
 0x366   : > { %v3589_v16 = vpack.c.bf16 %v1665_v60, %v1663_v51  ;;  %3777 = vmatprep.subr.bf16.mxu0 %v4272_v39  ;;  %3953 = vmatprep.subr.bf16.mxu1 %v4273_v14  ;;  %v4285_v9 = vld [vmem:[%s6079_s7 + $0x98] sm:$0xff]   ;;  %v4291_v51 = vld [vmem:[%s6079_s7 + $0x88] sm:$0xff]   ;;  %v4292_v60 = vld [vmem:[%s6079_s7] sm:$0xff]  }
 0x367   : > { %v1641_v18 = vrot.slane %v1630_v48, 6  ;;  %v1666_v19 = vrot.slane %v1630_v48, 2  ;;  %v1689_v6 = vpack.c.bf16 %v1630_v48, %v1629_v63  ;;  %v4281_v63 = vld [vmem:[%s6079_s7 + $0x58] sm:$0xff]   ;;  %v4290_v48 = vld [vmem:[%s6079_s7 + $0x40] sm:$0xff]  }
 0x368   : > { %3949 = vmatprep.mubr.msk.bf16.mxu1 %vm3588_vm8, %v3589_v16  ;;  %v4293_v16 = vld [vmem:[%s6079_s7 + $0x80] sm:$0xff]  }
 0x369   : > { %v1667_v35 = vsel %vm1660_vm13, %v1664_v21, %v1666_v19  ;;  %v1672_v0 = vsel %vm1660_vm13, %v1666_v19, 0.0  ;;  %1930 = vmatprep.mubr.bf16.mxu0 %v1689_v6  ;;  %v1642_v34 = vsel %vm1635_vm9, %v1639_v2, %v1641_v18  ;;  %3778 = vmatpush3.bf16.msra.mxu0 %v4274_v45  ;;  %v4287_v21 = vld [vmem:[%s6079_s7 + $0x48] sm:$0xff]   ;;  %v4294_v18 = vld [vmem:[%s6081_s9 + $0x78] sm:$0xff]   ;;  %vm5661_vm9 = vmpackc.low %vm764_vm3, %vm4715_vm11 }
 0x36a   : > { %v3592_v61 = vpack.c.bf16 %v1672_v0, %v1667_v35  ;;  %v3586_v49 = vpack.c.bf16 %v1642_v34, %v1640_v23  ;;  %3779 = vmatprep.subr.bf16.mxu0 %v4275_v38  ;;  %v4289_v2 = vld [vmem:[%s6079_s7 + $0x8] sm:$0xff]   ;;  %v3557_v34 = vld [vmem:[#allocation3] ss:$0 sm:$0xff]  ;;  %vm3626_vm13 = vmpackc.low %vm4715_vm11, %vm745_vm6 }
 0x36c   : > { %3587 = vmatmul.mubr.msk.bf16.gmra.mxu0 %vm3585_vm5, %v3586_v49  ;;  %3950 = vmatmul.mubr.msk.bf16.vlgmr.msra.gmra.mxu1 %vm3591_vm12, %v3592_v61  ;;  %vm3623_vm5 = vmpackc.low %vm4715_vm11, %vm743_vm4 }
 0x36d   : > { %3954 = vmatpush3.bf16.msra.mxu1 %v4273_v14  ;;  %3780 = vmatpush3.bf16.msra.mxu0 %v4277_v17  ;;  %vm5678_vm4 = vmpackc.low %vm766_vm2, %vm4715_vm11 }
 0x36e   : > { %3955 = vmatprep.subr.bf16.mxu1 %v4276_v24  ;;  %3781 = vmatprep.subr.bf16.mxu0 %v4278_v10 }
 0x371   : > { %3956 = vmatpush3.bf16.msra.mxu1 %v4276_v24  ;;  %3782 = vmatpush3.bf16.msra.mxu0 %v4280_v1 }
 0x372   : > { %3957 = vmatprep.subr.bf16.mxu1 %v4279_v54  ;;  %3783 = vmatprep.subr.bf16.mxu0 %v4281_v63 }
 0x375   : > { %3958 = vmatpush3.bf16.msra.mxu1 %v4279_v54  ;;  %3784 = vmatpush3.bf16.msra.mxu0 %v4283_v33 }
 0x376   : > { %3959 = vmatprep.subr.bf16.mxu1 %v4282_v20  ;;  %3785 = vmatprep.subr.bf16.mxu0 %v4284_v15 }
 0x379   : > { %3960 = vmatpush3.bf16.msra.mxu1 %v4282_v20  ;;  %3786 = vmatpush3.bf16.msra.mxu0 %v4286_v11 }
 0x37a   : > { %3961 = vmatprep.subr.bf16.mxu1 %v4285_v9  ;;  %3787 = vmatprep.subr.bf16.mxu0 %v4287_v21 }
 0x37d   : > { %3962 = vmatpush3.bf16.msra.mxu1 %v4285_v9  ;;  %3788 = vmatpush3.bf16.msra.mxu0 %v4289_v2 }
 0x37e   : > { %3963 = vmatprep.subr.bf16.mxu1 %v4288_v22  ;;  %3789 = vmatprep.subr.bf16.mxu0 %v4290_v48 }
 0x381   : > { %3964 = vmatpush3.bf16.msra.mxu1 %v4288_v22  ;;  %3790 = vmatpush3.bf16.msra.mxu0 %v4292_v60 }
 0x382   : > { %3965 = vmatprep.subr.bf16.mxu1 %v4291_v51  ;;  %3813 = vmatprep.subr.bf16.mxu0 %v4294_v18 }
 0x385   : > { %3966 = vmatpush3.bf16.msra.mxu1 %v4291_v51 }
 0x386   : > { %3967 = vmatprep.subr.bf16.mxu1 %v4293_v16 }
 0x389   : > { %3968 = vmatpush3.bf16.msra.mxu1 %v4293_v16 }
 0x424   : > { %v3753_v19 = vpop.f32.mrf.mxu0 }
 0x426   : > { %v3754_v6 = vpop.f32.mrf.mxu0 }
 0x427   : > { %v3755_v0 = vadd.f32 %v3754_v6, %v3753_v19 }
 0x428   : > { %v3756_v35 = vpop.f32.mrf.mxu0 }
 0x429   : > { %v1925_v62 = vadd.f32 %v3755_v0, %v3557_v34 }
 0x42a   : > { %v3757_v23 = vpop.f32.mrf.mxu0 }
 0x42b   : > { %v3758_v53 = vadd.f32 %v3757_v23, %v3756_v35 }
 0x42c   : > { %v3759_v61 = vpop.f32.mrf.mxu0  ;;  %v3951_v49 = vpop.f32.mrf.mxu1 }
 0x42d   : > { %v1928_v1 = vadd.f32 %v3758_v53, %v3557_v34 }
 0x42e   : > { %v3760_v39 = vpop.f32.mrf.mxu0  ;;  %v1973_v14 = vpop.f32.mrf.mxu1 }
 0x42f   : > { %v3761_v45 = vadd.f32 %v3760_v39, %v3759_v61  ;;  %v1974_v38 = vadd.f32 %v1973_v14, %v1925_v62 }
 0x430   : > { %v3762_v24 = vpop.f32.mrf.mxu0  ;;  %v3952_v17 = vpop.f32.mrf.mxu1 }
 0x431   : > { %v1933_v10 = vadd.f32 %v3761_v45, %v3557_v34  ;;  %v3594_v54 = vmul.f32 -1.442695, %v1974_v38 }
 0x432   : > { %v3763_v63 = vpop.f32.mrf.mxu0  ;;  %v1976_v20 = vpop.f32.mrf.mxu1 }
 0x433   : > { %v1982_v33 = vadd.f32 %v3951_v49, %v1933_v10  ;;  %4434 = vpow2.f32 %v3594_v54  ;;  %v3764_v15 = vadd.f32 %v3763_v63, %v3762_v24  ;;  %v1977_v9 = vadd.f32 %v1976_v20, %v1928_v1 }
 0x435   : > { %v3596_v11 = vmul.f32 -1.442695, %v1982_v33  ;;  %v1936_v21 = vadd.f32 %v3764_v15, %v3557_v34  ;;  %v3595_v22 = vmul.f32 -1.442695, %v1977_v9  ;;  %v4311_v15 = vld [vmem:[%s6083_s11 + $0x30] sm:$0xff]  }
 0x437   : > { %4436 = vpow2.f32 %v3596_v11  ;;  %v1985_v2 = vadd.f32 %v3952_v17, %v1936_v21 }
 0x438   : > { %4438 = vpow2.f32 %v3595_v22  ;;  %v4296_v22 = vld [vmem:[%s6081_s9 + $0x70] sm:$0xff]  }
 0x439   : > { %v3597_v48 = vmul.f32 -1.442695, %v1985_v2 }
 0x43b   : > { %4440 = vpow2.f32 %v3597_v48 }
 0x440   : > { %v4435_v51 = vpop.eup %4434 }
 0x441   : > { %v2000_v60 = vadd.f32 1.0, %v4435_v51 }
 0x443   : > { %4442 = vrcp.f32 %v2000_v60 }
 0x444   : > { %v4437_v16 = vpop.eup %4436 }
 0x445   : > { %v4439_v18 = vpop.eup %4438  ;;  %v2002_v19 = vadd.f32 1.0, %v4437_v16  ;;  %v4313_v16 = vld [vmem:[%s6083_s11 + $0x20] sm:$0xff]  }
 0x446   : > { %v2001_v6 = vadd.f32 1.0, %v4439_v18 }
 0x447   : > { %4444 = vrcp.f32 %v2002_v19 }
 0x448   : > { %v4441_v35 = vpop.eup %4440  ;;  %4446 = vrcp.f32 %v2001_v6  ;;  %v4297_v6 = vld [vmem:[%s6081_s9 + $0x30] sm:$0xff]  }
 0x449   : > { %v2003_v0 = vadd.f32 1.0, %v4441_v35  ;;  %v4298_v35 = vld [vmem:[%s6081_s9 + $0x68] sm:$0xff]  }
 0x44b   : > { %4448 = vrcp.f32 %v2003_v0 }
 0x450   : > { %v4443_v23 = vpop.eup %4442 }
 0x451   : > { %v2012_v34 = vmul.f32 %v4443_v23, %v1974_v38 }
 0x453   : > { %v2020_v62 = vrot.slane %v2012_v34, 7  ;;  %v2036_v24 = vrot.slane %v2012_v34, 1 }
 0x454   : > { %v4445_v61 = vpop.eup %4444 }
 0x455   : > { %v4447_v49 = vpop.eup %4446  ;;  %v2014_v53 = vmul.f32 %v4445_v61, %v1982_v33  ;;  %v2031_v63 = vsel %vm810_vm1, 0.0, %v2020_v62  ;;  %v4299_v61 = vld [vmem:[%s6081_s9 + $0x28] sm:$0xff]  }
 0x456   : > { %v2013_v39 = vmul.f32 %v4447_v49, %v1977_v9  ;;  %v4300_v49 = vld [vmem:[%s6081_s9 + $0x60] sm:$0xff]  }
 0x457   : > { %v2039_v14 = vrot.slane %v2014_v53, 1  ;;  %v2023_v18 = vrot.slane %v2014_v53, 7 }
 0x458   : > { %v4449_v45 = vpop.eup %4448  ;;  %v2021_v17 = vrot.slane %v2013_v39, 7  ;;  %v2037_v10 = vrot.slane %v2013_v39, 1  ;;  %v2053_v54 = vpack.c.bf16 %v2013_v39, %v2012_v34  ;;  %v4304_v39 = vld [vmem:[%s6081_s9 + $0x50] sm:$0xff]  }
 0x459   : > { %v2015_v1 = vmul.f32 %v4449_v45, %v1985_v2  ;;  %v4306_v45 = vld [vmem:[%s6081_s9 + $0x48] sm:$0xff]  }
 0x45a   : > { %v2022_v38 = vsel %vm810_vm1, %v2020_v62, %v2021_v17  ;;  %2289 = vmatprep.mubr.bf16.mxu0 %v2053_v54  ;;  %v2038_v20 = vsel %vm945_vm0, %v2036_v24, %v2037_v10  ;;  %v2040_v33 = vsel %vm945_vm0, %v2037_v10, %v2039_v14  ;;  %v2024_v23 = vsel %vm810_vm1, %v2021_v17, %v2023_v18  ;;  %v4303_v62 = vld [vmem:[%s6081_s9 + $0x18] sm:$0xff]   ;;  %v4307_v24 = vld [vmem:[%s6081_s9 + $0x8] sm:$0xff]   ;;  %v4308_v17 = vld [vmem:[%s6081_s9 + $0x40] sm:$0xff]  }
 0x45b   : > { %v2041_v9 = vrot.slane %v2015_v1, 1  ;;  %v3624_v11 = vpack.c.bf16 %v2022_v38, %v2031_v63  ;;  %v3630_v21 = vpack.c.bf16 %v2040_v33, %v2038_v20  ;;  %v2025_v2 = vrot.slane %v2015_v1, 7  ;;  %v4309_v10 = vld [vmem:[%s6081_s9] sm:$0xff]  }
 0x45c   : > { %v2056_v48 = vpack.c.bf16 %v2015_v1, %v2014_v53  ;;  %v4301_v53 = vld [vmem:[%s6081_s9 + $0x20] sm:$0xff]  }
 0x45d   : > { %3625 = vmatmul.mubr.msk.bf16.vlgmr.msra.gmra.mxu0 %vm3623_vm5, %v3624_v11  ;;  %3969 = vmatprep.mubr.msk.bf16.mxu1 %vm5661_vm9, %v3630_v21  ;;  %v2042_v51 = vsel %vm945_vm0, %v2039_v14, %v2041_v9  ;;  %v2047_v60 = vsel %vm945_vm0, %v2041_v9, 0.0  ;;  %v2026_v0 = vsel %vm810_vm1, %v2023_v18, %v2025_v2  ;;  %v4305_v14 = vld [vmem:[%s6081_s9 + $0x10] sm:$0xff]   ;;  %v3598_v9 = vld [vmem:[#allocation6] ss:$0 sm:$0xff] }
 0x45e   : > { %2297 = vmatprep.mubr.bf16.mxu0 %v2056_v48  ;;  %v3633_v19 = vpack.c.bf16 %v2047_v60, %v2042_v51  ;;  %3814 = vmatpush3.bf16.msra.mxu0 %v4295_v12  ;;  %v3627_v34 = vpack.c.bf16 %v2026_v0, %v2024_v23 }
 0x45f   : > { %3815 = vmatprep.subr.bf16.mxu0 %v4296_v22 }
 0x460   : > { %3970 = vmatmul.mubr.msk.bf16.vlgmr.msra.gmra.mxu1 %vm5678_vm4, %v3633_v19 }
 0x462   : > { %3816 = vmatpush3.bf16.msra.mxu0 %v4297_v6 }
 0x463   : > { %3817 = vmatprep.subr.bf16.mxu0 %v4298_v35 }
 0x465   : > { %3628 = vmatmul.mubr.msk.bf16.gmra.mxu0 %vm3626_vm13, %v3627_v34 }
 0x466   : > { %3818 = vmatpush3.bf16.msra.mxu0 %v4299_v61 }
 0x467   : > { %3819 = vmatprep.subr.bf16.mxu0 %v4300_v49 }
 0x46a   : > { %3820 = vmatpush3.bf16.msra.mxu0 %v4301_v53 }
 0x46b   : > { %3821 = vmatprep.subr.bf16.mxu0 %v4302_v13 }
 0x46e   : > { %3822 = vmatpush3.bf16.msra.mxu0 %v4303_v62 }
 0x46f   : > { %3823 = vmatprep.subr.bf16.mxu0 %v4304_v39 }
 0x472   : > { %3824 = vmatpush3.bf16.msra.mxu0 %v4305_v14 }
 0x473   : > { %3825 = vmatprep.subr.bf16.mxu0 %v4306_v45 }
 0x476   : > { %3826 = vmatpush3.bf16.msra.mxu0 %v4307_v24 }
 0x477   : > { %3827 = vmatprep.subr.bf16.mxu0 %v4308_v17 }
 0x47a   : > { %3828 = vmatpush3.bf16.msra.mxu0 %v4309_v10 }
 0x51d   : > { %v3791_v54 = vpop.f32.mrf.mxu0 }
 0x51f   : > { %v3792_v1 = vpop.f32.mrf.mxu0 }
 0x520   : > { %v3971_v63 = vpop.f32.mrf.mxu1  ;;  %v3793_v20 = vadd.f32 %v3792_v1, %v3791_v54 }
 0x521   : > { %v3794_v38 = vpop.f32.mrf.mxu0 }
 0x522   : > { %v2340_v33 = vpop.f32.mrf.mxu1  ;;  %v2292_v2 = vadd.f32 %v3793_v20, %v3598_v9  ;;  %v4310_v20 = vld [vmem:[%s6083_s11 + $0x38] sm:$0xff]  }
 0x523   : > { %v3795_v12 = vpop.f32.mrf.mxu0  ;;  %3973 = vmatprep.subr.bf16.mxu1 %v4310_v20 }
 0x524   : > { %v3796_v11 = vadd.f32 %v3795_v12, %v3794_v38  ;;  %v3972_v21 = vpop.f32.mrf.mxu1  ;;  %v2341_v35 = vadd.f32 %v2340_v33, %v2292_v2  ;;  %3974 = vmatpush3.bf16.msra.mxu1 %v4310_v20  ;;  %v4312_v33 = vld [vmem:[%s6083_s11 + $0x28] sm:$0xff]   ;;  %v4314_v12 = vld [vmem:[%s6083_s11 + $0x18] sm:$0xff]  }
 0x525   : > { %v3797_v22 = vpop.f32.mrf.mxu0  ;;  %3975 = vmatprep.subr.bf16.mxu1 %v4311_v15  ;;  %v4319_v2 = vld [vmem:[%s6084_s12 + $0x38] sm:$0xff]  }
 0x526   : > { %v2295_v48 = vadd.f32 %v3796_v11, %v3598_v9  ;;  %v2343_v51 = vpop.f32.mrf.mxu1  ;;  %v2359_v53 = vrot.slane %v2341_v35, 1  ;;  %v4316_v11 = vld [vmem:[%s6083_s11 + $0x8] sm:$0xff]  }
 0x527   : > { %v3798_v60 = vpop.f32.mrf.mxu0 }
 0x528   : > { %v3799_v18 = vadd.f32 %v3798_v60, %v3797_v22  ;;  %v2344_v19 = vadd.f32 %v2343_v51, %v2295_v48  ;;  %3976 = vmatpush3.bf16.msra.mxu1 %v4311_v15  ;;  %v4318_v22 = vld [vmem:[%s6084_s12 + $0x78] sm:$0xff]   ;;  %v4320_v48 = vld [vmem:[%s6084_s12 + $0x70] sm:$0xff]   ;;  %v4322_v60 = vld [vmem:[%s6084_s12 + $0x68] sm:$0xff]  }
 0x529   : > { %v3800_v6 = vpop.f32.mrf.mxu0  ;;  %3977 = vmatprep.subr.bf16.mxu1 %v4312_v33  ;;  %3853 = vmatprep.subr.bf16.mxu0 %v4318_v22  ;;  %v4321_v51 = vld [vmem:[%s6084_s12 + $0x30] sm:$0xff]  }
 0x52a   : > { %v2300_v0 = vadd.f32 %v3799_v18, %v3598_v9  ;;  %v2360_v61 = vrot.slane %v2344_v19, 1  ;;  %v2375_v17 = vpack.c.bf16 %v2344_v19, %v2341_v35  ;;  %v4323_v18 = vld [vmem:[%s6084_s12 + $0x28] sm:$0xff]   ;;  %v4324_v19 = vld [vmem:[%s6084_s12 + $0x60] sm:$0xff]   ;;  %v4326_v35 = vld [vmem:[%s6084_s12 + $0x58] sm:$0xff]  }
 0x52b   : > { %v3801_v23 = vpop.f32.mrf.mxu0 }
 0x52c   : > { %v2349_v34 = vadd.f32 %v3971_v63, %v2300_v0  ;;  %v3802_v49 = vadd.f32 %v3801_v23, %v3800_v6  ;;  %v2361_v39 = vsel %vm945_vm0, %v2359_v53, %v2360_v61  ;;  %3978 = vmatpush3.bf16.msra.mxu1 %v4312_v33  ;;  %v4325_v6 = vld [vmem:[%s6084_s12 + $0x20] sm:$0xff]   ;;  %v4327_v0 = vld [vmem:[%s6084_s12 + $0x18] sm:$0xff]   ;;  %v4328_v23 = vld [vmem:[%s6084_s12 + $0x50] sm:$0xff]  }
 0x52d   : > { %3979 = vmatprep.subr.bf16.mxu1 %v4313_v16 }
 0x52e   : > { %v2362_v13 = vrot.slane %v2349_v34, 1  ;;  %v2303_v62 = vadd.f32 %v3802_v49, %v3598_v9  ;;  %v4315_v9 = vld [vmem:[%s6083_s11 + $0x10] sm:$0xff]   ;;  %v4331_v49 = vld [vmem:[%s6084_s12 + $0x8] sm:$0xff]  }
 0x530   : > { %v2363_v14 = vsel %vm945_vm0, %v2360_v61, %v2362_v13  ;;  %v2352_v45 = vadd.f32 %v3972_v21, %v2303_v62  ;;  %3980 = vmatpush3.bf16.msra.mxu1 %v4313_v16  ;;  %v4317_v21 = vld [vmem:[%s6083_s11] sm:$0xff]   ;;  %v4330_v61 = vld [vmem:[%s6084_s12 + $0x48] sm:$0xff]  }
 0x531   : > { %v3653_v24 = vpack.c.bf16 %v2363_v14, %v2361_v39  ;;  %3981 = vmatprep.subr.bf16.mxu1 %v4314_v12 }
 0x532   : > { %v2364_v10 = vrot.slane %v2352_v45, 1  ;;  %v2377_v38 = vpack.c.bf16 %v2352_v45, %v2349_v34  ;;  %v4329_v34 = vld [vmem:[%s6084_s12 + $0x10] sm:$0xff]  }
 0x533   : > { %3654 = vmatprep.mubr.msk.bf16.mxu0 %vm5661_vm9, %v3653_v24 }
 0x534   : > { %2547 = vmatmul.mubr.bf16.vlgmr.msra.gmra.mxu0 %v2375_v17  ;;  %v2365_v54 = vsel %vm945_vm0, %v2362_v13, %v2364_v10  ;;  %v2370_v1 = vsel %vm945_vm0, %v2364_v10, 0.0  ;;  %3982 = vmatpush3.bf16.msra.mxu1 %v4314_v12  ;;  %v3635_v13 = vld [vmem:[#allocation8] ss:$0 sm:$0xff] }
 0x535   : > { %v3656_v63 = vpack.c.bf16 %v2370_v1, %v2365_v54  ;;  %3983 = vmatprep.subr.bf16.mxu1 %v4315_v9  ;;  %3854 = vmatpush3.bf16.msra.mxu0 %v4319_v2 }
 0x536   : > { %3855 = vmatprep.subr.bf16.mxu0 %v4320_v48 }
 0x537   : > { %3657 = vmatprep.mubr.msk.bf16.mxu0 %vm5678_vm4, %v3656_v63 }
 0x538   : > { %3984 = vmatpush3.bf16.msra.mxu1 %v4315_v9 }
 0x539   : > { %3985 = vmatprep.subr.bf16.mxu1 %v4316_v11  ;;  %3856 = vmatpush3.bf16.msra.mxu0 %v4321_v51 }
 0x53a   : > { %3857 = vmatprep.subr.bf16.mxu0 %v4322_v60 }
 0x53c   : > { %2555 = vmatmul.mubr.bf16.gmra.mxu0 %v2377_v38  ;;  %3986 = vmatpush3.bf16.msra.mxu1 %v4316_v11 }
 0x53d   : > { %3987 = vmatprep.subr.bf16.mxu1 %v4317_v21  ;;  %3858 = vmatpush3.bf16.msra.mxu0 %v4323_v18 }
 0x53e   : > { %3859 = vmatprep.subr.bf16.mxu0 %v4324_v19  ;;  %v4332_v19 = vld [vmem:[%s6084_s12 + $0x40] sm:$0xff]  }
 0x540   : > { %3988 = vmatpush3.bf16.msra.mxu1 %v4317_v21 }
 0x541   : > { %3860 = vmatpush3.bf16.msra.mxu0 %v4325_v6  ;;  %3997 = vmatprep.subr.bf16.mxu1 %v4334_v58 }
 0x542   : > { %3861 = vmatprep.subr.bf16.mxu0 %v4326_v35  ;;  %v4333_v35 = vld [vmem:[%s6084_s12] sm:$0xff]  }
 0x545   : > { %3862 = vmatpush3.bf16.msra.mxu0 %v4327_v0 }
 0x546   : > { %3863 = vmatprep.subr.bf16.mxu0 %v4328_v23 }
 0x549   : > { %3864 = vmatpush3.bf16.msra.mxu0 %v4329_v34 }
 0x54a   : > { %3865 = vmatprep.subr.bf16.mxu0 %v4330_v61 }
 0x54d   : > { %3866 = vmatpush3.bf16.msra.mxu0 %v4331_v49 }
 0x54e   : > { %3867 = vmatprep.subr.bf16.mxu0 %v4332_v19 }
 0x551   : > { %3868 = vmatpush3.bf16.msra.mxu0 %v4333_v35 }
 0x5f4   : > { %v3829_v53 = vpop.f32.mrf.mxu0 }
 0x5f6   : > { %v3830_v62 = vpop.f32.mrf.mxu0 }
 0x5f7   : > { %v3831_v39 = vadd.f32 %v3830_v62, %v3829_v53 }
 0x5f8   : > { %v3832_v14 = vpop.f32.mrf.mxu0 }
 0x5f9   : > { %v2549_v45 = vadd.f32 %v3831_v39, %v3635_v13 }
 0x5fa   : > { %v3833_v24 = vpop.f32.mrf.mxu0 }
 0x5fb   : > { %v3658_v17 = vmul.f32 -1.442695, %v2549_v45  ;;  %v3834_v10 = vadd.f32 %v3833_v24, %v3832_v14 }
 0x5fc   : > { %v3835_v54 = vpop.f32.mrf.mxu0 }
 0x5fd   : > { %4450 = vpow2.f32 %v3658_v17  ;;  %v2552_v1 = vadd.f32 %v3834_v10, %v3635_v13 }
 0x5fe   : > { %v3836_v63 = vpop.f32.mrf.mxu0 }
 0x5ff   : > { %v3659_v38 = vmul.f32 -1.442695, %v2552_v1  ;;  %v3837_v20 = vadd.f32 %v3836_v63, %v3835_v54 }
 0x600   : > { %v3838_v15 = vpop.f32.mrf.mxu0 }
 0x601   : > { %4452 = vpow2.f32 %v3659_v38  ;;  %v2557_v33 = vadd.f32 %v3837_v20, %v3635_v13 }
 0x602   : > { %v3839_v16 = vpop.f32.mrf.mxu0 }
 0x603   : > { %v3660_v12 = vmul.f32 -1.442695, %v2557_v33  ;;  %v3840_v9 = vadd.f32 %v3839_v16, %v3838_v15 }
 0x605   : > { %4454 = vpow2.f32 %v3660_v12  ;;  %v2560_v11 = vadd.f32 %v3840_v9, %v3635_v13 }
 0x607   : > { %v3661_v21 = vmul.f32 -1.442695, %v2560_v11 }
 0x609   : > { %4456 = vpow2.f32 %v3661_v21 }
 0x60a   : > { %v4451_v22 = vpop.eup %4450 }
 0x60b   : > { %v2575_v2 = vadd.f32 1.0, %v4451_v22 }
 0x60d   : > { %4458 = vrcp.f32 %v2575_v2 }
 0x60e   : > { %v4453_v48 = vpop.eup %4452 }
 0x60f   : > { %v2576_v51 = vadd.f32 1.0, %v4453_v48 }
 0x611   : > { %4460 = vrcp.f32 %v2576_v51 }
 0x612   : > { %v4455_v60 = vpop.eup %4454 }
 0x613   : > { %v2577_v18 = vadd.f32 1.0, %v4455_v60 }
 0x615   : > { %4462 = vrcp.f32 %v2577_v18 }
 0x616   : > { %v4457_v6 = vpop.eup %4456 }
 0x617   : > { %v2578_v0 = vadd.f32 1.0, %v4457_v6 }
 0x619   : > { %4464 = vrcp.f32 %v2578_v0 }
 0x61a   : > { %v4459_v23 = vpop.eup %4458 }
 0x61b   : > { %v2587_v34 = vmul.f32 %v4459_v23, %v2549_v45 }
 0x61d   : > { %v2615_v53 = vrot.slane %v2587_v34, 1  ;;  %v2591_v39 = vsel %vm872_vm7, %v2587_v34, %v4191_v52 }
 0x61e   : > { %v4461_v61 = vpop.eup %4460 }
 0x61f   : > { %v2588_v49 = vmul.f32 %v4461_v61, %v2552_v1 }
 0x621   : > { %v2616_v13 = vrot.slane %v2588_v49, 1  ;;  %v4208_v62 = vpack.i.bf16 %v2588_v49, %v2587_v34  ;;  %v2592_v14 = vsel %vm872_vm7, %v2588_v49, %v4192_v25 }
 0x622   : > { %v4463_v24 = vpop.eup %4462  ;;  %v2651_v17 = vpack.c.bf16 %v2592_v14, %v2591_v39 }
 0x623   : > { %v2589_v10 = vmul.f32 %v4463_v24, %v2557_v33  ;;  %4209 = vrot.lane.b32.xlu0 %v4208_v62, %s4712_s19  ;;  %v2617_v45 = vsel %vm945_vm0, %v2615_v53, %v2616_v13 }
 0x624   : > { %3989 = vmatprep.mubr.bf16.mxu1 %v2651_v17  ;;  %3009 = vmatprep.mubr.bf16.mxu0 %v2651_v17 }
 0x625   : > { %v2618_v54 = vrot.slane %v2589_v10, 1  ;;  %v2593_v38 = vsel %vm872_vm7, %v2589_v10, %v4196_v55 }
 0x626   : > { %v4465_v1 = vpop.eup %4464 }
 0x627   : > { %v2590_v63 = vmul.f32 %v4465_v1, %v2560_v11  ;;  %4219 = vrot.lane.b32.xlu0 %v4218_v41, %s4712_s19  ;;  %v2619_v7 = vsel %vm945_vm0, %v2616_v13, %v2618_v54  ;;  %v4336_v41 = vld [vmem:[%s6086_s14 + $0x8] sm:$0xff]  }
 0x628   : > { %v2628_v21 = vsel %vm764_vm3, %v2619_v7, 0.0 }
 0x629   : > { %v2620_v25 = vrot.slane %v2590_v63, 1  ;;  %v4213_v52 = vpack.i.bf16 %v2590_v63, %v2589_v10  ;;  %v2594_v20 = vsel %vm872_vm7, %v2590_v63, %v4197_v4 }
 0x62a   : > { %v2652_v15 = vpack.c.bf16 %v2594_v20, %v2593_v38 }
 0x62b   : > { %4214 = vrot.lane.b32.xlu1 %v4213_v52, %s4712_s19  ;;  %v2621_v33 = vsel %vm945_vm0, %v2618_v54, %v2620_v25  ;;  %v2626_v50 = vsel %vm945_vm0, %v2620_v25, 0.0  ;;  %vm6145_vm0 = vcmask 261120  }
 0x62c   : > { %3990 = vmatmul.mubr.bf16.vlgmr.msra.gmra.mxu1 %v2652_v15  ;;  %v2630_v0 = vsel %vm766_vm2, %v2626_v50, 0.0  ;;  %vm6147_vm1 = vmmov %vm6145_vm0 }
 0x62d   : > { %3998 = vmatpush3.bf16.msra.mxu1 %v4334_v58  ;;  %vm6149_vm2 = vmmov %vm6145_vm0 }
 0x62e   : > { %3999 = vmatprep.subr.bf16.mxu1 %v4335_v40  ;;  %vm6151_vm3 = vmmov %vm6145_vm0 }
 0x62f   : > { %4224 = vrot.lane.b32.xlu1 %v4223_v8, %s4712_s19  ;;  %vm6153_vm6 = vmmov %vm6145_vm0 }
 0x630   : > { %vm6155_vm11 = vmmov %vm6145_vm0 }
 0x631   : > { %4000 = vmatpush3.bf16.msra.mxu1 %v4335_v40  ;;  %vm6157_vm14 = vmmov %vm6145_vm0 }
 0x632   : > { %4001 = vmatprep.subr.bf16.mxu1 %v4336_v41  ;;  %vm6159_vm15 = vmmov %vm6145_vm0 }
 0x633   : > { %vm6161_vm8 = vmmov %vm6145_vm0 }
 0x634   : > { %vm6163_vm10 = vmmov %vm6145_vm0 }
 0x635   : > { %4002 = vmatpush3.bf16.msra.mxu1 %v4336_v41  ;;  %vm6165_vm12 = vmmov %vm6145_vm0 }
 0x636   : > { %4003 = vmatprep.subr.bf16.mxu1 %v4337_v27  ;;  %vm6167_vm5 = vmmov %vm6145_vm0 }
 0x637   : > { %vm6169_vm9 = vmmov %vm6145_vm0 }
 0x638   : > { %vm6171_vm4 = vmmov %vm6145_vm0 }
 0x639   : > { %4004 = vmatpush3.bf16.msra.mxu1 %v4337_v27  ;;  %vm6173_vm13 = vmmov %vm6145_vm0 }
 0x695   : > { %v4210_v43 = vpop.permute.xlu0 %4209 }
 0x696   : > { %v4212_v8 = vunpack.i.h.bf16 %v4210_v43  ;;  %v4211_v44 = vunpack.i.l.bf16 %v4210_v43 }
 0x698   : > { %v2611_v4 = vsel %vm872_vm7, %v4211_v44, %v4201_v59  ;;  %v2612_v55 = vsel %vm872_vm7, %v4212_v8, %v4202_v36  ;;  %v6146_v44 = vunpack.i.l.bf16 %v5109_v28 }
 0x699   : > { %v4220_v16 = vpop.permute.xlu0 %4219  ;;  %v2653_v12 = vpack.c.bf16 %v2612_v55, %v2611_v4  ;;  %v6148_v55 = vunpack.i.h.bf16 %v5109_v28 }
 0x69a   : > { %v4222_v9 = vunpack.i.h.bf16 %v4220_v16  ;;  %v4221_v11 = vunpack.i.l.bf16 %v4220_v16 }
 0x69b   : > { %3993 = vmatprep.mubr.bf16.mxu1 %v2653_v12  ;;  %3010 = vmatmul.mubr.bf16.vlgmr.msra.gmra.mxu0 %v2653_v12 }
 0x69c   : > { %3017 = vmatprep.mubr.bf16.mxu0 %v2652_v15  ;;  %v2647_v22 = vsel %vm872_vm7, %v2617_v45, %v4221_v11  ;;  %v2648_v2 = vsel %vm872_vm7, %v2628_v21, %v4222_v9 }
 0x69d   : > { %v4215_v59 = vpop.permute.xlu1 %4214  ;;  %v2847_v48 = vpack.c.bf16 %v2648_v2, %v2647_v22 }
 0x69e   : > { %v4217_v29 = vunpack.i.h.bf16 %v4215_v59  ;;  %v4216_v51 = vunpack.i.l.bf16 %v4215_v59 }
 0x6a0   : > { %v2613_v36 = vsel %vm872_vm7, %v4216_v51, %v4206_v30  ;;  %v2614_v60 = vsel %vm872_vm7, %v4217_v29, %v4207_v46 }
 0x6a1   : > { %v4225_v18 = vpop.permute.xlu1 %4224  ;;  %v2654_v19 = vpack.c.bf16 %v2614_v60, %v2613_v36 }
 0x6a2   : > { %v4227_v6 = vunpack.i.h.bf16 %v4225_v18  ;;  %v4226_v35 = vunpack.i.l.bf16 %v4225_v18 }
 0x6a3   : > { %3994 = vmatmul.mubr.bf16.gmra.mxu1 %v2654_v19  ;;  %3018 = vmatmul.mubr.bf16.gmra.mxu0 %v2654_v19 }
 0x6a4   : > { %3025 = vmatprep.mubr.bf16.mxu0 %v2653_v12  ;;  %v2649_v23 = vsel %vm872_vm7, %v2621_v33, %v4226_v35  ;;  %v2650_v30 = vsel %vm872_vm7, %v2630_v0, %v4227_v6  ;;  %v6150_v12 = vunpack.i.l.bf16 %v5125_v42 }
 0x6a5   : > { %v2848_v34 = vpack.c.bf16 %v2650_v30, %v2649_v23 }
 0x6ab   : > { %3026 = vmatmul.mubr.bf16.gmra.mxu0 %v2847_v48 }
 0x6ac   : > { %3033 = vmatprep.mubr.bf16.mxu0 %v2654_v19 }
 0x6b3   : > { %3034 = vmatmul.mubr.bf16.gmra.mxu0 %v2848_v34 }
 0x6ec   : > { %v3991_v46 = vpop.f32.mrf.mxu1 }
 0x6ed   : > { %v2769_v61 = vadd.f32 %v3991_v46, %v5866_v26 }
 0x6ee   : > { %v2760_v49 = vpop.f32.mrf.mxu1 }
 0x6ef   : > { %v3673_v53 = vmul.f32 -1.442695, %v2769_v61  ;;  %v2761_v13 = vadd.f32 %v5866_v26, %v2760_v49 }
 0x6f0   : > { %v3992_v32 = vpop.f32.mrf.mxu1 }
 0x6f1   : > { %4466 = vpow2.f32 %v3673_v53  ;;  %v3671_v62 = vmul.f32 -1.442695, %v2761_v13  ;;  %v2772_v39 = vadd.f32 %v3992_v32, %v5866_v26 }
 0x6f2   : > { %v2763_v14 = vpop.f32.mrf.mxu1 }
 0x6f3   : > { %4468 = vpow2.f32 %v3671_v62  ;;  %v3674_v24 = vmul.f32 -1.442695, %v2772_v39  ;;  %v2764_v17 = vadd.f32 %v5866_v26, %v2763_v14 }
 0x6f5   : > { %4470 = vpow2.f32 %v3674_v24  ;;  %v3672_v10 = vmul.f32 -1.442695, %v2764_v17 }
 0x6f7   : > { %4472 = vpow2.f32 %v3672_v10 }
 0x6fe   : > { %v4467_v45 = vpop.eup %4466 }
 0x6ff   : > { %v2817_v1 = vadd.f32 1.0, %v4467_v45 }
 0x700   : > { %v4469_v54 = vpop.eup %4468 }
 0x701   : > { %v2815_v63 = vadd.f32 1.0, %v4469_v54 }
 0x702   : > { %v4471_v7 = vpop.eup %4470 }
 0x703   : > { %4474 = vrcp.f32 %v2815_v63  ;;  %v2818_v25 = vadd.f32 1.0, %v4471_v7 }
 0x704   : > { %v4473_v52 = vpop.eup %4472  ;;  %4476 = vrcp.f32 %v2817_v1 }
 0x705   : > { %4478 = vrcp.f32 %v2818_v25  ;;  %v2816_v38 = vadd.f32 1.0, %v4473_v52 }
 0x707   : > { %4480 = vrcp.f32 %v2816_v38 }
 0x710   : > { %v4475_v20 = vpop.eup %4474 }
 0x711   : > { %v4477_v15 = vpop.eup %4476  ;;  %v2839_v58 = vmul.f32 %v4475_v20, %v2761_v13 }
 0x712   : > { %v4479_v33 = vpop.eup %4478  ;;  %v2841_v43 = vmul.f32 %v4477_v15, %v2769_v61 }
 0x713   : > { %v2842_v40 = vmul.f32 %v4479_v33, %v2772_v39  ;;  %v3098_v4 = vsel %vm6147_vm1, %v2839_v58, %v6146_v44  ;;  %vm6175_vm1 = vmmov %vm6145_vm0 }
 0x714   : > { %v4481_v41 = vpop.eup %4480  ;;  %v3100_v9 = vsel %vm6151_vm3, %v2841_v43, %v6150_v12  ;;  %vm6178_vm3 = vmmov %vm6145_vm0 }
 0x715   : > { %v2840_v27 = vmul.f32 %v4481_v41, %v2764_v17  ;;  %v3101_v8 = vsel %vm6145_vm0, %v2842_v40, %v4117_v47 }
 0x716   : > { %v3115_v21 = vpack.c.bf16 %v3101_v8, %v3100_v9 }
 0x717   : > { %v3099_v16 = vsel %vm6149_vm2, %v2840_v27, %v6148_v55  ;;  %vm6176_vm2 = vmmov %vm6145_vm0 }
 0x718   : > { %v3114_v11 = vpack.c.bf16 %v3099_v16, %v3098_v4 }
 0x71a   : > { %4005 = vmatprep.mubr.msk.bf16.mxu1 %vm872_vm7, %v3114_v11 }
 0x71b   : > { %4006 = vmatmul.mubr.msk.bf16.vlgmr.msra.gmra.mxu1 %vm872_vm7, %v3115_v21 }
 0x75b   : > { %v3869_v22 = vpop.f32.mrf.mxu0 }
 0x75d   : > { %v3870_v47 = vpop.f32.mrf.mxu0 }
 0x75e   : > { %v3871_v2 = vadd.f32 %v3870_v47, %v3869_v22 }
 0x75f   : > { %v3872_v59 = vpop.f32.mrf.mxu0 }
 0x760   : > { %v5887_v48 = vadd.f32 %v3871_v2, %v5866_v26 }
 0x761   : > { %v3873_v28 = vpop.f32.mrf.mxu0 }
 0x762   : > { %v3695_v29 = vmul.f32 -1.442695, %v5887_v48  ;;  %v3874_v51 = vadd.f32 %v3873_v28, %v3872_v59 }
 0x763   : > { %v3995_v42 = vpop.f32.mrf.mxu1  ;;  %v3875_v36 = vpop.f32.mrf.mxu0 }
 0x764   : > { %4482 = vpow2.f32 %v3695_v29  ;;  %v5891_v60 = vadd.f32 %v3874_v51, %v5866_v26  ;;  %v5898_v0 = vadd.f32 %v3995_v42, %v5866_v26 }
 0x765   : > { %v2776_v50 = vpop.f32.mrf.mxu1  ;;  %v3876_v18 = vpop.f32.mrf.mxu0 }
 0x766   : > { %v3696_v19 = vmul.f32 -1.442695, %v5891_v60  ;;  %v5895_v6 = vadd.f32 %v5866_v26, %v2776_v50  ;;  %v3877_v35 = vadd.f32 %v3876_v18, %v3875_v36  ;;  %v3677_v24 = vmul.f32 -1.442695, %v5898_v0 }
 0x767   : > { %v3996_v23 = vpop.f32.mrf.mxu1  ;;  %v3878_v30 = vpop.f32.mrf.mxu0 }
 0x768   : > { %4484 = vpow2.f32 %v3696_v19  ;;  %v3675_v34 = vmul.f32 -1.442695, %v5895_v6  ;;  %v5902_v46 = vadd.f32 %v3877_v35, %v5866_v26  ;;  %v5905_v61 = vadd.f32 %v3996_v23, %v5866_v26 }
 0x769   : > { %v2779_v49 = vpop.f32.mrf.mxu1  ;;  %v3879_v53 = vpop.f32.mrf.mxu0 }
 0x76a   : > { %4486 = vpow2.f32 %v3675_v34  ;;  %v3697_v13 = vmul.f32 -1.442695, %v5902_v46  ;;  %v5909_v32 = vadd.f32 %v5866_v26, %v2779_v49  ;;  %v3678_v62 = vmul.f32 -1.442695, %v5905_v61 }
 0x76b   : > { %v3880_v39 = vadd.f32 %v3879_v53, %v3878_v30  ;;  %v3881_v14 = vpop.f32.mrf.mxu0  ;;  %v6152_v53 = vunpack.i.l.bf16 %v5141_v57 }
 0x76c   : > { %4488 = vpow2.f32 %v3697_v13  ;;  %v3676_v17 = vmul.f32 -1.442695, %v5909_v32 }
 0x76d   : > { %v5915_v10 = vadd.f32 %v3880_v39, %v5866_v26  ;;  %v3882_v45 = vpop.f32.mrf.mxu0 }
 0x76e   : > { %4490 = vpow2.f32 %v3676_v17  ;;  %v3883_v54 = vadd.f32 %v3882_v45, %v3881_v14 }
 0x76f   : > { %4492 = vpow2.f32 %v3678_v62  ;;  %v3698_v1 = vmul.f32 -1.442695, %v5915_v10  ;;  %v3884_v63 = vpop.f32.mrf.mxu0  ;;  %v6154_v62 = vunpack.i.h.bf16 %v5141_v57 }
 0x770   : > { %4494 = vpow2.f32 %v3677_v24  ;;  %v5919_v7 = vadd.f32 %v3883_v54, %v5866_v26 }
 0x771   : > { %v4483_v25 = vpop.eup %4482  ;;  %4496 = vpow2.f32 %v3698_v1  ;;  %v3885_v52 = vpop.f32.mrf.mxu0 }
 0x772   : > { %v3066_v38 = vadd.f32 1.0, %v4483_v25  ;;  %v3699_v20 = vmul.f32 -1.442695, %v5919_v7  ;;  %v3886_v15 = vadd.f32 %v3885_v52, %v3884_v63 }
 0x773   : > { %v3887_v33 = vpop.f32.mrf.mxu0 }
 0x774   : > { %4498 = vrcp.f32 %v3066_v38  ;;  %v5923_v58 = vadd.f32 %v3886_v15, %v5866_v26 }
 0x775   : > { %v4485_v40 = vpop.eup %4484  ;;  %4500 = vpow2.f32 %v3699_v20  ;;  %v3888_v41 = vpop.f32.mrf.mxu0 }
 0x776   : > { %v3067_v43 = vadd.f32 1.0, %v4485_v40  ;;  %v3889_v27 = vadd.f32 %v3888_v41, %v3887_v33  ;;  %v3700_v44 = vmul.f32 -1.442695, %v5923_v58  ;;  %v6156_v33 = vunpack.i.h.bf16 %v5172_v37 }
 0x777   : > { %v4487_v8 = vpop.eup %4486  ;;  %v3890_v4 = vpop.f32.mrf.mxu0  ;;  %v6158_v41 = vunpack.i.l.bf16 %v5139_v56 }
 0x778   : > { %4502 = vrcp.f32 %v3067_v43  ;;  %v2819_v55 = vadd.f32 1.0, %v4487_v8  ;;  %v5927_v16 = vadd.f32 %v3889_v27, %v5866_v26 }
 0x779   : > { %v4489_v12 = vpop.eup %4488  ;;  %v3891_v9 = vpop.f32.mrf.mxu0  ;;  %4504 = vpow2.f32 %v3700_v44 }
 0x77a   : > { %v3068_v11 = vadd.f32 1.0, %v4489_v12  ;;  %v3892_v21 = vadd.f32 %v3891_v9, %v3890_v4  ;;  %v3701_v47 = vmul.f32 -1.442695, %v5927_v16  ;;  %4506 = vrcp.f32 %v2819_v55 }
 0x77b   : > { %v4491_v22 = vpop.eup %4490 }
 0x77c   : > { %v4493_v2 = vpop.eup %4492  ;;  %v2820_v59 = vadd.f32 1.0, %v4491_v22  ;;  %v5931_v28 = vadd.f32 %v3892_v21, %v5866_v26  ;;  %4508 = vrcp.f32 %v3068_v11  ;;  %v6166_v21 = vunpack.i.l.bf16 %v5170_v31 }
 0x77d   : > { %v4495_v29 = vpop.eup %4494  ;;  %v2822_v36 = vadd.f32 1.0, %v4493_v2  ;;  %v6168_v2 = vunpack.i.l.bf16 %v5202_v5 }
 0x77e   : > { %v4497_v51 = vpop.eup %4496  ;;  %4510 = vrcp.f32 %v2820_v59  ;;  %v3702_v42 = vmul.f32 -1.442695, %v5931_v28  ;;  %v2821_v19 = vadd.f32 1.0, %v4495_v29  ;;  %v6170_v59 = vunpack.i.h.bf16 %v5202_v5 }
 0x77f   : > { %v3069_v50 = vadd.f32 1.0, %v4497_v51  ;;  %4512 = vpow2.f32 %v3701_v47 }
 0x780   : > { %4514 = vpow2.f32 %v3702_v42 }
 0x781   : > { %v4499_v18 = vpop.eup %4498  ;;  %4516 = vrcp.f32 %v3069_v50 }
 0x782   : > { %v4501_v35 = vpop.eup %4500  ;;  %4518 = vrcp.f32 %v2822_v36  ;;  %v3090_v30 = vmul.f32 %v4499_v18, %v5887_v48  ;;  %v6174_v18 = vunpack.i.h.bf16 %v5200_v3 }
 0x783   : > { %v3070_v23 = vadd.f32 1.0, %v4501_v35  ;;  %4520 = vrcp.f32 %v2821_v19 }
 0x784   : > { %v3102_v13 = vsel %vm6153_vm6, %v3090_v30, %v6152_v53  ;;  %vm3302_vm6 = vcmask 523520  }
 0x785   : > { %v4503_v26 = vpop.eup %4502  ;;  %4522 = vrcp.f32 %v3070_v23 }
 0x786   : > { %v3091_v34 = vmul.f32 %v4503_v26, %v5891_v60  ;;  %v4505_v49 = vpop.eup %4504 }
 0x787   : > { %v4507_v14 = vpop.eup %4506  ;;  %v3071_v24 = vadd.f32 1.0, %v4505_v49 }
 0x788   : > { %v3103_v39 = vsel %vm6155_vm11, %v3091_v34, %v6154_v62  ;;  %v2843_v57 = vmul.f32 %v4507_v14, %v5895_v6  ;;  %v6162_v6 = vunpack.i.l.bf16 %v5172_v37  ;;  %vm3323_vm11 = vcmask 785920  }
 0x789   : > { %v3116_v17 = vpack.c.bf16 %v3103_v39, %v3102_v13  ;;  %v4509_v45 = vpop.eup %4508  ;;  %4524 = vrcp.f32 %v3071_v24 }
 0x78a   : > { %v3092_v63 = vmul.f32 %v4509_v45, %v5902_v46  ;;  %v6160_v46 = vunpack.i.h.bf16 %v5139_v56  ;;  %v6164_v56 = vunpack.i.h.bf16 %v5170_v31 }
 0x78b   : > { %v4511_v54 = vpop.eup %4510  ;;  %4009 = vmatprep.mubr.msk.bf16.mxu1 %vm872_vm7, %v3116_v17 }
 0x78c   : > { %v4513_v48 = vpop.eup %4512  ;;  %v2844_v60 = vmul.f32 %v4511_v54, %v5909_v32  ;;  %v3104_v32 = vsel %vm6159_vm15, %v3092_v63, %v6158_v41 }
 0x78d   : > { %v4515_v1 = vpop.eup %4514  ;;  %v3072_v25 = vadd.f32 1.0, %v4513_v48 }
 0x78e   : > { %v4517_v52 = vpop.eup %4516  ;;  %v3073_v38 = vadd.f32 1.0, %v4515_v1  ;;  %v3107_v40 = vsel %vm6157_vm14, %v2844_v60, %v6156_v33  ;;  %vm3344_vm14 = vcmask 1048320  }
 0x78f   : > { %v3093_v20 = vmul.f32 %v4517_v52, %v5915_v10  ;;  %4526 = vrcp.f32 %v3072_v25  ;;  %v4519_v15 = vpop.eup %4518  ;;  %v3106_v10 = vsel %vm6163_vm10, %v2843_v57, %v6162_v6 }
 0x790   : > { %4528 = vrcp.f32 %v3073_v38  ;;  %v4521_v27 = vpop.eup %4520  ;;  %v2846_v44 = vmul.f32 %v4519_v15, %v5905_v61  ;;  %v3118_v4 = vpack.c.bf16 %v3107_v40, %v3106_v10 }
 0x791   : > { %v3105_v43 = vsel %vm6161_vm8, %v3093_v20, %v6160_v46  ;;  %v2845_v12 = vmul.f32 %v4521_v27, %v5898_v0 }
 0x792   : > { %v3117_v8 = vpack.c.bf16 %v3105_v43, %v3104_v32  ;;  %v4523_v55 = vpop.eup %4522  ;;  %v3109_v9 = vsel %vm6165_vm12, %v2846_v44, %v6164_v56 }
 0x793   : > { %v3094_v11 = vmul.f32 %v4523_v55, %v5919_v7  ;;  %v3108_v22 = vsel %vm6167_vm5, %v2845_v12, %v6166_v21 }
 0x794   : > { %4010 = vmatmul.mubr.msk.bf16.gmra.mxu1 %vm872_vm7, %v3117_v8  ;;  %v3119_v47 = vpack.c.bf16 %v3109_v9, %v3108_v22 }
 0x795   : > { %4013 = vmatprep.mubr.msk.bf16.mxu1 %vm872_vm7, %v3118_v4  ;;  %v3110_v0 = vsel %vm6169_vm9, %v3094_v11, %v6168_v2 }
 0x796   : > { %v4525_v37 = vpop.eup %4524 }
 0x797   : > { %v3095_v61 = vmul.f32 %v4525_v37, %v5923_v58  ;;  %v6172_v58 = vunpack.i.l.bf16 %v5200_v3 }
 0x799   : > { %v3111_v29 = vsel %vm6171_vm4, %v3095_v61, %v6170_v59 }
 0x79a   : > { %v3120_v7 = vpack.c.bf16 %v3111_v29, %v3110_v0 }
 0x79c   : > { %v4527_v51 = vpop.eup %4526  ;;  %4014 = vmatmul.mubr.msk.bf16.gmra.mxu1 %vm872_vm7, %v3119_v47 }
 0x79d   : > { %v4529_v42 = vpop.eup %4528  ;;  %v3096_v31 = vmul.f32 %v4527_v51, %v5927_v16  ;;  %4017 = vmatprep.mubr.msk.bf16.mxu1 %vm872_vm7, %v3120_v7  ;;  %v3703_v16 = vld [vmem:[%s6087_s15] ss:$0 sm:$0xff] }
 0x79e   : > { %v3097_v36 = vmul.f32 %v4529_v42, %v5931_v28 }
 0x79f   : > { %v3112_v50 = vsel %vm6173_vm13, %v3096_v31, %v6172_v58 }
 0x7a0   : > { %v3113_v5 = vsel %vm6145_vm0, %v3097_v36, %v6174_v18 }
 0x7a1   : > { %v3121_v19 = vpack.c.bf16 %v3113_v5, %v3112_v50 }
 0x7a4   : > { %4018 = vmatmul.mubr.msk.bf16.gmra.mxu1 %vm872_vm7, %v3121_v19  ;;  %vm6177_vm7 = vmmov %vm6145_vm0 }
 0x7db   : > { %v4007_v35 = vpop.f32.mrf.mxu1 }
 0x7dc   : > { %v3228_v28 = vadd.f32 %v4007_v35, %v3703_v16 }
 0x7dd   : > { %v3219_v23 = vpop.f32.mrf.mxu1 }
 0x7de   : > { %3284 = vst.msk [vmem:[%s5992_s28 + $0x10] sm:$0xff] %vm6175_vm1, %v3228_v28  ;;  %v3220_v3 = vadd.f32 %v3703_v16, %v3219_v23 }
 0x7df   : > { %v4008_v30 = vpop.f32.mrf.mxu1 }
 0x7e0   : > { %3282 = vst.msk [vmem:[%s5992_s28] sm:$0xff] %vm6176_vm2, %v3220_v3  ;;  %v3231_v26 = vadd.f32 %v4008_v30, %v3703_v16 }
 0x7e1   : > { %v3222_v34 = vpop.f32.mrf.mxu1 }
 0x7e2   : > { %3285 = vst.msk [vmem:[%s5992_s28 + $0x18] sm:$0xff] %vm6177_vm7, %v3231_v26  ;;  %v3223_v49 = vadd.f32 %v3703_v16, %v3222_v34 }
 0x7e4   : > { %3283 = vst.msk [vmem:[%s5992_s28 + $0x8] sm:$0xff] %vm6178_vm3, %v3223_v49 }
 0x854   : > { %v4011_v53 = vpop.f32.mrf.mxu1 }
 0x855   : > { %v3244_v13 = vadd.f32 %v4011_v53, %v3703_v16 }
 0x856   : > { %v3235_v62 = vpop.f32.mrf.mxu1 }
 0x857   : > { %3294 = vrot.lane.b32.xlu0 %v3244_v13, %s6179_s30  ;;  %v3236_v14 = vadd.f32 %v3703_v16, %v3235_v62 }
 0x858   : > { %v4012_v39 = vpop.f32.mrf.mxu1 }
 0x859   : > { %v3247_v24 = vadd.f32 %v4012_v39, %v3703_v16 }
 0x85a   : > { %v3238_v17 = vpop.f32.mrf.mxu1 }
 0x85b   : > { %3296 = vrot.lane.b32.xlu1 %v3247_v24, %s6179_s30  ;;  %3290 = vrot.lane.b32.xlu0 %v3236_v14, %s6179_s30  ;;  %v3239_v54 = vadd.f32 %v3703_v16, %v3238_v17 }
 0x85c   : > { %v4015_v45 = vpop.f32.mrf.mxu1 }
 0x85d   : > { %v3260_v48 = vadd.f32 %v4015_v45, %v3703_v16 }
 0x85e   : > { %v3251_v60 = vpop.f32.mrf.mxu1 }
 0x85f   : > { %3292 = vrot.lane.b32.xlu1 %v3239_v54, %s6179_s30  ;;  %3315 = vrot.lane.b32.xlu0 %v3260_v48, %s4712_s19  ;;  %v3252_v63 = vadd.f32 %v3703_v16, %v3251_v60  ;;  %s4634_s30 = scalar_lea.vmem %s6028_s29, 512 }
 0x860   : > { %v4016_v1 = vpop.f32.mrf.mxu1  ;;  %p4635_p2 = scmp.ne.s32.totalorder %s6028_s29, %s4634_s30 }
 0x861   : > { %v3263_v25 = vadd.f32 %v4016_v1, %v3703_v16 }
 0x862   : > { %v3254_v52 = vpop.f32.mrf.mxu1 }
 0x863   : > { %3317 = vrot.lane.b32.xlu1 %v3263_v25, %s4712_s19  ;;  %3311 = vrot.lane.b32.xlu0 %v3252_v63, %s4712_s19  ;;  %v3255_v38 = vadd.f32 %v3703_v16, %v3254_v52 }
 0x864   : > { %v4019_v57 = vpop.f32.mrf.mxu1 }
 0x865   : > { %v3276_v41 = vadd.f32 %v4019_v57, %v3703_v16 }
 0x866   : > { %v3267_v20 = vpop.f32.mrf.mxu1 }
 0x867   : > { %v3268_v15 = vadd.f32 %v3703_v16, %v3267_v20  ;;  %3313 = vrot.lane.b32.xlu1 %v3255_v38, %s4712_s19  ;;  %s6180_s19 = sld [smem:[#allocation19_spill]] }
 0x868   : > { %v4020_v33 = vpop.f32.mrf.mxu1 }
 0x869   : > { %3332 = vrot.lane.b32.xlu0 %v3268_v15, %s4716_s20  ;;  %v3279_v46 = vadd.f32 %v4020_v33, %v3703_v16 }
 0x86a   : > { %v3270_v40 = vpop.f32.mrf.mxu1 }
 0x86b   : > { %v3271_v32 = vadd.f32 %v3703_v16, %v3270_v40 }
 0x86d   : > { %3334 = vrot.lane.b32.xlu1 %v3271_v32, %s4716_s20  ;;  %3336 = vrot.lane.b32.xlu0 %v3276_v41, %s4716_s20  ;;  %p6182_p3 = scmp.ne.s32.totalorder %s6180_s19, 0 }
 0x86f   : > { %p4636_p7 = pnand %p4635_p2, %p6182_p3 }
 0x871   : > { %3338 = vrot.lane.b32.xlu1 %v3279_v46, %s4716_s20  ;;  %p4637_p11 = pneg %p4636_p7  ;;  %s4638_s20 = sshll.u32 %s4717_s25, 4  ;;  %s4639_s20 = int_to_ptr.vmem [resolvable:$false] %s4638_s20 }
 0x872   : > { %s4640_s1 = scalar_lea.vmem %s4639_s20, 1024  ;;  %p4641_p10 = scmp.lt.s32.totalorder %s6028_s29, %s4639_s20 }
 0x873   : > { %p4642_p4 = scmp.lt.s32.totalorder %s4640_s1, %s4634_s30 }
 0x875   : > { %p4643_p5 = por %p4642_p4, %p4641_p10 }
 0x877   : > { %p4644_p0 = pnand %p4643_p5, %p4637_p11 }
 0x8c9   : > { %v3295_v43 = vpop.permute.xlu0 %3294 }
 0x8ca   : > { %3305 = vst.msk [vmem:[%s5992_s28 + $0x10] sm:$0xff] %vm3302_vm6, %v3295_v43 }
 0x8cd   : > { %v3297_v27 = vpop.permute.xlu1 %3296  ;;  %v3291_v6 = vpop.permute.xlu0 %3290 }
 0x8ce   : > { %3306 = vst.msk [vmem:[%s5992_s28 + $0x18] sm:$0xff] %vm3302_vm6, %v3297_v27  ;;  %3303 = vst.msk [vmem:[%s5992_s28] sm:$0xff] %vm3302_vm6, %v3291_v6 }
 0x8d1   : > { %v3293_v10 = vpop.permute.xlu1 %3292  ;;  %v3316_v8 = vpop.permute.xlu0 %3315 }
 0x8d2   : > { %3304 = vst.msk [vmem:[%s5992_s28 + $0x8] sm:$0xff] %vm3302_vm6, %v3293_v10 }
 0x8d3   : > { %3326 = vst.msk [vmem:[%s5992_s28 + $0x10] sm:$0xff] %vm3323_vm11, %v3316_v8 }
 0x8d5   : > { %v3318_v44 = vpop.permute.xlu1 %3317  ;;  %v3312_v4 = vpop.permute.xlu0 %3311 }
 0x8d6   : > { %3327 = vst.msk [vmem:[%s5992_s28 + $0x18] sm:$0xff] %vm3323_vm11, %v3318_v44  ;;  %3324 = vst.msk [vmem:[%s5992_s28] sm:$0xff] %vm3323_vm11, %v3312_v4 }
 0x8d9   : > { %v3314_v55 = vpop.permute.xlu1 %3313 }
 0x8da   : > { %3325 = vst.msk [vmem:[%s5992_s28 + $0x8] sm:$0xff] %vm3323_vm11, %v3314_v55 }
 0x8db   : > { %v3333_v12 = vpop.permute.xlu0 %3332 }
 0x8dc   : > { %3345 = vst.msk [vmem:[%s5992_s28] sm:$0xff] %vm3344_vm14, %v3333_v12 }
 0x8df   : > { %v3335_v56 = vpop.permute.xlu1 %3334  ;;  %v3337_v9 = vpop.permute.xlu0 %3336 }
 0x8e0   : > { %3346 = vst.msk [vmem:[%s5992_s28 + $0x8] sm:$0xff] %vm3344_vm14, %v3335_v56  ;;  %3347 = vst.msk [vmem:[%s5992_s28 + $0x10] sm:$0xff] %vm3344_vm14, %v3337_v9 }
 0x8e3   : > { %v3339_v11 = vpop.permute.xlu1 %3338 }
 0x8e4   : > { %3348 = vst.msk [vmem:[%s5992_s28 + $0x18] sm:$0xff] %vm3344_vm14, %v3339_v11 }
 0x8e5   : > { %4647 = shalt.err (!%p4644_p0)
}
 0x8e6   : > { %s4648_s28 = scalar_lea.hbm %s6026_s17, 512  ;;  %s4652_s21 = scalar_lea.hbm %s6181_s16, 1024 }
 0x8e7   : > { %p4649_p1 = scmp.ne.s32.totalorder %s6026_s17, %s4648_s28  ;;  %p4653_p9 = scmp.lt.s32.totalorder %s6026_s17, %s6181_s16 }
 0x8e8   : > { %p4654_p13 = scmp.lt.s32.totalorder %s4652_s21, %s4648_s28 }
 0x8e9   : > { %p4650_p12 = pnand %p4649_p1, %p6182_p3 }
 0x8ea   : > { %p4655_p2 = por %p4654_p13, %p4653_p9 }
 0x8eb   : > { %p4651_p8 = pneg %p4650_p12 }
 0x8ed   : > { %p4656_p7 = pnand %p4655_p2, %p4651_p8 }
 0x8ef   : > { %4659 = shalt.err (!%p4656_p7)
}
 0x8f0   : > { %s4718_s1 = smov 128   ;;  %s4719_s30 = smov 8  }
 0x8f1   : > { %s6183_s20 = scalar_lea.sflag [#allocation5], %s4944_s27 }
 0x8f2   : > { %4037 = dma.vmem_to_hbm [thread:$0]  (%p6182_p3), %s6028_s29, 512, %s6026_s17, %s6183_s20, %s4718_s1, %s4718_s1, %s4719_s30  }
 0x8f3 PF: > { %s6184_s26 = sld [smem:[#allocation16_spill]] }
 0x8f4   : > { %s6185_s0 = sld [smem:[#allocation20_spill]] }
 0x8f9   : > { %s3378_s2 = sand.u32 1, %s6184_s26  }
 0x8fa   : > { %p6186_p11 = scmp.ne.s32.totalorder %s6185_s0, 0  ;;  %s3379_s18 = scalar_lea.sflag [#allocation5], %s3378_s2 }
 0x8fc   : > { %p4053_p10 = pnand %p3478_p6, %p6186_p11 }
 0x8fe   : > { %p4054_p4 = pneg %p4053_p10 }
 0x900   : > { %4689 = dma.done.wait (%p4054_p4), %s3379_s18, 512  }
 0x901   : > { %4691 = vsyncadd (%p4054_p4), %s3379_s18, 4294966784  ;;  %s6187_s24 = sld [smem:[#allocation17_spill]]  ;;  %s6189_s21 = smov %s4698_s22 }
 0x902   : > { %s6188_s28 = sld [smem:[#allocation18_spill]]  ;;  %s6190_s22 = smov %s4702_s23 }
 0x907   : > { %p29_p5 = scmp.ge.s32.totalorder %s6187_s24, 4  }
 0x908   : > { %s6191_s23 = smov %s6188_s28 }
 0x909   :  { %31 = sbr.rel (!%p29_p5) target bundleno = 11 (0xb), region = 182 }
 0x90e   :  { %3384 = vsyncpa [#allocation4], 1 }
 0x90f   :  { %3386 = vsyncpa [#allocation4 + $0x1], 1 }
 0x910   :  { %3387 = vsyncpa [#allocation7], 1 }
 0x911   :  { %3388 = vsyncpa [#allocation10], 1 }
 0x912   :  { %3389 = vsyncpa [#allocation5], 1 }
 0x913   :  { %3391 = vsyncpa [#allocation5 + $0x1], 1 }

</bundles_post_ra>
